<compile_context>
chip_gen: v7x
topology: tpu7x:2x2x1
jax: 0.10.0
libtpu: 0.0.40
codegen_flags: <defaults>
</compile_context>

<pallas_src>
import functools

import numpy as np
import jax
import jax.numpy as jnp
from jax import lax
from jax.experimental import pallas as pl
from jax.experimental.pallas import tpu as pltpu


# ----------------------------------------------------------------------------
# 2x2 complex gate helpers (traced jnp ops on (W, TM) slabs)
# ----------------------------------------------------------------------------
def _cmul(a, b):
    ar, ai = a
    br, bi = b
    return ar * br - ai * bi, ar * bi + ai * br


def _cadd(a, b):
    return a[0] + b[0], a[1] + b[1]


def _m2mul(A, B):
    a00, a01, a10, a11 = A
    b00, b01, b10, b11 = B
    return (_cadd(_cmul(a00, b00), _cmul(a01, b10)),
            _cadd(_cmul(a00, b01), _cmul(a01, b11)),
            _cadd(_cmul(a10, b00), _cmul(a11, b10)),
            _cadd(_cmul(a10, b01), _cmul(a11, b11)))


def _rx_g(c, s):
    z = jnp.zeros_like(c)
    return ((c, z), (z, -s), (z, -s), (c, z))


def _ry_g(c, s):
    z = jnp.zeros_like(c)
    return ((c, z), (-s, z), (s, z), (c, z))


def _rz_g(c, s):
    z = jnp.zeros_like(c)
    return ((c, -s), (z, z), (z, z), (c, s))


def _dot(a, b):
    return jnp.dot(a, b, preferred_element_type=jnp.float32)


# ----------------------------------------------------------------------------
# kernel: one grid step == one (time-tile i, layer l); h lives in VMEM scratch
# ----------------------------------------------------------------------------
def qinr_kernel(x_ref, wf_ref, bf_ref, wq_ref, bq_ref, gam_ref, bet_ref,
                wc_ref, bc_ref, wproj_ref, bl_ref, mats_ref, permb_ref,
                out_ref, h_ref, *, n_wires, n_blocks):
    W = n_wires
    D = 1 << W
    D2 = 2 * D
    NB = n_blocks

    l = pl.program_id(1)

    # layer 0: fused input-feature Linear (time stays in lanes: h is (F, TM))
    @pl.when(l == 0)
    def _():
        h_ref[...] = _dot(wf_ref[...], x_ref[...]) + bf_ref[...]

    h = h_ref[...]                                        # (F, TM)
    TM = h.shape[-1]

    # ---- classical branch: relu(CLinear(h)) ----
    cbr = jnp.maximum(_dot(wc_ref[0], h) + bc_ref[0], 0.0)

    # ---- quantum preamble: QLinear + BatchNorm1d(time_size) ----
    # per-time-step stats over the F features; per-time affine gamma/beta.
    q = _dot(wq_ref[0], h) + bq_ref[0]                    # (F, TM)
    mu = jnp.mean(q, axis=0, keepdims=True)
    var = jnp.mean((q - mu) * (q - mu), axis=0, keepdims=True)
    qn = (q - mu) * lax.rsqrt(var + 1e-5) * gam_ref[0] + bet_ref[0]
    # TODO(synk): BatchNorm running-stat updates (training side effect) not modeled.

    # ---- fused per-wire encoder gate G = RX(a3) RZ(a2) RY(a1) RX(a0) ----
    # rows are host-permuted gate-major so each gate's W angles are a contiguous
    # sublane group; cos/sin are two full-slab EUP passes.
    c = jnp.cos(0.5 * qn)
    s = jnp.sin(0.5 * qn)
    g0 = _rx_g(c[0 * W:1 * W], s[0 * W:1 * W])
    g1 = _ry_g(c[1 * W:2 * W], s[1 * W:2 * W])
    g2 = _rz_g(c[2 * W:3 * W], s[2 * W:3 * W])
    g3 = _rx_g(c[3 * W:4 * W], s[3 * W:4 * W])
    e00, e01, e10, e11 = _m2mul(g3, _m2mul(g2, _m2mul(g1, g0)))

    # ---- packed-real statevector [sr; si] : (2D, TM); |0..0> per time step ----
    row = lax.broadcasted_iota(jnp.int32, (D2, 1), 0)
    sgn = jnp.where(row < D, -1.0, 1.0).astype(jnp.float32)   # imag-cross-term sign
    S = (lax.broadcasted_iota(jnp.int32, (D2, TM), 0) == 0).astype(jnp.float32)

    def apply_unitary(S, k):
        # constant unitary as ONE real (2D,2D)@(2D,TM) MXU matmul
        return _dot(mats_ref[0, k], S)

    def apply_encoder(S):
        # per-wire 2x2 gate; partner amplitudes via one blockdiag(P,P) matmul,
        # gate coefficients broadcast from (1,TM) sublane rows (lane-dense).
        for w in range(W):
            mask = 1 << (W - 1 - w)
            bit = ((row & (D - 1)) & mask) > 0                # (2D, 1)
            dr = jnp.where(bit, e11[0][w:w + 1], e00[0][w:w + 1])
            di = jnp.where(bit, e11[1][w:w + 1], e00[1][w:w + 1]) * sgn
            fr = jnp.where(bit, e10[0][w:w + 1], e01[0][w:w + 1])
            fi = jnp.where(bit, e10[1][w:w + 1], e01[1][w:w + 1]) * sgn
            P = _dot(permb_ref[w], S)                         # XOR partner (both halves)
            Ssw = jnp.concatenate([S[D:], S[:D]], axis=0)     # swap re/im halves
            Psw = jnp.concatenate([P[D:], P[:D]], axis=0)
            S = dr * S + di * Ssw + fr * P + fi * Psw
        return S

    for k in range(NB):
        S = apply_unitary(S, k)                # cnot . rz2 . ry1 . rz1
        if k != NB - 1:
            S = apply_encoder(S)               # data re-uploading encoder

    def probs(S):
        return S[:D] * S[:D] + S[D:] * S[D:]

    p0 = probs(S)
    S = apply_unitary(S, NB)                   # H on every wire
    p1 = probs(S)
    S = apply_unitary(S, NB + 1)               # then H followed by SX
    p2 = probs(S)
    S = apply_unitary(S, NB + 2)               # rz3_layers[-1]
    p3 = probs(S)

    # ---- fused output projection (PauliZ weights folded on the host) ----
    stacked = jnp.concatenate([p0, p1, p2, p3, cbr], axis=0)  # (4D+F, TM)
    h_new = _dot(wproj_ref[0], stacked) + bl_ref[0]           # (F, TM)

    h_ref[...] = h_new
    out_ref[...] = h_new       # only the last layer's write survives to HBM


# ----------------------------------------------------------------------------
# pallas_call wrapper
# ----------------------------------------------------------------------------
def _round_up(x, m):
    return ((x + m - 1) // m) * m


def qinr_forward(x, params, *, time_tile=256):
    """x: (1, time, in_feats) -> (1, time, 4*n_wires), like the PyTorch module.

    time_tile: lane-dense time tile (multiple of 128).  256 balances vreg
    pressure and gives >=2 parallel tiles on v7x for T >= 512; raise to 512 on
    v6e/v5e to amortize per-grid-step overhead if T is large.
    """
    h = x[0]
    T, in_feats = h.shape
    L = params["n_layers"]
    W = params["n_wires"]
    NB = params["n_blocks"]
    F = 4 * W
    D = 1 << W
    D2 = 2 * D
    NBM = NB + 3

    TM = max(128, (time_tile // 128) * 128)
    T_pad = _round_up(T, TM)
    nt = T_pad // TM

    # time -> lanes: feed x^T (features x time), zero-padded time (padding lanes
    # are fully independent of the real ones and sliced off at the end).
    xt = jnp.zeros((in_feats, T_pad), jnp.float32).at[:, :T].set(h.T)
    gam = jnp.ones((L, 1, T_pad), jnp.float32).at[:, 0, :T].set(params["gamma"])
    bet = jnp.zeros((L, 1, T_pad), jnp.float32).at[:, 0, :T].set(params["beta"])

    kernel = functools.partial(qinr_kernel, n_wires=W, n_blocks=NB)

    def full(shape):
        nd = len(shape)
        return pl.BlockSpec(shape, lambda i, l, nd=nd: (0,) * nd)

    in_specs = [
        pl.BlockSpec((in_feats, TM), lambda i, l: (0, i)),            # x^T tile
        full(params["wf"].shape),                                     # (F, in)
        full(params["bf"].shape),                                     # (F, 1)
        pl.BlockSpec((1, F, F), lambda i, l: (l, 0, 0)),              # QLinear^T
        pl.BlockSpec((1, F, 1), lambda i, l: (l, 0, 0)),              # QLinear bias
        pl.BlockSpec((1, 1, TM), lambda i, l: (l, 0, i)),             # gamma (per-time)
        pl.BlockSpec((1, 1, TM), lambda i, l: (l, 0, i)),             # beta
        pl.BlockSpec((1, F, F), lambda i, l: (l, 0, 0)),              # CLinear^T
        pl.BlockSpec((1, F, 1), lambda i, l: (l, 0, 0)),              # CLinear bias
        pl.BlockSpec((1, F, 4 * D + F), lambda i, l: (l, 0, 0)),      # fused projection
        pl.BlockSpec((1, F, 1), lambda i, l: (l, 0, 0)),              # final bias
        pl.BlockSpec((1, NBM, D2, D2), lambda i, l: (l, 0, 0, 0)),    # packed unitaries
        full(params["permb"].shape),                                  # XOR perms (W,2D,2D)
    ]

    out = pl.pallas_call(
        kernel,
        out_shape=jax.ShapeDtypeStruct((F, T_pad), jnp.float32),
        grid=(nt, L),
        in_specs=in_specs,
        out_specs=pl.BlockSpec((F, TM), lambda i, l: (0, i)),
        scratch_shapes=[pltpu.VMEM((F, TM), jnp.float32)],            # inter-layer h
        compiler_params=pltpu.CompilerParams(
            dimension_semantics=("parallel", "arbitrary")),
    )(xt, params["wf"], params["bf"], params["wq"], params["bq"],
      gam, bet, params["wc"], params["bc"], params["wproj"], params["bl"],
      params["mats"], params["permb"])

    return out[:, :T].T[None, :, :]


# ----------------------------------------------------------------------------
# deterministic parameter construction (host glue, plain numpy/JAX)
# ----------------------------------------------------------------------------
def _kron_all(mats):
    U = np.eye(1, dtype=np.complex128)
    for m in mats:
        U = np.kron(U, m)
    return U


def _rz_m(t):
    return np.array([[np.exp(-0.5j * t), 0.0], [0.0, np.exp(0.5j * t)]],
                    dtype=np.complex128)


def _ry_m(t):
    c, s = np.cos(t / 2.0), np.sin(t / 2.0)
    return np.array([[c, -s], [s, c]], dtype=np.complex128)


_H = np.sqrt(0.5) * np.array([[1, 1], [1, -1]], dtype=np.complex128)
_SX = 0.5 * np.array([[1 + 1j, 1 - 1j], [1 - 1j, 1 + 1j]], dtype=np.complex128)


def _cnot_full(control, target, n_wires):
    D = 1 << n_wires
    M = np.zeros((D, D), dtype=np.complex128)
    cm = 1 << (n_wires - 1 - control)
    tm = 1 << (n_wires - 1 - target)
    for i in range(D):
        j = i ^ tm if (i & cm) else i
        M[j, i] = 1.0
    return M


def _layer1q_full(mat_fn, thetas):
    return _kron_all([mat_fn(float(t)) for t in thetas])


def init_layer_params(key, n_wires, n_blocks):
    W = n_wires
    F = 4 * W
    D = 1 << W
    NB = n_blocks
    ks = jax.random.split(key, 7)

    def lin(kw, kb, fin, fout):
        bound = 1.0 / np.sqrt(fin)
        w = jax.random.uniform(kw, (fin, fout), jnp.float32, -bound, bound)
        b = jax.random.uniform(kb, (1, fout), jnp.float32, -bound, bound)
        return w, b

    wq, bq = lin(ks[0], ks[1], F, F)          # QLinear (stored (in, out))
    wc, bc = lin(ks[2], ks[3], F, F)          # CLinear
    wl, bl = lin(ks[4], ks[5], 2 * F, F)      # final linear

    # regroup QLinear outputs gate-major: new feature (j*W + w) <- old (4*w + j).
    # BatchNorm (per-time stats over features, per-time affine) is invariant.
    perm_cols = np.array([4 * (p % W) + (p // W) for p in range(F)])
    wq_k = jnp.asarray(wq)[:, perm_cols].T    # (F_out, F_in): kernel does Wq @ h
    bq_k = jnp.asarray(bq)[:, perm_cols].T    # (F, 1)

    # circuit rotation parameters, uniform(-pi, pi)
    ang = np.asarray(jax.random.uniform(ks[6], (4, NB, W), jnp.float32,
                                        -np.pi, np.pi))
    rz1, ry1, rz2, rz3 = ang

    # CNOT ring applied wire 0 -> 1, 1 -> 2, ..., (W-1) -> 0 in that order
    cnot_all = np.eye(D, dtype=np.complex128)
    for c in range(W):
        cnot_all = _cnot_full(c, (c + 1) % W, W) @ cnot_all

    Us = []
    for k in range(NB):
        Us.append(cnot_all
                  @ _layer1q_full(_rz_m, rz2[k])
                  @ _layer1q_full(_ry_m, ry1[k])
                  @ _layer1q_full(_rz_m, rz1[k]))
    Us.append(_kron_all([_H] * W))                      # H on every wire
    Us.append(_kron_all([_SX @ _H] * W))                # then H followed by SX
    Us.append(_layer1q_full(_rz_m, rz3[NB - 1]))        # rz3_layers[-1]

    # packed real form so ONE real matmul applies the complex unitary:
    #   [sr'; si'] = [[Ur, -Ui], [Ui, Ur]] @ [sr; si]
    mats = np.stack([np.block([[U.real, -U.imag], [U.imag, U.real]]) for U in Us],
                    axis=0)

    # PauliZ measurement weights folded into the output projection and all five
    # projections concatenated into one K = 4D+F weight:
    #   columns = [prob0 | prob1 | prob2 | prob3 | classical]
    idx = np.arange(D)
    zsT = np.stack([1.0 - 2.0 * ((idx >> (W - 1 - w)) & 1) for w in range(W)],
                   axis=1).astype(np.float64)                           # (D, W)
    wl_np = np.asarray(wl, np.float64)
    blocks = [(zsT @ wl_np[j * W:(j + 1) * W, :]).T for j in range(4)]  # (F, D)
    blocks.append(wl_np[4 * W:, :].T)                                   # (F, F)
    wproj = np.concatenate(blocks, axis=1)                              # (F, 4D+F)

    return dict(wq=wq_k, bq=bq_k,
                wc=jnp.asarray(wc).T, bc=jnp.asarray(bc).T,
                wproj=jnp.asarray(wproj, jnp.float32),
                bl=jnp.asarray(bl).T,
                mats=jnp.asarray(mats, jnp.float32))


def init_qinr_params(key, in_feats, time_size, layers, n_wires, n_blocks):
    W = n_wires
    F = 4 * W
    D = 1 << W
    keys = jax.random.split(key, layers + 2)
    bound = 1.0 / np.sqrt(in_feats)
    wf = jax.random.uniform(keys[0], (in_feats, F), jnp.float32, -bound, bound)
    bf = jax.random.uniform(keys[1], (1, F), jnp.float32, -bound, bound)

    per_layer = [init_layer_params(keys[2 + i], n_wires, n_blocks)
                 for i in range(layers)]
    stacked = {k: jnp.stack([p[k] for p in per_layer], axis=0)
               for k in per_layer[0]}

    # block-diagonal XOR-partner permutations (shared across layers): acting on
    # the packed [sr; si] statevector they fetch each amplitude's wire-w partner.
    permb = np.zeros((W, 2 * D, 2 * D), np.float32)
    for w in range(W):
        mask = 1 << (W - 1 - w)
        for j in range(D):
            permb[w, j, j ^ mask] = 1.0
            permb[w, D + j, D + (j ^ mask)] = 1.0

    gamma = jnp.ones((layers, time_size), jnp.float32)   # BatchNorm1d(time) affine
    beta = jnp.zeros((layers, time_size), jnp.float32)

    return dict(wf=jnp.asarray(wf).T, bf=jnp.asarray(bf).T,
                gamma=gamma, beta=beta, permb=jnp.asarray(permb),
                n_layers=layers, n_wires=n_wires, n_blocks=n_blocks,
                **stacked)


# ----------------------------------------------------------------------------
if __name__ == "__main__":
    in_feats, time_size, n_layers, n_wires, n_blocks = 8, 8, 2, 4, 2
    key = jax.random.PRNGKey(0)
    kp, kx = jax.random.split(key)
    params = init_qinr_params(kp, in_feats, time_size, n_layers, n_wires, n_blocks)
    x = jax.random.normal(kx, (1, time_size, in_feats), jnp.float32)

    y = qinr_forward(x, params)
    y = jax.block_until_ready(y)

    assert y.shape == (1, time_size, n_wires * 4), y.shape
    assert bool(jnp.all(jnp.isfinite(y)))
    print("KERNEL_OK")
</pallas_src>

<mosaic_0001>
module attributes {stable_mosaic.version = 11 : i64} {
  func.func @qinr_kernel(%arg0: i32, %arg1: i32, %arg2: memref<8x256xf32, #tpu.memory_space<vmem>>, %arg3: memref<16x8xf32, #tpu.memory_space<vmem>>, %arg4: memref<16x1xf32, #tpu.memory_space<vmem>>, %arg5: memref<1x16x16xf32, #tpu.memory_space<vmem>>, %arg6: memref<1x16x1xf32, #tpu.memory_space<vmem>>, %arg7: memref<1x1x256xf32, #tpu.memory_space<vmem>>, %arg8: memref<1x1x256xf32, #tpu.memory_space<vmem>>, %arg9: memref<1x16x16xf32, #tpu.memory_space<vmem>>, %arg10: memref<1x16x1xf32, #tpu.memory_space<vmem>>, %arg11: memref<1x16x80xf32, #tpu.memory_space<vmem>>, %arg12: memref<1x16x1xf32, #tpu.memory_space<vmem>>, %arg13: memref<1x5x32x32xf32, #tpu.memory_space<vmem>>, %arg14: memref<4x32x32xf32, #tpu.memory_space<vmem>>, %arg15: memref<16x256xf32, #tpu.memory_space<vmem>>, %arg16: memref<16x256xf32, #tpu.memory_space<vmem>>) attributes {dimension_semantics = [#tpu.dimension_semantics<parallel>, #tpu.dimension_semantics<arbitrary>], iteration_bounds = array<i64: 1, 2>, scalar_prefetch = 0 : i64, scratch_operands = 1 : i64, tpu.core_type = #tpu.core_type<tc>, window_params = [{transform_indices = @transform_0, window_bounds = array<i64: 8, 256>}, {pipeline_mode = #tpu.pipeline_mode<synchronous>, transform_indices = @transform_1, window_bounds = array<i64: 16, 8>}, {pipeline_mode = #tpu.pipeline_mode<synchronous>, transform_indices = @transform_2, window_bounds = array<i64: 16, 1>}, {transform_indices = @transform_3, window_bounds = array<i64: 1, 16, 16>}, {transform_indices = @transform_4, window_bounds = array<i64: 1, 16, 1>}, {transform_indices = @transform_5, window_bounds = array<i64: 1, 1, 256>}, {transform_indices = @transform_6, window_bounds = array<i64: 1, 1, 256>}, {transform_indices = @transform_7, window_bounds = array<i64: 1, 16, 16>}, {transform_indices = @transform_8, window_bounds = array<i64: 1, 16, 1>}, {transform_indices = @transform_9, window_bounds = array<i64: 1, 16, 80>}, {transform_indices = @transform_10, window_bounds = array<i64: 1, 16, 1>}, {transform_indices = @transform_11, window_bounds = array<i64: 1, 5, 32, 32>}, {pipeline_mode = #tpu.pipeline_mode<synchronous>, transform_indices = @transform_12, window_bounds = array<i64: 4, 32, 32>}, {transform_indices = @transform_13, window_bounds = array<i64: 16, 256>}]} {
    %c0_i32 = arith.constant 0 : i32
    %0 = arith.cmpi eq, %arg1, %c0_i32 : i32
    %1 = arith.extui %0 : i1 to i32
    %c0_i32_0 = arith.constant 0 : i32
    %2 = arith.cmpi ne, %1, %c0_i32_0 : i32
    scf.if %2 {
      %c0_97 = arith.constant 0 : index
      %c0_98 = arith.constant 0 : index
      %558 = vector.load %arg3[%c0_97, %c0_98] : memref<16x8xf32, #tpu.memory_space<vmem>>, vector<16x8xf32>
      %c0_99 = arith.constant 0 : index
      %c0_100 = arith.constant 0 : index
      %559 = vector.load %arg2[%c0_99, %c0_100] : memref<8x256xf32, #tpu.memory_space<vmem>>, vector<8x256xf32>
      %cst_101 = arith.constant dense<0.000000e+00> : vector<16x256xf32>
      %560 = tpu.matmul %558, %559, %cst_101 {dimension_numbers = #tpu.dot_dimension_numbers<[1], [0], [0], [1], [0, 0, 1, 1], [], []>} : vector<16x8xf32>, vector<8x256xf32>, vector<16x256xf32> -> vector<16x256xf32>
      %c0_102 = arith.constant 0 : index
      %c0_103 = arith.constant 0 : index
      %561 = vector.load %arg4[%c0_102, %c0_103] : memref<16x1xf32, #tpu.memory_space<vmem>>, vector<16x1xf32>
      %562 = vector.broadcast %561 : vector<16x1xf32> to vector<16x256xf32>
      %563 = arith.addf %560, %562 : vector<16x256xf32>
      %c0_104 = arith.constant 0 : index
      %c0_105 = arith.constant 0 : index
      %564 = vector.load %arg16[%c0_104, %c0_105] : memref<16x256xf32, #tpu.memory_space<vmem>>, vector<16x256xf32>
      tpu.vector_store %arg16[%c0_104, %c0_105], %563 {strides = array<i32>} : memref<16x256xf32, #tpu.memory_space<vmem>>, vector<16x256xf32>,
    } else {
    }
    %c0 = arith.constant 0 : index
    %c0_1 = arith.constant 0 : index
    %3 = vector.load %arg16[%c0, %c0_1] : memref<16x256xf32, #tpu.memory_space<vmem>>, vector<16x256xf32>
    %c0_2 = arith.constant 0 : index
    %c0_3 = arith.constant 0 : index
    %c0_4 = arith.constant 0 : index
    %4 = vector.load %arg9[%c0_2, %c0_3, %c0_4] : memref<1x16x16xf32, #tpu.memory_space<vmem>>, vector<1x16x16xf32>
    %5 = vector.shape_cast %4 : vector<1x16x16xf32> to vector<16x16xf32>
    %cst = arith.constant dense<0.000000e+00> : vector<16x256xf32>
    %6 = tpu.matmul %5, %3, %cst {dimension_numbers = #tpu.dot_dimension_numbers<[1], [0], [0], [1], [0, 0, 1, 1], [], []>} : vector<16x16xf32>, vector<16x256xf32>, vector<16x256xf32> -> vector<16x256xf32>
    %c0_5 = arith.constant 0 : index
    %c0_6 = arith.constant 0 : index
    %c0_7 = arith.constant 0 : index
    %7 = vector.load %arg10[%c0_5, %c0_6, %c0_7] : memref<1x16x1xf32, #tpu.memory_space<vmem>>, vector<1x16x1xf32>
    %8 = vector.shape_cast %7 : vector<1x16x1xf32> to vector<16x1xf32>
    %9 = vector.broadcast %8 : vector<16x1xf32> to vector<16x256xf32>
    %10 = arith.addf %6, %9 : vector<16x256xf32>
    %cst_8 = arith.constant 0.000000e+00 : f32
    %11 = vector.broadcast %cst_8 : f32 to vector<16x256xf32>
    %12 = arith.maximumf %10, %11 : vector<16x256xf32>
    %c0_9 = arith.constant 0 : index
    %c0_10 = arith.constant 0 : index
    %c0_11 = arith.constant 0 : index
    %13 = vector.load %arg5[%c0_9, %c0_10, %c0_11] : memref<1x16x16xf32, #tpu.memory_space<vmem>>, vector<1x16x16xf32>
    %14 = vector.shape_cast %13 : vector<1x16x16xf32> to vector<16x16xf32>
    %cst_12 = arith.constant dense<0.000000e+00> : vector<16x256xf32>
    %15 = tpu.matmul %14, %3, %cst_12 {dimension_numbers = #tpu.dot_dimension_numbers<[1], [0], [0], [1], [0, 0, 1, 1], [], []>} : vector<16x16xf32>, vector<16x256xf32>, vector<16x256xf32> -> vector<16x256xf32>
    %c0_13 = arith.constant 0 : index
    %c0_14 = arith.constant 0 : index
    %c0_15 = arith.constant 0 : index
    %16 = vector.load %arg6[%c0_13, %c0_14, %c0_15] : memref<1x16x1xf32, #tpu.memory_space<vmem>>, vector<1x16x1xf32>
    %17 = vector.shape_cast %16 : vector<1x16x1xf32> to vector<16x1xf32>
    %18 = vector.broadcast %17 : vector<16x1xf32> to vector<16x256xf32>
    %19 = arith.addf %15, %18 : vector<16x256xf32>
    %cst_16 = arith.constant dense<0.000000e+00> : vector<256xf32>
    %20 = vector.multi_reduction <add>, %19, %cst_16 [0] : vector<16x256xf32> to vector<256xf32>
    %21 = vector.shape_cast %20 : vector<256xf32> to vector<1x256xf32>
    %cst_17 = arith.constant 1.600000e+01 : f32
    %22 = vector.broadcast %cst_17 : f32 to vector<1x256xf32>
    %23 = arith.divf %21, %22 : vector<1x256xf32>
    %24 = vector.broadcast %23 : vector<1x256xf32> to vector<16x256xf32>
    %25 = arith.subf %19, %24 : vector<16x256xf32>
    %26 = vector.broadcast %23 : vector<1x256xf32> to vector<16x256xf32>
    %27 = arith.subf %19, %26 : vector<16x256xf32>
    %28 = arith.mulf %25, %27 : vector<16x256xf32>
    %cst_18 = arith.constant dense<0.000000e+00> : vector<256xf32>
    %29 = vector.multi_reduction <add>, %28, %cst_18 [0] : vector<16x256xf32> to vector<256xf32>
    %30 = vector.shape_cast %29 : vector<256xf32> to vector<1x256xf32>
    %cst_19 = arith.constant 1.600000e+01 : f32
    %31 = vector.broadcast %cst_19 : f32 to vector<1x256xf32>
    %32 = arith.divf %30, %31 : vector<1x256xf32>
    %33 = vector.broadcast %23 : vector<1x256xf32> to vector<16x256xf32>
    %34 = arith.subf %19, %33 : vector<16x256xf32>
    %cst_20 = arith.constant 9.99999974E-6 : f32
    %35 = vector.broadcast %cst_20 : f32 to vector<1x256xf32>
    %36 = arith.addf %32, %35 : vector<1x256xf32>
    %37 = math.rsqrt %36 : vector<1x256xf32>
    %38 = vector.broadcast %37 : vector<1x256xf32> to vector<16x256xf32>
    %39 = arith.mulf %34, %38 : vector<16x256xf32>
    %c0_21 = arith.constant 0 : index
    %c0_22 = arith.constant 0 : index
    %c0_23 = arith.constant 0 : index
    %40 = vector.load %arg7[%c0_21, %c0_22, %c0_23] : memref<1x1x256xf32, #tpu.memory_space<vmem>>, vector<1x1x256xf32>
    %41 = vector.shape_cast %40 : vector<1x1x256xf32> to vector<1x256xf32>
    %42 = vector.broadcast %41 : vector<1x256xf32> to vector<16x256xf32>
    %43 = arith.mulf %39, %42 : vector<16x256xf32>
    %c0_24 = arith.constant 0 : index
    %c0_25 = arith.constant 0 : index
    %c0_26 = arith.constant 0 : index
    %44 = vector.load %arg8[%c0_24, %c0_25, %c0_26] : memref<1x1x256xf32, #tpu.memory_space<vmem>>, vector<1x1x256xf32>
    %45 = vector.shape_cast %44 : vector<1x1x256xf32> to vector<1x256xf32>
    %46 = vector.broadcast %45 : vector<1x256xf32> to vector<16x256xf32>
    %47 = arith.addf %43, %46 : vector<16x256xf32>
    %cst_27 = arith.constant 5.000000e-01 : f32
    %48 = vector.broadcast %cst_27 : f32 to vector<16x256xf32>
    %49 = arith.mulf %48, %47 : vector<16x256xf32>
    %50 = math.cos %49 : vector<16x256xf32>
    %cst_28 = arith.constant 5.000000e-01 : f32
    %51 = vector.broadcast %cst_28 : f32 to vector<16x256xf32>
    %52 = arith.mulf %51, %47 : vector<16x256xf32>
    %53 = math.sin %52 : vector<16x256xf32>
    %54 = vector.extract_strided_slice %50 {offsets = [0, 0], sizes = [4, 256], strides = [1, 1]} : vector<16x256xf32> to vector<4x256xf32>
    %55 = vector.extract_strided_slice %53 {offsets = [0, 0], sizes = [4, 256], strides = [1, 1]} : vector<16x256xf32> to vector<4x256xf32>
    %cst_29 = arith.constant 0.000000e+00 : f32
    %56 = vector.broadcast %cst_29 : f32 to vector<4x256xf32>
    %cst_30 = arith.constant 0.000000e+00 : f32
    %57 = vector.broadcast %cst_30 : f32 to vector<4x256xf32>
    %58 = arith.subf %57, %55 : vector<4x256xf32>
    %cst_31 = arith.constant 0.000000e+00 : f32
    %59 = vector.broadcast %cst_31 : f32 to vector<4x256xf32>
    %60 = arith.subf %59, %55 : vector<4x256xf32>
    %61 = vector.extract_strided_slice %50 {offsets = [4, 0], sizes = [4, 256], strides = [1, 1]} : vector<16x256xf32> to vector<4x256xf32>
    %62 = vector.extract_strided_slice %53 {offsets = [4, 0], sizes = [4, 256], strides = [1, 1]} : vector<16x256xf32> to vector<4x256xf32>
    %cst_32 = arith.constant 0.000000e+00 : f32
    %63 = vector.broadcast %cst_32 : f32 to vector<4x256xf32>
    %cst_33 = arith.constant 0.000000e+00 : f32
    %64 = vector.broadcast %cst_33 : f32 to vector<4x256xf32>
    %65 = arith.subf %64, %62 : vector<4x256xf32>
    %66 = vector.extract_strided_slice %50 {offsets = [8, 0], sizes = [4, 256], strides = [1, 1]} : vector<16x256xf32> to vector<4x256xf32>
    %67 = vector.extract_strided_slice %53 {offsets = [8, 0], sizes = [4, 256], strides = [1, 1]} : vector<16x256xf32> to vector<4x256xf32>
    %cst_34 = arith.constant 0.000000e+00 : f32
    %68 = vector.broadcast %cst_34 : f32 to vector<4x256xf32>
    %cst_35 = arith.constant 0.000000e+00 : f32
    %69 = vector.broadcast %cst_35 : f32 to vector<4x256xf32>
    %70 = arith.subf %69, %67 : vector<4x256xf32>
    %71 = vector.extract_strided_slice %50 {offsets = [12, 0], sizes = [4, 256], strides = [1, 1]} : vector<16x256xf32> to vector<4x256xf32>
    %72 = vector.extract_strided_slice %53 {offsets = [12, 0], sizes = [4, 256], strides = [1, 1]} : vector<16x256xf32> to vector<4x256xf32>
    %cst_36 = arith.constant 0.000000e+00 : f32
    %73 = vector.broadcast %cst_36 : f32 to vector<4x256xf32>
    %cst_37 = arith.constant 0.000000e+00 : f32
    %74 = vector.broadcast %cst_37 : f32 to vector<4x256xf32>
    %75 = arith.subf %74, %72 : vector<4x256xf32>
    %cst_38 = arith.constant 0.000000e+00 : f32
    %76 = vector.broadcast %cst_38 : f32 to vector<4x256xf32>
    %77 = arith.subf %76, %72 : vector<4x256xf32>
    %78 = arith.mulf %61, %54 : vector<4x256xf32>
    %79 = arith.mulf %63, %56 : vector<4x256xf32>
    %80 = arith.subf %78, %79 : vector<4x256xf32>
    %81 = arith.mulf %61, %56 : vector<4x256xf32>
    %82 = arith.mulf %63, %54 : vector<4x256xf32>
    %83 = arith.addf %81, %82 : vector<4x256xf32>
    %84 = arith.mulf %65, %56 : vector<4x256xf32>
    %85 = arith.mulf %63, %60 : vector<4x256xf32>
    %86 = arith.subf %84, %85 : vector<4x256xf32>
    %87 = arith.mulf %65, %60 : vector<4x256xf32>
    %88 = arith.mulf %63, %56 : vector<4x256xf32>
    %89 = arith.addf %87, %88 : vector<4x256xf32>
    %90 = arith.addf %80, %86 : vector<4x256xf32>
    %91 = arith.addf %83, %89 : vector<4x256xf32>
    %92 = arith.mulf %61, %56 : vector<4x256xf32>
    %93 = arith.mulf %63, %58 : vector<4x256xf32>
    %94 = arith.subf %92, %93 : vector<4x256xf32>
    %95 = arith.mulf %61, %58 : vector<4x256xf32>
    %96 = arith.mulf %63, %56 : vector<4x256xf32>
    %97 = arith.addf %95, %96 : vector<4x256xf32>
    %98 = arith.mulf %65, %54 : vector<4x256xf32>
    %99 = arith.mulf %63, %56 : vector<4x256xf32>
    %100 = arith.subf %98, %99 : vector<4x256xf32>
    %101 = arith.mulf %65, %56 : vector<4x256xf32>
    %102 = arith.mulf %63, %54 : vector<4x256xf32>
    %103 = arith.addf %101, %102 : vector<4x256xf32>
    %104 = arith.addf %94, %100 : vector<4x256xf32>
    %105 = arith.addf %97, %103 : vector<4x256xf32>
    %106 = arith.mulf %62, %54 : vector<4x256xf32>
    %107 = arith.mulf %63, %56 : vector<4x256xf32>
    %108 = arith.subf %106, %107 : vector<4x256xf32>
    %109 = arith.mulf %62, %56 : vector<4x256xf32>
    %110 = arith.mulf %63, %54 : vector<4x256xf32>
    %111 = arith.addf %109, %110 : vector<4x256xf32>
    %112 = arith.mulf %61, %56 : vector<4x256xf32>
    %113 = arith.mulf %63, %60 : vector<4x256xf32>
    %114 = arith.subf %112, %113 : vector<4x256xf32>
    %115 = arith.mulf %61, %60 : vector<4x256xf32>
    %116 = arith.mulf %63, %56 : vector<4x256xf32>
    %117 = arith.addf %115, %116 : vector<4x256xf32>
    %118 = arith.addf %108, %114 : vector<4x256xf32>
    %119 = arith.addf %111, %117 : vector<4x256xf32>
    %120 = arith.mulf %62, %56 : vector<4x256xf32>
    %121 = arith.mulf %63, %58 : vector<4x256xf32>
    %122 = arith.subf %120, %121 : vector<4x256xf32>
    %123 = arith.mulf %62, %58 : vector<4x256xf32>
    %124 = arith.mulf %63, %56 : vector<4x256xf32>
    %125 = arith.addf %123, %124 : vector<4x256xf32>
    %126 = arith.mulf %61, %54 : vector<4x256xf32>
    %127 = arith.mulf %63, %56 : vector<4x256xf32>
    %128 = arith.subf %126, %127 : vector<4x256xf32>
    %129 = arith.mulf %61, %56 : vector<4x256xf32>
    %130 = arith.mulf %63, %54 : vector<4x256xf32>
    %131 = arith.addf %129, %130 : vector<4x256xf32>
    %132 = arith.addf %122, %128 : vector<4x256xf32>
    %133 = arith.addf %125, %131 : vector<4x256xf32>
    %134 = arith.mulf %66, %90 : vector<4x256xf32>
    %135 = arith.mulf %70, %91 : vector<4x256xf32>
    %136 = arith.subf %134, %135 : vector<4x256xf32>
    %137 = arith.mulf %66, %91 : vector<4x256xf32>
    %138 = arith.mulf %70, %90 : vector<4x256xf32>
    %139 = arith.addf %137, %138 : vector<4x256xf32>
    %140 = arith.mulf %68, %118 : vector<4x256xf32>
    %141 = arith.mulf %68, %119 : vector<4x256xf32>
    %142 = arith.subf %140, %141 : vector<4x256xf32>
    %143 = arith.mulf %68, %119 : vector<4x256xf32>
    %144 = arith.mulf %68, %118 : vector<4x256xf32>
    %145 = arith.addf %143, %144 : vector<4x256xf32>
    %146 = arith.addf %136, %142 : vector<4x256xf32>
    %147 = arith.addf %139, %145 : vector<4x256xf32>
    %148 = arith.mulf %66, %104 : vector<4x256xf32>
    %149 = arith.mulf %70, %105 : vector<4x256xf32>
    %150 = arith.subf %148, %149 : vector<4x256xf32>
    %151 = arith.mulf %66, %105 : vector<4x256xf32>
    %152 = arith.mulf %70, %104 : vector<4x256xf32>
    %153 = arith.addf %151, %152 : vector<4x256xf32>
    %154 = arith.mulf %68, %132 : vector<4x256xf32>
    %155 = arith.mulf %68, %133 : vector<4x256xf32>
    %156 = arith.subf %154, %155 : vector<4x256xf32>
    %157 = arith.mulf %68, %133 : vector<4x256xf32>
    %158 = arith.mulf %68, %132 : vector<4x256xf32>
    %159 = arith.addf %157, %158 : vector<4x256xf32>
    %160 = arith.addf %150, %156 : vector<4x256xf32>
    %161 = arith.addf %153, %159 : vector<4x256xf32>
    %162 = arith.mulf %68, %90 : vector<4x256xf32>
    %163 = arith.mulf %68, %91 : vector<4x256xf32>
    %164 = arith.subf %162, %163 : vector<4x256xf32>
    %165 = arith.mulf %68, %91 : vector<4x256xf32>
    %166 = arith.mulf %68, %90 : vector<4x256xf32>
    %167 = arith.addf %165, %166 : vector<4x256xf32>
    %168 = arith.mulf %66, %118 : vector<4x256xf32>
    %169 = arith.mulf %67, %119 : vector<4x256xf32>
    %170 = arith.subf %168, %169 : vector<4x256xf32>
    %171 = arith.mulf %66, %119 : vector<4x256xf32>
    %172 = arith.mulf %67, %118 : vector<4x256xf32>
    %173 = arith.addf %171, %172 : vector<4x256xf32>
    %174 = arith.addf %164, %170 : vector<4x256xf32>
    %175 = arith.addf %167, %173 : vector<4x256xf32>
    %176 = arith.mulf %68, %104 : vector<4x256xf32>
    %177 = arith.mulf %68, %105 : vector<4x256xf32>
    %178 = arith.subf %176, %177 : vector<4x256xf32>
    %179 = arith.mulf %68, %105 : vector<4x256xf32>
    %180 = arith.mulf %68, %104 : vector<4x256xf32>
    %181 = arith.addf %179, %180 : vector<4x256xf32>
    %182 = arith.mulf %66, %132 : vector<4x256xf32>
    %183 = arith.mulf %67, %133 : vector<4x256xf32>
    %184 = arith.subf %182, %183 : vector<4x256xf32>
    %185 = arith.mulf %66, %133 : vector<4x256xf32>
    %186 = arith.mulf %67, %132 : vector<4x256xf32>
    %187 = arith.addf %185, %186 : vector<4x256xf32>
    %188 = arith.addf %178, %184 : vector<4x256xf32>
    %189 = arith.addf %181, %187 : vector<4x256xf32>
    %190 = arith.mulf %71, %146 : vector<4x256xf32>
    %191 = arith.mulf %73, %147 : vector<4x256xf32>
    %192 = arith.subf %190, %191 : vector<4x256xf32>
    %193 = arith.mulf %71, %147 : vector<4x256xf32>
    %194 = arith.mulf %73, %146 : vector<4x256xf32>
    %195 = arith.addf %193, %194 : vector<4x256xf32>
    %196 = arith.mulf %73, %174 : vector<4x256xf32>
    %197 = arith.mulf %75, %175 : vector<4x256xf32>
    %198 = arith.subf %196, %197 : vector<4x256xf32>
    %199 = arith.mulf %73, %175 : vector<4x256xf32>
    %200 = arith.mulf %75, %174 : vector<4x256xf32>
    %201 = arith.addf %199, %200 : vector<4x256xf32>
    %202 = arith.addf %192, %198 : vector<4x256xf32>
    %203 = arith.addf %195, %201 : vector<4x256xf32>
    %204 = arith.mulf %71, %160 : vector<4x256xf32>
    %205 = arith.mulf %73, %161 : vector<4x256xf32>
    %206 = arith.subf %204, %205 : vector<4x256xf32>
    %207 = arith.mulf %71, %161 : vector<4x256xf32>
    %208 = arith.mulf %73, %160 : vector<4x256xf32>
    %209 = arith.addf %207, %208 : vector<4x256xf32>
    %210 = arith.mulf %73, %188 : vector<4x256xf32>
    %211 = arith.mulf %75, %189 : vector<4x256xf32>
    %212 = arith.subf %210, %211 : vector<4x256xf32>
    %213 = arith.mulf %73, %189 : vector<4x256xf32>
    %214 = arith.mulf %75, %188 : vector<4x256xf32>
    %215 = arith.addf %213, %214 : vector<4x256xf32>
    %216 = arith.addf %206, %212 : vector<4x256xf32>
    %217 = arith.addf %209, %215 : vector<4x256xf32>
    %218 = arith.mulf %73, %146 : vector<4x256xf32>
    %219 = arith.mulf %77, %147 : vector<4x256xf32>
    %220 = arith.subf %218, %219 : vector<4x256xf32>
    %221 = arith.mulf %73, %147 : vector<4x256xf32>
    %222 = arith.mulf %77, %146 : vector<4x256xf32>
    %223 = arith.addf %221, %222 : vector<4x256xf32>
    %224 = arith.mulf %71, %174 : vector<4x256xf32>
    %225 = arith.mulf %73, %175 : vector<4x256xf32>
    %226 = arith.subf %224, %225 : vector<4x256xf32>
    %227 = arith.mulf %71, %175 : vector<4x256xf32>
    %228 = arith.mulf %73, %174 : vector<4x256xf32>
    %229 = arith.addf %227, %228 : vector<4x256xf32>
    %230 = arith.addf %220, %226 : vector<4x256xf32>
    %231 = arith.addf %223, %229 : vector<4x256xf32>
    %232 = arith.mulf %73, %160 : vector<4x256xf32>
    %233 = arith.mulf %77, %161 : vector<4x256xf32>
    %234 = arith.subf %232, %233 : vector<4x256xf32>
    %235 = arith.mulf %73, %161 : vector<4x256xf32>
    %236 = arith.mulf %77, %160 : vector<4x256xf32>
    %237 = arith.addf %235, %236 : vector<4x256xf32>
    %238 = arith.mulf %71, %188 : vector<4x256xf32>
    %239 = arith.mulf %73, %189 : vector<4x256xf32>
    %240 = arith.subf %238, %239 : vector<4x256xf32>
    %241 = arith.mulf %71, %189 : vector<4x256xf32>
    %242 = arith.mulf %73, %188 : vector<4x256xf32>
    %243 = arith.addf %241, %242 : vector<4x256xf32>
    %244 = arith.addf %234, %240 : vector<4x256xf32>
    %245 = arith.addf %237, %243 : vector<4x256xf32>
    %246 = tpu.iota {dimensions = array<i32: 0>} : vector<32x1xi32>
    %c16_i32 = arith.constant 16 : i32
    %247 = vector.broadcast %c16_i32 : i32 to vector<32x1xi32>
    %248 = arith.cmpi slt, %246, %247 : vector<32x1xi32>
    %cst_39 = arith.constant -1.000000e+00 : f32
    %cst_40 = arith.constant 1.000000e+00 : f32
    %249 = vector.broadcast %cst_39 : f32 to vector<32x1xf32>
    %250 = vector.broadcast %cst_40 : f32 to vector<32x1xf32>
    %251 = arith.select %248, %249, %250 : vector<32x1xi1>, vector<32x1xf32>
    %252 = tpu.iota {dimensions = array<i32: 0>} : vector<32x256xi32>
    %c0_i32_41 = arith.constant 0 : i32
    %253 = vector.broadcast %c0_i32_41 : i32 to vector<32x256xi32>
    %254 = arith.cmpi eq, %252, %253 : vector<32x256xi32>
    %255 = arith.extui %254 : vector<32x256xi1> to vector<32x256xi32>
    %256 = arith.sitofp %255 : vector<32x256xi32> to vector<32x256xf32>
    %c0_42 = arith.constant 0 : index
    %c0_43 = arith.constant 0 : index
    %c0_44 = arith.constant 0 : index
    %c0_45 = arith.constant 0 : index
    %257 = vector.load %arg13[%c0_42, %c0_43, %c0_44, %c0_45] : memref<1x5x32x32xf32, #tpu.memory_space<vmem>>, vector<1x1x32x32xf32>
    %258 = vector.shape_cast %257 : vector<1x1x32x32xf32> to vector<32x32xf32>
    %cst_46 = arith.constant dense<0.000000e+00> : vector<32x256xf32>
    %259 = tpu.matmul %258, %256, %cst_46 {dimension_numbers = #tpu.dot_dimension_numbers<[1], [0], [0], [1], [0, 0, 1, 1], [], []>} : vector<32x32xf32>, vector<32x256xf32>, vector<32x256xf32> -> vector<32x256xf32>
    %c15_i32 = arith.constant 15 : i32
    %260 = vector.broadcast %c15_i32 : i32 to vector<32x1xi32>
    %261 = arith.andi %246, %260 : vector<32x1xi32>
    %c8_i32 = arith.constant 8 : i32
    %262 = vector.broadcast %c8_i32 : i32 to vector<32x1xi32>
    %263 = arith.andi %261, %262 : vector<32x1xi32>
    %c0_i32_47 = arith.constant 0 : i32
    %264 = vector.broadcast %c0_i32_47 : i32 to vector<32x1xi32>
    %265 = arith.cmpi sgt, %263, %264 : vector<32x1xi32>
    %266 = vector.extract_strided_slice %244 {offsets = [0, 0], sizes = [1, 256], strides = [1, 1]} : vector<4x256xf32> to vector<1x256xf32>
    %267 = vector.extract_strided_slice %202 {offsets = [0, 0], sizes = [1, 256], strides = [1, 1]} : vector<4x256xf32> to vector<1x256xf32>
    %268 = vector.shape_cast %265 : vector<32x1xi1> to vector<32x1xi1>
    %269 = vector.broadcast %268 : vector<32x1xi1> to vector<32x256xi1>
    %270 = vector.shape_cast %266 : vector<1x256xf32> to vector<1x256xf32>
    %271 = vector.broadcast %270 : vector<1x256xf32> to vector<32x256xf32>
    %272 = vector.shape_cast %267 : vector<1x256xf32> to vector<1x256xf32>
    %273 = vector.broadcast %272 : vector<1x256xf32> to vector<32x256xf32>
    %274 = arith.select %269, %271, %273 : vector<32x256xi1>, vector<32x256xf32>
    %275 = vector.extract_strided_slice %245 {offsets = [0, 0], sizes = [1, 256], strides = [1, 1]} : vector<4x256xf32> to vector<1x256xf32>
    %276 = vector.extract_strided_slice %203 {offsets = [0, 0], sizes = [1, 256], strides = [1, 1]} : vector<4x256xf32> to vector<1x256xf32>
    %277 = vector.shape_cast %265 : vector<32x1xi1> to vector<32x1xi1>
    %278 = vector.broadcast %277 : vector<32x1xi1> to vector<32x256xi1>
    %279 = vector.shape_cast %275 : vector<1x256xf32> to vector<1x256xf32>
    %280 = vector.broadcast %279 : vector<1x256xf32> to vector<32x256xf32>
    %281 = vector.shape_cast %276 : vector<1x256xf32> to vector<1x256xf32>
    %282 = vector.broadcast %281 : vector<1x256xf32> to vector<32x256xf32>
    %283 = arith.select %278, %280, %282 : vector<32x256xi1>, vector<32x256xf32>
    %284 = vector.broadcast %251 : vector<32x1xf32> to vector<32x256xf32>
    %285 = arith.mulf %283, %284 : vector<32x256xf32>
    %286 = vector.extract_strided_slice %230 {offsets = [0, 0], sizes = [1, 256], strides = [1, 1]} : vector<4x256xf32> to vector<1x256xf32>
    %287 = vector.extract_strided_slice %216 {offsets = [0, 0], sizes = [1, 256], strides = [1, 1]} : vector<4x256xf32> to vector<1x256xf32>
    %288 = vector.shape_cast %265 : vector<32x1xi1> to vector<32x1xi1>
    %289 = vector.broadcast %288 : vector<32x1xi1> to vector<32x256xi1>
    %290 = vector.shape_cast %286 : vector<1x256xf32> to vector<1x256xf32>
    %291 = vector.broadcast %290 : vector<1x256xf32> to vector<32x256xf32>
    %292 = vector.shape_cast %287 : vector<1x256xf32> to vector<1x256xf32>
    %293 = vector.broadcast %292 : vector<1x256xf32> to vector<32x256xf32>
    %294 = arith.select %289, %291, %293 : vector<32x256xi1>, vector<32x256xf32>
    %295 = vector.extract_strided_slice %231 {offsets = [0, 0], sizes = [1, 256], strides = [1, 1]} : vector<4x256xf32> to vector<1x256xf32>
    %296 = vector.extract_strided_slice %217 {offsets = [0, 0], sizes = [1, 256], strides = [1, 1]} : vector<4x256xf32> to vector<1x256xf32>
    %297 = vector.shape_cast %265 : vector<32x1xi1> to vector<32x1xi1>
    %298 = vector.broadcast %297 : vector<32x1xi1> to vector<32x256xi1>
    %299 = vector.shape_cast %295 : vector<1x256xf32> to vector<1x256xf32>
    %300 = vector.broadcast %299 : vector<1x256xf32> to vector<32x256xf32>
    %301 = vector.shape_cast %296 : vector<1x256xf32> to vector<1x256xf32>
    %302 = vector.broadcast %301 : vector<1x256xf32> to vector<32x256xf32>
    %303 = arith.select %298, %300, %302 : vector<32x256xi1>, vector<32x256xf32>
    %304 = vector.broadcast %251 : vector<32x1xf32> to vector<32x256xf32>
    %305 = arith.mulf %303, %304 : vector<32x256xf32>
    %c0_48 = arith.constant 0 : index
    %c0_49 = arith.constant 0 : index
    %c0_50 = arith.constant 0 : index
    %306 = vector.load %arg14[%c0_48, %c0_49, %c0_50] : memref<4x32x32xf32, #tpu.memory_space<vmem>>, vector<1x32x32xf32>
    %307 = vector.shape_cast %306 : vector<1x32x32xf32> to vector<32x32xf32>
    %cst_51 = arith.constant dense<0.000000e+00> : vector<32x256xf32>
    %308 = tpu.matmul %307, %259, %cst_51 {dimension_numbers = #tpu.dot_dimension_numbers<[1], [0], [0], [1], [0, 0, 1, 1], [], []>} : vector<32x32xf32>, vector<32x256xf32>, vector<32x256xf32> -> vector<32x256xf32>
    %309 = vector.extract_strided_slice %259 {offsets = [16, 0], sizes = [16, 256], strides = [1, 1]} : vector<32x256xf32> to vector<16x256xf32>
    %310 = vector.extract_strided_slice %259 {offsets = [0, 0], sizes = [16, 256], strides = [1, 1]} : vector<32x256xf32> to vector<16x256xf32>
    %311 = tpu.concatenate %309, %310 in 0 : vector<16x256xf32>, vector<16x256xf32> -> vector<32x256xf32>
    %312 = vector.extract_strided_slice %308 {offsets = [16, 0], sizes = [16, 256], strides = [1, 1]} : vector<32x256xf32> to vector<16x256xf32>
    %313 = vector.extract_strided_slice %308 {offsets = [0, 0], sizes = [16, 256], strides = [1, 1]} : vector<32x256xf32> to vector<16x256xf32>
    %314 = tpu.concatenate %312, %313 in 0 : vector<16x256xf32>, vector<16x256xf32> -> vector<32x256xf32>
    %315 = arith.mulf %274, %259 : vector<32x256xf32>
    %316 = arith.mulf %285, %311 : vector<32x256xf32>
    %317 = arith.addf %315, %316 : vector<32x256xf32>
    %318 = arith.mulf %294, %308 : vector<32x256xf32>
    %319 = arith.addf %317, %318 : vector<32x256xf32>
    %320 = arith.mulf %305, %314 : vector<32x256xf32>
    %321 = arith.addf %319, %320 : vector<32x256xf32>
    %c15_i32_52 = arith.constant 15 : i32
    %322 = vector.broadcast %c15_i32_52 : i32 to vector<32x1xi32>
    %323 = arith.andi %246, %322 : vector<32x1xi32>
    %c4_i32 = arith.constant 4 : i32
    %324 = vector.broadcast %c4_i32 : i32 to vector<32x1xi32>
    %325 = arith.andi %323, %324 : vector<32x1xi32>
    %c0_i32_53 = arith.constant 0 : i32
    %326 = vector.broadcast %c0_i32_53 : i32 to vector<32x1xi32>
    %327 = arith.cmpi sgt, %325, %326 : vector<32x1xi32>
    %328 = vector.extract_strided_slice %244 {offsets = [1, 0], sizes = [1, 256], strides = [1, 1]} : vector<4x256xf32> to vector<1x256xf32>
    %329 = vector.extract_strided_slice %202 {offsets = [1, 0], sizes = [1, 256], strides = [1, 1]} : vector<4x256xf32> to vector<1x256xf32>
    %330 = vector.shape_cast %327 : vector<32x1xi1> to vector<32x1xi1>
    %331 = vector.broadcast %330 : vector<32x1xi1> to vector<32x256xi1>
    %332 = vector.shape_cast %328 : vector<1x256xf32> to vector<1x256xf32>
    %333 = vector.broadcast %332 : vector<1x256xf32> to vector<32x256xf32>
    %334 = vector.shape_cast %329 : vector<1x256xf32> to vector<1x256xf32>
    %335 = vector.broadcast %334 : vector<1x256xf32> to vector<32x256xf32>
    %336 = arith.select %331, %333, %335 : vector<32x256xi1>, vector<32x256xf32>
    %337 = vector.extract_strided_slice %245 {offsets = [1, 0], sizes = [1, 256], strides = [1, 1]} : vector<4x256xf32> to vector<1x256xf32>
    %338 = vector.extract_strided_slice %203 {offsets = [1, 0], sizes = [1, 256], strides = [1, 1]} : vector<4x256xf32> to vector<1x256xf32>
    %339 = vector.shape_cast %327 : vector<32x1xi1> to vector<32x1xi1>
    %340 = vector.broadcast %339 : vector<32x1xi1> to vector<32x256xi1>
    %341 = vector.shape_cast %337 : vector<1x256xf32> to vector<1x256xf32>
    %342 = vector.broadcast %341 : vector<1x256xf32> to vector<32x256xf32>
    %343 = vector.shape_cast %338 : vector<1x256xf32> to vector<1x256xf32>
    %344 = vector.broadcast %343 : vector<1x256xf32> to vector<32x256xf32>
    %345 = arith.select %340, %342, %344 : vector<32x256xi1>, vector<32x256xf32>
    %346 = vector.broadcast %251 : vector<32x1xf32> to vector<32x256xf32>
    %347 = arith.mulf %345, %346 : vector<32x256xf32>
    %348 = vector.extract_strided_slice %230 {offsets = [1, 0], sizes = [1, 256], strides = [1, 1]} : vector<4x256xf32> to vector<1x256xf32>
    %349 = vector.extract_strided_slice %216 {offsets = [1, 0], sizes = [1, 256], strides = [1, 1]} : vector<4x256xf32> to vector<1x256xf32>
    %350 = vector.shape_cast %327 : vector<32x1xi1> to vector<32x1xi1>
    %351 = vector.broadcast %350 : vector<32x1xi1> to vector<32x256xi1>
    %352 = vector.shape_cast %348 : vector<1x256xf32> to vector<1x256xf32>
    %353 = vector.broadcast %352 : vector<1x256xf32> to vector<32x256xf32>
    %354 = vector.shape_cast %349 : vector<1x256xf32> to vector<1x256xf32>
    %355 = vector.broadcast %354 : vector<1x256xf32> to vector<32x256xf32>
    %356 = arith.select %351, %353, %355 : vector<32x256xi1>, vector<32x256xf32>
    %357 = vector.extract_strided_slice %231 {offsets = [1, 0], sizes = [1, 256], strides = [1, 1]} : vector<4x256xf32> to vector<1x256xf32>
    %358 = vector.extract_strided_slice %217 {offsets = [1, 0], sizes = [1, 256], strides = [1, 1]} : vector<4x256xf32> to vector<1x256xf32>
    %359 = vector.shape_cast %327 : vector<32x1xi1> to vector<32x1xi1>
    %360 = vector.broadcast %359 : vector<32x1xi1> to vector<32x256xi1>
    %361 = vector.shape_cast %357 : vector<1x256xf32> to vector<1x256xf32>
    %362 = vector.broadcast %361 : vector<1x256xf32> to vector<32x256xf32>
    %363 = vector.shape_cast %358 : vector<1x256xf32> to vector<1x256xf32>
    %364 = vector.broadcast %363 : vector<1x256xf32> to vector<32x256xf32>
    %365 = arith.select %360, %362, %364 : vector<32x256xi1>, vector<32x256xf32>
    %366 = vector.broadcast %251 : vector<32x1xf32> to vector<32x256xf32>
    %367 = arith.mulf %365, %366 : vector<32x256xf32>
    %c1 = arith.constant 1 : index
    %c0_54 = arith.constant 0 : index
    %c0_55 = arith.constant 0 : index
    %368 = vector.load %arg14[%c1, %c0_54, %c0_55] : memref<4x32x32xf32, #tpu.memory_space<vmem>>, vector<1x32x32xf32>
    %369 = vector.shape_cast %368 : vector<1x32x32xf32> to vector<32x32xf32>
    %cst_56 = arith.constant dense<0.000000e+00> : vector<32x256xf32>
    %370 = tpu.matmul %369, %321, %cst_56 {dimension_numbers = #tpu.dot_dimension_numbers<[1], [0], [0], [1], [0, 0, 1, 1], [], []>} : vector<32x32xf32>, vector<32x256xf32>, vector<32x256xf32> -> vector<32x256xf32>
    %371 = vector.extract_strided_slice %321 {offsets = [16, 0], sizes = [16, 256], strides = [1, 1]} : vector<32x256xf32> to vector<16x256xf32>
    %372 = vector.extract_strided_slice %321 {offsets = [0, 0], sizes = [16, 256], strides = [1, 1]} : vector<32x256xf32> to vector<16x256xf32>
    %373 = tpu.concatenate %371, %372 in 0 : vector<16x256xf32>, vector<16x256xf32> -> vector<32x256xf32>
    %374 = vector.extract_strided_slice %370 {offsets = [16, 0], sizes = [16, 256], strides = [1, 1]} : vector<32x256xf32> to vector<16x256xf32>
    %375 = vector.extract_strided_slice %370 {offsets = [0, 0], sizes = [16, 256], strides = [1, 1]} : vector<32x256xf32> to vector<16x256xf32>
    %376 = tpu.concatenate %374, %375 in 0 : vector<16x256xf32>, vector<16x256xf32> -> vector<32x256xf32>
    %377 = arith.mulf %336, %321 : vector<32x256xf32>
    %378 = arith.mulf %347, %373 : vector<32x256xf32>
    %379 = arith.addf %377, %378 : vector<32x256xf32>
    %380 = arith.mulf %356, %370 : vector<32x256xf32>
    %381 = arith.addf %379, %380 : vector<32x256xf32>
    %382 = arith.mulf %367, %376 : vector<32x256xf32>
    %383 = arith.addf %381, %382 : vector<32x256xf32>
    %c15_i32_57 = arith.constant 15 : i32
    %384 = vector.broadcast %c15_i32_57 : i32 to vector<32x1xi32>
    %385 = arith.andi %246, %384 : vector<32x1xi32>
    %c2_i32 = arith.constant 2 : i32
    %386 = vector.broadcast %c2_i32 : i32 to vector<32x1xi32>
    %387 = arith.andi %385, %386 : vector<32x1xi32>
    %c0_i32_58 = arith.constant 0 : i32
    %388 = vector.broadcast %c0_i32_58 : i32 to vector<32x1xi32>
    %389 = arith.cmpi sgt, %387, %388 : vector<32x1xi32>
    %390 = vector.extract_strided_slice %244 {offsets = [2, 0], sizes = [1, 256], strides = [1, 1]} : vector<4x256xf32> to vector<1x256xf32>
    %391 = vector.extract_strided_slice %202 {offsets = [2, 0], sizes = [1, 256], strides = [1, 1]} : vector<4x256xf32> to vector<1x256xf32>
    %392 = vector.shape_cast %389 : vector<32x1xi1> to vector<32x1xi1>
    %393 = vector.broadcast %392 : vector<32x1xi1> to vector<32x256xi1>
    %394 = vector.shape_cast %390 : vector<1x256xf32> to vector<1x256xf32>
    %395 = vector.broadcast %394 : vector<1x256xf32> to vector<32x256xf32>
    %396 = vector.shape_cast %391 : vector<1x256xf32> to vector<1x256xf32>
    %397 = vector.broadcast %396 : vector<1x256xf32> to vector<32x256xf32>
    %398 = arith.select %393, %395, %397 : vector<32x256xi1>, vector<32x256xf32>
    %399 = vector.extract_strided_slice %245 {offsets = [2, 0], sizes = [1, 256], strides = [1, 1]} : vector<4x256xf32> to vector<1x256xf32>
    %400 = vector.extract_strided_slice %203 {offsets = [2, 0], sizes = [1, 256], strides = [1, 1]} : vector<4x256xf32> to vector<1x256xf32>
    %401 = vector.shape_cast %389 : vector<32x1xi1> to vector<32x1xi1>
    %402 = vector.broadcast %401 : vector<32x1xi1> to vector<32x256xi1>
    %403 = vector.shape_cast %399 : vector<1x256xf32> to vector<1x256xf32>
    %404 = vector.broadcast %403 : vector<1x256xf32> to vector<32x256xf32>
    %405 = vector.shape_cast %400 : vector<1x256xf32> to vector<1x256xf32>
    %406 = vector.broadcast %405 : vector<1x256xf32> to vector<32x256xf32>
    %407 = arith.select %402, %404, %406 : vector<32x256xi1>, vector<32x256xf32>
    %408 = vector.broadcast %251 : vector<32x1xf32> to vector<32x256xf32>
    %409 = arith.mulf %407, %408 : vector<32x256xf32>
    %410 = vector.extract_strided_slice %230 {offsets = [2, 0], sizes = [1, 256], strides = [1, 1]} : vector<4x256xf32> to vector<1x256xf32>
    %411 = vector.extract_strided_slice %216 {offsets = [2, 0], sizes = [1, 256], strides = [1, 1]} : vector<4x256xf32> to vector<1x256xf32>
    %412 = vector.shape_cast %389 : vector<32x1xi1> to vector<32x1xi1>
    %413 = vector.broadcast %412 : vector<32x1xi1> to vector<32x256xi1>
    %414 = vector.shape_cast %410 : vector<1x256xf32> to vector<1x256xf32>
    %415 = vector.broadcast %414 : vector<1x256xf32> to vector<32x256xf32>
    %416 = vector.shape_cast %411 : vector<1x256xf32> to vector<1x256xf32>
    %417 = vector.broadcast %416 : vector<1x256xf32> to vector<32x256xf32>
    %418 = arith.select %413, %415, %417 : vector<32x256xi1>, vector<32x256xf32>
    %419 = vector.extract_strided_slice %231 {offsets = [2, 0], sizes = [1, 256], strides = [1, 1]} : vector<4x256xf32> to vector<1x256xf32>
    %420 = vector.extract_strided_slice %217 {offsets = [2, 0], sizes = [1, 256], strides = [1, 1]} : vector<4x256xf32> to vector<1x256xf32>
    %421 = vector.shape_cast %389 : vector<32x1xi1> to vector<32x1xi1>
    %422 = vector.broadcast %421 : vector<32x1xi1> to vector<32x256xi1>
    %423 = vector.shape_cast %419 : vector<1x256xf32> to vector<1x256xf32>
    %424 = vector.broadcast %423 : vector<1x256xf32> to vector<32x256xf32>
    %425 = vector.shape_cast %420 : vector<1x256xf32> to vector<1x256xf32>
    %426 = vector.broadcast %425 : vector<1x256xf32> to vector<32x256xf32>
    %427 = arith.select %422, %424, %426 : vector<32x256xi1>, vector<32x256xf32>
    %428 = vector.broadcast %251 : vector<32x1xf32> to vector<32x256xf32>
    %429 = arith.mulf %427, %428 : vector<32x256xf32>
    %c2 = arith.constant 2 : index
    %c0_59 = arith.constant 0 : index
    %c0_60 = arith.constant 0 : index
    %430 = vector.load %arg14[%c2, %c0_59, %c0_60] : memref<4x32x32xf32, #tpu.memory_space<vmem>>, vector<1x32x32xf32>
    %431 = vector.shape_cast %430 : vector<1x32x32xf32> to vector<32x32xf32>
    %cst_61 = arith.constant dense<0.000000e+00> : vector<32x256xf32>
    %432 = tpu.matmul %431, %383, %cst_61 {dimension_numbers = #tpu.dot_dimension_numbers<[1], [0], [0], [1], [0, 0, 1, 1], [], []>} : vector<32x32xf32>, vector<32x256xf32>, vector<32x256xf32> -> vector<32x256xf32>
    %433 = vector.extract_strided_slice %383 {offsets = [16, 0], sizes = [16, 256], strides = [1, 1]} : vector<32x256xf32> to vector<16x256xf32>
    %434 = vector.extract_strided_slice %383 {offsets = [0, 0], sizes = [16, 256], strides = [1, 1]} : vector<32x256xf32> to vector<16x256xf32>
    %435 = tpu.concatenate %433, %434 in 0 : vector<16x256xf32>, vector<16x256xf32> -> vector<32x256xf32>
    %436 = vector.extract_strided_slice %432 {offsets = [16, 0], sizes = [16, 256], strides = [1, 1]} : vector<32x256xf32> to vector<16x256xf32>
    %437 = vector.extract_strided_slice %432 {offsets = [0, 0], sizes = [16, 256], strides = [1, 1]} : vector<32x256xf32> to vector<16x256xf32>
    %438 = tpu.concatenate %436, %437 in 0 : vector<16x256xf32>, vector<16x256xf32> -> vector<32x256xf32>
    %439 = arith.mulf %398, %383 : vector<32x256xf32>
    %440 = arith.mulf %409, %435 : vector<32x256xf32>
    %441 = arith.addf %439, %440 : vector<32x256xf32>
    %442 = arith.mulf %418, %432 : vector<32x256xf32>
    %443 = arith.addf %441, %442 : vector<32x256xf32>
    %444 = arith.mulf %429, %438 : vector<32x256xf32>
    %445 = arith.addf %443, %444 : vector<32x256xf32>
    %c15_i32_62 = arith.constant 15 : i32
    %446 = vector.broadcast %c15_i32_62 : i32 to vector<32x1xi32>
    %447 = arith.andi %246, %446 : vector<32x1xi32>
    %c1_i32 = arith.constant 1 : i32
    %448 = vector.broadcast %c1_i32 : i32 to vector<32x1xi32>
    %449 = arith.andi %447, %448 : vector<32x1xi32>
    %c0_i32_63 = arith.constant 0 : i32
    %450 = vector.broadcast %c0_i32_63 : i32 to vector<32x1xi32>
    %451 = arith.cmpi sgt, %449, %450 : vector<32x1xi32>
    %452 = vector.extract_strided_slice %244 {offsets = [3, 0], sizes = [1, 256], strides = [1, 1]} : vector<4x256xf32> to vector<1x256xf32>
    %453 = vector.extract_strided_slice %202 {offsets = [3, 0], sizes = [1, 256], strides = [1, 1]} : vector<4x256xf32> to vector<1x256xf32>
    %454 = vector.shape_cast %451 : vector<32x1xi1> to vector<32x1xi1>
    %455 = vector.broadcast %454 : vector<32x1xi1> to vector<32x256xi1>
    %456 = vector.shape_cast %452 : vector<1x256xf32> to vector<1x256xf32>
    %457 = vector.broadcast %456 : vector<1x256xf32> to vector<32x256xf32>
    %458 = vector.shape_cast %453 : vector<1x256xf32> to vector<1x256xf32>
    %459 = vector.broadcast %458 : vector<1x256xf32> to vector<32x256xf32>
    %460 = arith.select %455, %457, %459 : vector<32x256xi1>, vector<32x256xf32>
    %461 = vector.extract_strided_slice %245 {offsets = [3, 0], sizes = [1, 256], strides = [1, 1]} : vector<4x256xf32> to vector<1x256xf32>
    %462 = vector.extract_strided_slice %203 {offsets = [3, 0], sizes = [1, 256], strides = [1, 1]} : vector<4x256xf32> to vector<1x256xf32>
    %463 = vector.shape_cast %451 : vector<32x1xi1> to vector<32x1xi1>
    %464 = vector.broadcast %463 : vector<32x1xi1> to vector<32x256xi1>
    %465 = vector.shape_cast %461 : vector<1x256xf32> to vector<1x256xf32>
    %466 = vector.broadcast %465 : vector<1x256xf32> to vector<32x256xf32>
    %467 = vector.shape_cast %462 : vector<1x256xf32> to vector<1x256xf32>
    %468 = vector.broadcast %467 : vector<1x256xf32> to vector<32x256xf32>
    %469 = arith.select %464, %466, %468 : vector<32x256xi1>, vector<32x256xf32>
    %470 = vector.broadcast %251 : vector<32x1xf32> to vector<32x256xf32>
    %471 = arith.mulf %469, %470 : vector<32x256xf32>
    %472 = vector.extract_strided_slice %230 {offsets = [3, 0], sizes = [1, 256], strides = [1, 1]} : vector<4x256xf32> to vector<1x256xf32>
    %473 = vector.extract_strided_slice %216 {offsets = [3, 0], sizes = [1, 256], strides = [1, 1]} : vector<4x256xf32> to vector<1x256xf32>
    %474 = vector.shape_cast %451 : vector<32x1xi1> to vector<32x1xi1>
    %475 = vector.broadcast %474 : vector<32x1xi1> to vector<32x256xi1>
    %476 = vector.shape_cast %472 : vector<1x256xf32> to vector<1x256xf32>
    %477 = vector.broadcast %476 : vector<1x256xf32> to vector<32x256xf32>
    %478 = vector.shape_cast %473 : vector<1x256xf32> to vector<1x256xf32>
    %479 = vector.broadcast %478 : vector<1x256xf32> to vector<32x256xf32>
    %480 = arith.select %475, %477, %479 : vector<32x256xi1>, vector<32x256xf32>
    %481 = vector.extract_strided_slice %231 {offsets = [3, 0], sizes = [1, 256], strides = [1, 1]} : vector<4x256xf32> to vector<1x256xf32>
    %482 = vector.extract_strided_slice %217 {offsets = [3, 0], sizes = [1, 256], strides = [1, 1]} : vector<4x256xf32> to vector<1x256xf32>
    %483 = vector.shape_cast %451 : vector<32x1xi1> to vector<32x1xi1>
    %484 = vector.broadcast %483 : vector<32x1xi1> to vector<32x256xi1>
    %485 = vector.shape_cast %481 : vector<1x256xf32> to vector<1x256xf32>
    %486 = vector.broadcast %485 : vector<1x256xf32> to vector<32x256xf32>
    %487 = vector.shape_cast %482 : vector<1x256xf32> to vector<1x256xf32>
    %488 = vector.broadcast %487 : vector<1x256xf32> to vector<32x256xf32>
    %489 = arith.select %484, %486, %488 : vector<32x256xi1>, vector<32x256xf32>
    %490 = vector.broadcast %251 : vector<32x1xf32> to vector<32x256xf32>
    %491 = arith.mulf %489, %490 : vector<32x256xf32>
    %c3 = arith.constant 3 : index
    %c0_64 = arith.constant 0 : index
    %c0_65 = arith.constant 0 : index
    %492 = vector.load %arg14[%c3, %c0_64, %c0_65] : memref<4x32x32xf32, #tpu.memory_space<vmem>>, vector<1x32x32xf32>
    %493 = vector.shape_cast %492 : vector<1x32x32xf32> to vector<32x32xf32>
    %cst_66 = arith.constant dense<0.000000e+00> : vector<32x256xf32>
    %494 = tpu.matmul %493, %445, %cst_66 {dimension_numbers = #tpu.dot_dimension_numbers<[1], [0], [0], [1], [0, 0, 1, 1], [], []>} : vector<32x32xf32>, vector<32x256xf32>, vector<32x256xf32> -> vector<32x256xf32>
    %495 = vector.extract_strided_slice %445 {offsets = [16, 0], sizes = [16, 256], strides = [1, 1]} : vector<32x256xf32> to vector<16x256xf32>
    %496 = vector.extract_strided_slice %445 {offsets = [0, 0], sizes = [16, 256], strides = [1, 1]} : vector<32x256xf32> to vector<16x256xf32>
    %497 = tpu.concatenate %495, %496 in 0 : vector<16x256xf32>, vector<16x256xf32> -> vector<32x256xf32>
    %498 = vector.extract_strided_slice %494 {offsets = [16, 0], sizes = [16, 256], strides = [1, 1]} : vector<32x256xf32> to vector<16x256xf32>
    %499 = vector.extract_strided_slice %494 {offsets = [0, 0], sizes = [16, 256], strides = [1, 1]} : vector<32x256xf32> to vector<16x256xf32>
    %500 = tpu.concatenate %498, %499 in 0 : vector<16x256xf32>, vector<16x256xf32> -> vector<32x256xf32>
    %501 = arith.mulf %460, %445 : vector<32x256xf32>
    %502 = arith.mulf %471, %497 : vector<32x256xf32>
    %503 = arith.addf %501, %502 : vector<32x256xf32>
    %504 = arith.mulf %480, %494 : vector<32x256xf32>
    %505 = arith.addf %503, %504 : vector<32x256xf32>
    %506 = arith.mulf %491, %500 : vector<32x256xf32>
    %507 = arith.addf %505, %506 : vector<32x256xf32>
    %c0_67 = arith.constant 0 : index
    %c1_68 = arith.constant 1 : index
    %c0_69 = arith.constant 0 : index
    %c0_70 = arith.constant 0 : index
    %508 = vector.load %arg13[%c0_67, %c1_68, %c0_69, %c0_70] : memref<1x5x32x32xf32, #tpu.memory_space<vmem>>, vector<1x1x32x32xf32>
    %509 = vector.shape_cast %508 : vector<1x1x32x32xf32> to vector<32x32xf32>
    %cst_71 = arith.constant dense<0.000000e+00> : vector<32x256xf32>
    %510 = tpu.matmul %509, %507, %cst_71 {dimension_numbers = #tpu.dot_dimension_numbers<[1], [0], [0], [1], [0, 0, 1, 1], [], []>} : vector<32x32xf32>, vector<32x256xf32>, vector<32x256xf32> -> vector<32x256xf32>
    %511 = vector.extract_strided_slice %510 {offsets = [0, 0], sizes = [16, 256], strides = [1, 1]} : vector<32x256xf32> to vector<16x256xf32>
    %512 = vector.extract_strided_slice %510 {offsets = [0, 0], sizes = [16, 256], strides = [1, 1]} : vector<32x256xf32> to vector<16x256xf32>
    %513 = arith.mulf %511, %512 : vector<16x256xf32>
    %514 = vector.extract_strided_slice %510 {offsets = [16, 0], sizes = [16, 256], strides = [1, 1]} : vector<32x256xf32> to vector<16x256xf32>
    %515 = vector.extract_strided_slice %510 {offsets = [16, 0], sizes = [16, 256], strides = [1, 1]} : vector<32x256xf32> to vector<16x256xf32>
    %516 = arith.mulf %514, %515 : vector<16x256xf32>
    %517 = arith.addf %513, %516 : vector<16x256xf32>
    %c0_72 = arith.constant 0 : index
    %c2_73 = arith.constant 2 : index
    %c0_74 = arith.constant 0 : index
    %c0_75 = arith.constant 0 : index
    %518 = vector.load %arg13[%c0_72, %c2_73, %c0_74, %c0_75] : memref<1x5x32x32xf32, #tpu.memory_space<vmem>>, vector<1x1x32x32xf32>
    %519 = vector.shape_cast %518 : vector<1x1x32x32xf32> to vector<32x32xf32>
    %cst_76 = arith.constant dense<0.000000e+00> : vector<32x256xf32>
    %520 = tpu.matmul %519, %510, %cst_76 {dimension_numbers = #tpu.dot_dimension_numbers<[1], [0], [0], [1], [0, 0, 1, 1], [], []>} : vector<32x32xf32>, vector<32x256xf32>, vector<32x256xf32> -> vector<32x256xf32>
    %521 = vector.extract_strided_slice %520 {offsets = [0, 0], sizes = [16, 256], strides = [1, 1]} : vector<32x256xf32> to vector<16x256xf32>
    %522 = vector.extract_strided_slice %520 {offsets = [0, 0], sizes = [16, 256], strides = [1, 1]} : vector<32x256xf32> to vector<16x256xf32>
    %523 = arith.mulf %521, %522 : vector<16x256xf32>
    %524 = vector.extract_strided_slice %520 {offsets = [16, 0], sizes = [16, 256], strides = [1, 1]} : vector<32x256xf32> to vector<16x256xf32>
    %525 = vector.extract_strided_slice %520 {offsets = [16, 0], sizes = [16, 256], strides = [1, 1]} : vector<32x256xf32> to vector<16x256xf32>
    %526 = arith.mulf %524, %525 : vector<16x256xf32>
    %527 = arith.addf %523, %526 : vector<16x256xf32>
    %c0_77 = arith.constant 0 : index
    %c3_78 = arith.constant 3 : index
    %c0_79 = arith.constant 0 : index
    %c0_80 = arith.constant 0 : index
    %528 = vector.load %arg13[%c0_77, %c3_78, %c0_79, %c0_80] : memref<1x5x32x32xf32, #tpu.memory_space<vmem>>, vector<1x1x32x32xf32>
    %529 = vector.shape_cast %528 : vector<1x1x32x32xf32> to vector<32x32xf32>
    %cst_81 = arith.constant dense<0.000000e+00> : vector<32x256xf32>
    %530 = tpu.matmul %529, %520, %cst_81 {dimension_numbers = #tpu.dot_dimension_numbers<[1], [0], [0], [1], [0, 0, 1, 1], [], []>} : vector<32x32xf32>, vector<32x256xf32>, vector<32x256xf32> -> vector<32x256xf32>
    %531 = vector.extract_strided_slice %530 {offsets = [0, 0], sizes = [16, 256], strides = [1, 1]} : vector<32x256xf32> to vector<16x256xf32>
    %532 = vector.extract_strided_slice %530 {offsets = [0, 0], sizes = [16, 256], strides = [1, 1]} : vector<32x256xf32> to vector<16x256xf32>
    %533 = arith.mulf %531, %532 : vector<16x256xf32>
    %534 = vector.extract_strided_slice %530 {offsets = [16, 0], sizes = [16, 256], strides = [1, 1]} : vector<32x256xf32> to vector<16x256xf32>
    %535 = vector.extract_strided_slice %530 {offsets = [16, 0], sizes = [16, 256], strides = [1, 1]} : vector<32x256xf32> to vector<16x256xf32>
    %536 = arith.mulf %534, %535 : vector<16x256xf32>
    %537 = arith.addf %533, %536 : vector<16x256xf32>
    %c0_82 = arith.constant 0 : index
    %c4 = arith.constant 4 : index
    %c0_83 = arith.constant 0 : index
    %c0_84 = arith.constant 0 : index
    %538 = vector.load %arg13[%c0_82, %c4, %c0_83, %c0_84] : memref<1x5x32x32xf32, #tpu.memory_space<vmem>>, vector<1x1x32x32xf32>
    %539 = vector.shape_cast %538 : vector<1x1x32x32xf32> to vector<32x32xf32>
    %cst_85 = arith.constant dense<0.000000e+00> : vector<32x256xf32>
    %540 = tpu.matmul %539, %530, %cst_85 {dimension_numbers = #tpu.dot_dimension_numbers<[1], [0], [0], [1], [0, 0, 1, 1], [], []>} : vector<32x32xf32>, vector<32x256xf32>, vector<32x256xf32> -> vector<32x256xf32>
    %541 = vector.extract_strided_slice %540 {offsets = [0, 0], sizes = [16, 256], strides = [1, 1]} : vector<32x256xf32> to vector<16x256xf32>
    %542 = vector.extract_strided_slice %540 {offsets = [0, 0], sizes = [16, 256], strides = [1, 1]} : vector<32x256xf32> to vector<16x256xf32>
    %543 = arith.mulf %541, %542 : vector<16x256xf32>
    %544 = vector.extract_strided_slice %540 {offsets = [16, 0], sizes = [16, 256], strides = [1, 1]} : vector<32x256xf32> to vector<16x256xf32>
    %545 = vector.extract_strided_slice %540 {offsets = [16, 0], sizes = [16, 256], strides = [1, 1]} : vector<32x256xf32> to vector<16x256xf32>
    %546 = arith.mulf %544, %545 : vector<16x256xf32>
    %547 = arith.addf %543, %546 : vector<16x256xf32>
    %548 = tpu.concatenate %517, %527, %537, %547, %12 in 0 : vector<16x256xf32>, vector<16x256xf32>, vector<16x256xf32>, vector<16x256xf32>, vector<16x256xf32> -> vector<80x256xf32>
    %c0_86 = arith.constant 0 : index
    %c0_87 = arith.constant 0 : index
    %c0_88 = arith.constant 0 : index
    %549 = vector.load %arg11[%c0_86, %c0_87, %c0_88] : memref<1x16x80xf32, #tpu.memory_space<vmem>>, vector<1x16x80xf32>
    %550 = vector.shape_cast %549 : vector<1x16x80xf32> to vector<16x80xf32>
    %cst_89 = arith.constant dense<0.000000e+00> : vector<16x256xf32>
    %551 = tpu.matmul %550, %548, %cst_89 {dimension_numbers = #tpu.dot_dimension_numbers<[1], [0], [0], [1], [0, 0, 1, 1], [], []>} : vector<16x80xf32>, vector<80x256xf32>, vector<16x256xf32> -> vector<16x256xf32>
    %c0_90 = arith.constant 0 : index
    %c0_91 = arith.constant 0 : index
    %c0_92 = arith.constant 0 : index
    %552 = vector.load %arg12[%c0_90, %c0_91, %c0_92] : memref<1x16x1xf32, #tpu.memory_space<vmem>>, vector<1x16x1xf32>
    %553 = vector.shape_cast %552 : vector<1x16x1xf32> to vector<16x1xf32>
    %554 = vector.broadcast %553 : vector<16x1xf32> to vector<16x256xf32>
    %555 = arith.addf %551, %554 : vector<16x256xf32>
    %c0_93 = arith.constant 0 : index
    %c0_94 = arith.constant 0 : index
    %556 = vector.load %arg16[%c0_93, %c0_94] : memref<16x256xf32, #tpu.memory_space<vmem>>, vector<16x256xf32>
    tpu.vector_store %arg16[%c0_93, %c0_94], %555 {strides = array<i32>} : memref<16x256xf32, #tpu.memory_space<vmem>>, vector<16x256xf32>,
    %c0_95 = arith.constant 0 : index
    %c0_96 = arith.constant 0 : index
    %557 = vector.load %arg15[%c0_95, %c0_96] : memref<16x256xf32, #tpu.memory_space<vmem>>, vector<16x256xf32>
    tpu.vector_store %arg15[%c0_95, %c0_96], %555 {strides = array<i32>} : memref<16x256xf32, #tpu.memory_space<vmem>>, vector<16x256xf32>,
    return
  }
  func.func @transform_0(%arg0: i32, %arg1: i32) -> (i32, i32) {
    %c0_i32 = arith.constant 0 : i32
    %c0_i32_0 = arith.constant 0 : i32
    return %c0_i32, %arg0 : i32, i32
  }
  func.func @transform_1(%arg0: i32, %arg1: i32) -> (i32, i32) {
    %c0_i32 = arith.constant 0 : i32
    %c0_i32_0 = arith.constant 0 : i32
    %c0_i32_1 = arith.constant 0 : i32
    return %c0_i32, %c0_i32_0 : i32, i32
  }
  func.func @transform_2(%arg0: i32, %arg1: i32) -> (i32, i32) {
    %c0_i32 = arith.constant 0 : i32
    %c0_i32_0 = arith.constant 0 : i32
    %c0_i32_1 = arith.constant 0 : i32
    return %c0_i32, %c0_i32_0 : i32, i32
  }
  func.func @transform_3(%arg0: i32, %arg1: i32) -> (i32, i32, i32) {
    %c0_i32 = arith.constant 0 : i32
    %c0_i32_0 = arith.constant 0 : i32
    %c0_i32_1 = arith.constant 0 : i32
    return %arg1, %c0_i32, %c0_i32_0 : i32, i32, i32
  }
  func.func @transform_4(%arg0: i32, %arg1: i32) -> (i32, i32, i32) {
    %c0_i32 = arith.constant 0 : i32
    %c0_i32_0 = arith.constant 0 : i32
    %c0_i32_1 = arith.constant 0 : i32
    return %arg1, %c0_i32, %c0_i32_0 : i32, i32, i32
  }
  func.func @transform_5(%arg0: i32, %arg1: i32) -> (i32, i32, i32) {
    %c0_i32 = arith.constant 0 : i32
    %c0_i32_0 = arith.constant 0 : i32
    return %arg1, %c0_i32, %arg0 : i32, i32, i32
  }
  func.func @transform_6(%arg0: i32, %arg1: i32) -> (i32, i32, i32) {
    %c0_i32 = arith.constant 0 : i32
    %c0_i32_0 = arith.constant 0 : i32
    return %arg1, %c0_i32, %arg0 : i32, i32, i32
  }
  func.func @transform_7(%arg0: i32, %arg1: i32) -> (i32, i32, i32) {
    %c0_i32 = arith.constant 0 : i32
    %c0_i32_0 = arith.constant 0 : i32
    %c0_i32_1 = arith.constant 0 : i32
    return %arg1, %c0_i32, %c0_i32_0 : i32, i32, i32
  }
  func.func @transform_8(%arg0: i32, %arg1: i32) -> (i32, i32, i32) {
    %c0_i32 = arith.constant 0 : i32
    %c0_i32_0 = arith.constant 0 : i32
    %c0_i32_1 = arith.constant 0 : i32
    return %arg1, %c0_i32, %c0_i32_0 : i32, i32, i32
  }
  func.func @transform_9(%arg0: i32, %arg1: i32) -> (i32, i32, i32) {
    %c0_i32 = arith.constant 0 : i32
    %c0_i32_0 = arith.constant 0 : i32
    %c0_i32_1 = arith.constant 0 : i32
    return %arg1, %c0_i32, %c0_i32_0 : i32, i32, i32
  }
  func.func @transform_10(%arg0: i32, %arg1: i32) -> (i32, i32, i32) {
    %c0_i32 = arith.constant 0 : i32
    %c0_i32_0 = arith.constant 0 : i32
    %c0_i32_1 = arith.constant 0 : i32
    return %arg1, %c0_i32, %c0_i32_0 : i32, i32, i32
  }
  func.func @transform_11(%arg0: i32, %arg1: i32) -> (i32, i32, i32, i32) {
    %c0_i32 = arith.constant 0 : i32
    %c0_i32_0 = arith.constant 0 : i32
    %c0_i32_1 = arith.constant 0 : i32
    %c0_i32_2 = arith.constant 0 : i32
    return %arg1, %c0_i32, %c0_i32_0, %c0_i32_1 : i32, i32, i32, i32
  }
  func.func @transform_12(%arg0: i32, %arg1: i32) -> (i32, i32, i32) {
    %c0_i32 = arith.constant 0 : i32
    %c0_i32_0 = arith.constant 0 : i32
    %c0_i32_1 = arith.constant 0 : i32
    %c0_i32_2 = arith.constant 0 : i32
    return %c0_i32, %c0_i32_0, %c0_i32_1 : i32, i32, i32
  }
  func.func @transform_13(%arg0: i32, %arg1: i32) -> (i32, i32) {
    %c0_i32 = arith.constant 0 : i32
    %c0_i32_0 = arith.constant 0 : i32
    return %c0_i32, %arg0 : i32, i32
  }
}

</mosaic_0001>

<bundles_post_ra>
// kernel: tpu_custom_call.1
= control target key start
LH: loop header
LB: loop body
LE: loop exit
PB: predicated region body
PF: predicated region fallthrough
CT: control target
= control target key end

     0   :  { %s7420_s0 = inlined_call_operand.vmem [shape: f32[8,256], index: 0, kind: input, shape index: {}]   ;;  %s7421_s1 = inlined_call_operand.vmem [shape: f32[16,8], index: 1, kind: input, shape index: {}]   ;;  %s7422_s2 = inlined_call_operand.vmem [shape: f32[16,1], index: 2, kind: input, shape index: {}]   ;;  %s7423_s3 = inlined_call_operand.vmem [shape: f32[2,16,16], index: 3, kind: input, shape index: {}]   ;;  %s7424_s4 = inlined_call_operand.vmem [shape: f32[2,16,1], index: 4, kind: input, shape index: {}]   ;;  %s7425_s5 = inlined_call_operand.vmem [shape: f32[2,1,256], index: 5, kind: input, shape index: {}]   ;;  %s7426_s6 = inlined_call_operand.vmem [shape: f32[2,1,256], index: 6, kind: input, shape index: {}]   ;;  %s7427_s7 = inlined_call_operand.hbm [shape: f32[2,16,16], index: 7, kind: input, shape index: {}]   ;;  %s7428_s8 = inlined_call_operand.vmem [shape: f32[2,16,1], index: 8, kind: input, shape index: {}]   ;;  %s7429_s9 = inlined_call_operand.hbm [shape: f32[2,16,80], index: 9, kind: input, shape index: {}]   ;;  %s7430_s10 = inlined_call_operand.vmem [shape: f32[2,16,1], index: 10, kind: input, shape index: {}]   ;;  %s7431_s11 = inlined_call_operand.hbm [shape: f32[2,5,32,32], index: 11, kind: input, shape index: {}]   ;;  %s7432_s12 = inlined_call_operand.vmem [shape: f32[4,32,32], index: 12, kind: input, shape index: {}]   ;;  %s7433_s13 = inlined_call_operand.hbm [shape: f32[16,256], index: 13, kind: output, shape index: {}]  }
   0x1   :  { %7517 = sst [smem:[#allocation41_spill]] %s7421_s1 }
   0x2   :  { %7518 = sst [smem:[#allocation42_spill]] %s7422_s2 }
   0x3   :  { %7519 = sst [smem:[#allocation43_spill]] %s7423_s3 }
   0x4   :  { %7520 = sst [smem:[#allocation44_spill]] %s7427_s7 }
   0x5   :  { %7521 = sst [smem:[#allocation45_spill]] %s7429_s9 }
   0x6   :  { %7522 = sst [smem:[#allocation46_spill]] %s7432_s12 }
   0x7   :  { %7523 = sst [smem:[#allocation47_spill]] %s7433_s13 }
   0x8   :  { %18 = vsyncpa [#allocation4], 0 }
   0x9   :  { %20 = vsyncpa [#allocation4 + $0x1], 0 }
   0xa   :  { %21 = vsyncpa [#allocation7], 0 }
   0xb   :  { %23 = vsyncpa [#allocation7 + $0x1], 0 }
   0xc   :  { %24 = vsyncpa [#allocation5], 0  ;;  %s5109_s25 = smov 0   ;;  %s5111_s26 = smov 0  }
   0xd   :  { %s5113_s27 = smov 0   ;;  %s5115_s28 = smov 0  }
   0xe   :  { %s5117_s29 = smov 0   ;;  %s5119_s30 = smov 0  }
   0xf LB: > { %7524 = sst [smem:[#allocation13_spill]] %s5006_s27  ;;  %s5138_s14 = sadd.s32 4294967295, %s5018_s30   ;;  %s5018_s30 = sphi %s5119_s30, %s30_s30   ;;  %s5014_s29 = sphi %s5117_s29, %s7713_s29   ;;  %s5010_s28 = sphi %s5115_s28, %s7712_s28   ;;  %s5006_s27 = sphi %s5113_s27, %s7708_s27   ;;  %s5002_s26 = sphi %s5111_s26, %s7711_s26   ;;  %s4998_s25 = sphi %s5109_s25, %s7710_s25  }
  0x10   : > { %7525 = sst [smem:[#allocation14_spill]] %s5018_s30  ;;  %s39_s15 = sadd.s32 1, %s5014_s29 }
  0x11   : > { %p40_p0 = scmp.ge.s32.totalorder %s39_s15, 2  ;;  %s225_s16 = sadd.s32 1, %s5006_s27 }
  0x12   : > { %p232_p1 = scmp.ne.s32.totalorder %s5006_s27, %s5002_s26  ;;  %p233_p2 = scmp.eq.s32.totalorder %s5018_s30, 0 }
  0x13   : > { %s7715_s15 = smov (%p40_p0, %s39_s15), 0  ;;  %p238_p4 = scmp.ne.s32.totalorder %s5002_s26, %s4998_s25 }
  0x14   : > { %7526 = sst [smem:[#allocation15_spill]] %s7715_s15  ;;  %p234_p3 = por %p233_p2, %p232_p1 }
  0x15   : > { %s222_s17 = ssub.s32 %s5014_s29, %s7715_s15  ;;  %p239_p5 = scmp.eq.s32.totalorder %s5138_s14, 0 }
  0x16   : > { %p223_p6 = scmp.eq.s32.totalorder %s222_s17, 0  ;;  %p4754_p8 = scmp.lt.s32.totalorder %s5018_s30, 2 }
  0x17   : > { %p5151_p7 = por %p239_p5, %p238_p4  ;;  %s5160_s20 = sand.u32 1, %s5006_s27  }
  0x18   : > { %s5157_s19 = scalar_select %p223_p6, %s5006_s27, %s225_s16  }
  0x19   : > { %s7527_s18 = scalar_select %p5151_p7, 1, 0 }
  0x1a   : > { %7528 = sst [smem:[#allocation16_spill]] %s5157_s19  ;;  %s7439_s21 = sshll.u32 %s5014_s29, 8 }
  0x1b   : > { %s7438_s22 = sshll.u32 %s5160_s20, 4  ;;  %p5164_p9 = pnand %p4754_p8, %p234_p3 }
  0x1c   : > { %s500_s24 = sand.u32 1, %s5018_s30   ;;  %s7530_s9 = sld [smem:[#allocation45_spill]] }
  0x1d   : > { %s504_s16 = scalar_lea.vmem [#allocation6], %s7438_s22  ;;  %s5181_s27 = scalar_lea.sflag [#allocation7], %s500_s24 }
  0x1e   : > { %s511_s19 = sshll.u32 %s504_s16, 4  ;;  %p5187_p12 = pneg %p5164_p9  ;;  %s5178_s19 = int_to_ptr.vmem [resolvable:$true] %s511_s19 }
  0x22   : > { %s5174_s15 = scalar_lea.hbm %s7530_s9, %s7439_s21  ;;  %s4849_s16 = scalar_lea.hbm %s7530_s9, 512 }
  0x23   : > { %s4844_s13 = scalar_lea.hbm %s5174_s15, 256  ;;  %p4850_p1 = scmp.lt.u32.totalorder %s5174_s15, %s7530_s9 }
  0x24   : > { %p4845_p11 = scmp.ne.s32.totalorder %s5174_s15, %s4844_s13  ;;  %p4851_p2 = scmp.lt.u32.totalorder %s4849_s16, %s4844_s13 }
  0x25   : > { %p4853_p4 = scmp.lt.u32.totalorder %s4844_s13, %s5174_s15 }
  0x26   : > { %p4847_p13 = pnand %p5187_p12, %p4845_p11  ;;  %p4852_p3 = por %p4851_p2, %p4850_p1 }
  0x28   : > { %p4848_p0 = pneg %p4847_p13  ;;  %p4854_p5 = por %p4853_p4, %p4852_p3 }
  0x2a   : > { %p4855_p6 = pnand %p4854_p5, %p4848_p0 }
  0x2c   : > { %4858 = shalt.err (!%p4855_p6)
}
  0x2d   : > { %s4859_s24 = scalar_lea.vmem %s5178_s19, 256  ;;  %s5020_s25 = smov [#allocation6]  }
  0x2e   : > { %p4860_p8 = scmp.ne.s32.totalorder %s5178_s19, %s4859_s24  ;;  %s4864_s17 = sshll.u32 %s5020_s25, 4  ;;  %s4865_s17 = int_to_ptr.vmem [resolvable:$false] %s4864_s17 }
  0x2f   : > { %s4866_s21 = scalar_lea.vmem %s4865_s17, 512  ;;  %p4867_p10 = scmp.lt.s32.totalorder %s5178_s19, %s4865_s17 }
  0x30   : > { %p4862_p11 = pnand %p4860_p8, %p5187_p12  ;;  %p4868_p7 = scmp.lt.s32.totalorder %s4866_s21, %s4859_s24 }
  0x32   : > { %p4863_p13 = pneg %p4862_p11  ;;  %p4869_p1 = por %p4868_p7, %p4867_p10 }
  0x34   : > { %p4870_p2 = pnand %p4869_p1, %p4863_p13 }
  0x36   : > { %4873 = shalt.err (!%p4870_p2)
}
  0x37   : > { %s7443_s13 = smov 128   ;;  %s7445_s22 = smov 8  }
  0x38   : > { %4750 = dma.hbm_to_vmem [thread:$0]  (!%p5164_p9), %s5174_s15, 256, %s5178_s19, %s5181_s27, %s7443_s13, %s7443_s13, %s7445_s22  }
  0x39   : > { %p548_p7 = scmp.lt.s32.totalorder %s5018_s30, 3  ;;  %p7532_p10 = scmp.ge.s32.totalorder %s5018_s30, 1 }
  0x3a   : > { %s7534_s24 = sshll.u32 %s5014_s29, 8  ;;  %s7535_s7 = sld [smem:[#allocation44_spill]] }
  0x3b   : > { %p5217_p0 = pnand %p7532_p10, %p548_p7  ;;  %s7536_s9 = sshll.u32 %s5160_s20, 4 }
  0x3c   : > { %s475_s2 = scalar_lea.vmem [#allocation3], %s7536_s9  ;;  %s4715_s15 = smul.u32 160, %s5160_s20 }
  0x3d   : > { %s7533_s16 = scalar_select %p5217_p0, 1, 0 }
  0x3e   : > { %s482_s1 = sshll.u32 %s475_s2, 4  ;;  %s472_s19 = scalar_lea.sflag [#allocation4], %s5160_s20  ;;  %s5230_s1 = int_to_ptr.vmem [resolvable:$true] %s482_s1 }
  0x40   : > { %s5226_s21 = scalar_lea.hbm %s7535_s7, %s7534_s24  ;;  %s4879_s24 = scalar_lea.hbm %s7535_s7, 512 }
  0x41   : > { %s4874_s13 = scalar_lea.hbm %s5226_s21, 256  ;;  %p4880_p6 = scmp.lt.u32.totalorder %s5226_s21, %s7535_s7 }
  0x42   : > { %p4875_p3 = scmp.ne.s32.totalorder %s5226_s21, %s4874_s13  ;;  %p4881_p8 = scmp.lt.u32.totalorder %s4879_s24, %s4874_s13 }
  0x43   : > { %p4883_p13 = scmp.lt.u32.totalorder %s4874_s13, %s5226_s21 }
  0x44   : > { %p4877_p4 = pnand %p4875_p3, %p5187_p12  ;;  %p4882_p11 = por %p4881_p8, %p4880_p6 }
  0x46   : > { %p4878_p5 = pneg %p4877_p4  ;;  %p4884_p1 = por %p4883_p13, %p4882_p11 }
  0x48   : > { %p4885_p2 = pnand %p4884_p1, %p4878_p5 }
  0x4a   : > { %4888 = shalt.err (!%p4885_p2)
}
  0x4b   : > { %s4889_s2 = scalar_lea.vmem %s5230_s1, 256  ;;  %s5023_s9 = smov [#allocation3]  }
  0x4c   : > { %p4890_p7 = scmp.ne.s32.totalorder %s5230_s1, %s4889_s2  ;;  %s4894_s22 = sshll.u32 %s5023_s9, 4  ;;  %s4895_s22 = int_to_ptr.vmem [resolvable:$false] %s4894_s22 }
  0x4d   : > { %s4896_s30 = scalar_lea.vmem %s4895_s22, 512  ;;  %p4897_p4 = scmp.lt.s32.totalorder %s5230_s1, %s4895_s22 }
  0x4e   : > { %p4892_p10 = pnand %p4890_p7, %p5187_p12  ;;  %p4898_p0 = scmp.lt.s32.totalorder %s4896_s30, %s4889_s2 }
  0x50   : > { %p4893_p3 = pneg %p4892_p10  ;;  %p4899_p6 = por %p4898_p0, %p4897_p4 }
  0x52   : > { %p4900_p8 = pnand %p4899_p6, %p4893_p3 }
  0x54   : > { %4903 = shalt.err (!%p4900_p8)
}
  0x55   : > { %s7537_s13 = smov 8   ;;  %s7538_s25 = smov 128  }
  0x56   : > { %4747 = dma.hbm_to_vmem [thread:$0]  (!%p5164_p9), %s5226_s21, 256, %s5230_s1, %s472_s19, %s7538_s25, %s7538_s25, %s7537_s13  }
  0x57   : > { %s4716_s24 = smul.u32 2560, %s5014_s29  ;;  %s533_s17 = scalar_lea.vmem [#allocation8], %s4715_s15 }
  0x58   : > { %s540_s2 = sshll.u32 %s533_s17, 4  ;;  %s4909_s21 = scalar_lea.hbm %s7431_s11, 5120  ;;  %s5268_s2 = int_to_ptr.vmem [resolvable:$true] %s540_s2 }
  0x59   : > { %s5266_s30 = scalar_lea.hbm %s7431_s11, %s4716_s24 }
  0x5a   : > { %s4904_s7 = scalar_lea.hbm %s5266_s30, 2560  ;;  %p4910_p13 = scmp.lt.u32.totalorder %s5266_s30, %s7431_s11 }
  0x5b   : > { %p4905_p0 = scmp.ne.s32.totalorder %s5266_s30, %s4904_s7  ;;  %p4911_p1 = scmp.lt.u32.totalorder %s4909_s21, %s4904_s7 }
  0x5c   : > { %p4913_p7 = scmp.lt.u32.totalorder %s4904_s7, %s5266_s30 }
  0x5d   : > { %p4907_p5 = pnand %p4905_p0, %p5187_p12  ;;  %p4912_p2 = por %p4911_p1, %p4910_p13 }
  0x5f   : > { %p4908_p11 = pneg %p4907_p5  ;;  %p4914_p10 = por %p4913_p7, %p4912_p2 }
  0x61   : > { %p4915_p3 = pnand %p4914_p10, %p4908_p11 }
  0x63   : > { %4918 = shalt.err (!%p4915_p3)
}
  0x64   : > { %s4919_s24 = scalar_lea.vmem %s5268_s2, 2560  ;;  %s5024_s17 = smov [#allocation8]  }
  0x65   : > { %p4920_p4 = scmp.ne.s32.totalorder %s5268_s2, %s4919_s24  ;;  %s4924_s9 = sshll.u32 %s5024_s17, 4  ;;  %s4925_s9 = int_to_ptr.vmem [resolvable:$false] %s4924_s9 }
  0x66   : > { %s4926_s22 = scalar_lea.vmem %s4925_s9, 5120  ;;  %p4927_p0 = scmp.lt.s32.totalorder %s5268_s2, %s4925_s9 }
  0x67   : > { %p4922_p6 = pnand %p4920_p4, %p5187_p12  ;;  %p4928_p5 = scmp.lt.s32.totalorder %s4926_s22, %s4919_s24 }
  0x69   : > { %p4923_p8 = pneg %p4922_p6  ;;  %p4929_p13 = por %p4928_p5, %p4927_p0 }
  0x6b   : > { %p4930_p1 = pnand %p4929_p13, %p4923_p8 }
  0x6d   : > { %4933 = shalt.err (!%p4930_p1)
}
  0x6e   : > { %4753 = dma.hbm_to_vmem [thread:$0]  (!%p5164_p9), %s5266_s30, 2560, %s5268_s2, %s5181_s27, %s7538_s25, %s7538_s25, %s7537_s13  }
  0x6f   : > { %p7539_p12 = scmp.ne.s32.totalorder %s7533_s16, 0 }
  0x71   : > { %552 = sbr.rel (%p7539_p12) target bundleno = 2761 (0xac9), region = 72 }
  0x78   : > { %s554_s7 = sand.u32 1, %s5002_s26   ;;  %p7540_p11 = scmp.ne.s32.totalorder %s7527_s18, 0 }
  0x79   : > { %s4491_s12 = sshll.u32 %s554_s7, 4  ;;  %s555_s1 = scalar_lea.sflag [#allocation4], %s554_s7 }
  0x7a   : > { %s5298_s20 = scalar_lea.vmem [#allocation3], %s4491_s12 }
  0x7b   : > { %4985 = dma.done.wait (%p7540_p11), %s555_s1, 256  }
  0x7c   : > { %4987 = vsyncadd (%p7540_p11), %s555_s1, 4294967040  ;;  %s563_s23 = sand.u32 1, %s5138_s14   ;;  %s5305_s27 = scalar_lea.vmem [#allocation6], %s4491_s12 }
  0x7d   : > { %s564_s21 = scalar_lea.sflag [#allocation7], %s563_s23 }
  0x7e   : > { %4989 = dma.done.wait (%p7540_p11), %s564_s21, 2816  }
  0x7f   : > { %4991 = vsyncadd (%p7540_p11), %s564_s21, 4294964480  ;;  %s4717_s16 = smul.u32 160, %s554_s7  ;;  %p671_p9 = scmp.lt.s32.totalorder %s5010_s28, 1 }
  0x80   : > { %s7541_s3 = sld [smem:[#allocation43_spill]]  ;;  %p4503_p2 = scmp.ne.s32.totalorder %s5010_s28, 0 }
  0x81   : > { %s672_s13 = scalar_select %p671_p9, %s5010_s28, 1 }
  0x82   : > { %s5343_s17 = scalar_lea.vmem [#allocation8], %s4717_s16  ;;  %713 = sbr.rel (%p4503_p2) target bundleno = 358 (0x166), region = 88  ;;  %v717_v0 = vld [vmem:[%s7420_s0 + $0x8] sm:$0xff] (!%p4503_p2)  ;;  %v716_v1 = vld [vmem:[%s7420_s0] sm:$0xff] (!%p4503_p2)  ;;  %vm730_vm0 = vcmask (!%p4503_p2), 64512   ;;  %v5025_v4 = vmov (!%p4503_p2), 0.0  }
  0x83   : > { %s4617_s25 = sshll.u32 %s672_s13, 4  ;;  %s4497_s2 = sshll.u32 %s672_s13, 1  ;;  %737 = vmatprep.subr.mxu0 (!%p4503_p2), %v717_v0  ;;  %4713 = vmatprep.subr.mxu1 (!%p4503_p2), %v717_v0  ;;  %v5026_v6 = vmov (!%p4503_p2), 0  }
  0x84   : > { %s5321_s9 = scalar_lea.vmem %s7424_s4, %s4617_s25  ;;  %s5326_s12 = scalar_lea.vmem %s7425_s5, %s4497_s2  ;;  %738 = vmatpush1.msra.mxu0 (!%p4503_p2), %v716_v1  ;;  %4714 = vmatpush1.msra.mxu1 (!%p4503_p2), %v716_v1 }
  0x85   : > { %s5331_s23 = scalar_lea.vmem %s7426_s6, %s4497_s2  ;;  %s5336_s30 = scalar_lea.vmem %s7428_s8, %s4617_s25  ;;  %801 = vmatprep.mubr.f32.mxu0 (!%p4503_p2), %v5025_v4  ;;  %807 = vmatprep.mubr.f32.mxu1 (!%p4503_p2), %v5025_v4 }
  0x86   : > { %s5316_s19 = scalar_lea.vmem %s7541_s3, %s4617_s25  ;;  %s5341_s24 = scalar_lea.vmem %s7430_s10, %s4617_s25  ;;  %4821 = vset.pattern.permute.xlu0 (!%p4503_p2), %v5026_v6 }
  0x87   : > { %s7542_s3 = sld [smem:[#allocation41_spill]] (!%p4503_p2)  ;;  %s7543_s15 = sld [smem:[#allocation42_spill]] (!%p4503_p2) }
  0x8d   : > { %v714_v2 = vld [vmem:[%s7542_s3] sm:$0xff]  ;;  %v715_v3 = vld [vmem:[%s7542_s3 + $0x8] sm:$0xff] }
  0x8e   : > { %v718_v5 = vld [vmem:[%s7543_s15] sm:$0xff]  ;;  %4504 = vmatmul.mubr.msk.f32.vlgmr.msra.gmra.mrb[0].mxu0 %vm730_vm0, %v714_v2  ;;  %4505 = vmatmul.mubr.msk.f32.vlgmr.msra.gmra.mrb[0].mxu1 %vm730_vm0, %v715_v3  ;;  %v719_v7 = vld [vmem:[%s7543_s15 + $0x8] sm:$0xff] }
  0x8f   : > { %722 = vperm.xlu0 %4821, %v718_v5  }
  0x93   : > { %727 = vperm.xlu0 %4821, %v719_v7  }
 0x10e   : > { %v723_v8 = vpop.permute.xlu0 %722 }
 0x112   : > { %v728_v9 = vpop.permute.xlu0 %727 }
 0x161   : > { %v803_v10 = vpop.f32.mrb[0].mxu0  ;;  %v809_v11 = vpop.f32.mrb[0].mxu1 }
 0x162   : > { %v804_v12 = vadd.f32 %v803_v10, %v723_v8  ;;  %v810_v13 = vadd.f32 %v809_v11, %v728_v9  ;;  %v805_v14 = vpop.f32.mrb[1].mxu0  ;;  %v811_v15 = vpop.f32.mrb[1].mxu1 }
 0x163   : > { %v806_v16 = vadd.f32 %v805_v14, %v723_v8  ;;  %v812_v17 = vadd.f32 %v811_v15, %v728_v9 }
 0x164   : > { %814 = vst [vmem:[#allocation2] sm:$0xff] %v804_v12  ;;  %816 = vst [vmem:[#allocation2 + $0x10] sm:$0xff] %v810_v13 }
 0x165   : > { %815 = vst [vmem:[#allocation2 + $0x8] sm:$0xff] %v806_v16  ;;  %817 = vst [vmem:[#allocation2 + $0x18] sm:$0xff] %v812_v17 }
 0x166 PF: > { %v1072_v21 = vlaneseq  ;;  %v7448_v24 = vmov 0.0   ;;  %v5028_v27 = vmov 0   ;;  %v822_v28 = vld [vmem:[%s5298_s20] sm:$0xff]  ;;  %vm836_vm1 = vcmask 130048   ;;  %v927_v33 = vld [vmem:[%s5321_s9 + $0x8] sm:$0xff]  ;;  %v2426_v41 = vld [vmem:[%s5343_s17 + $0x18] sm:$0xff] }
 0x167   : > { %907 = vmatprep.mubr.f32.mxu0 %v7448_v24  ;;  %1008 = vmatprep.mubr.f32.mxu1 %v7448_v24  ;;  %v924_v29 = vld [vmem:[%s5316_s19] sm:$0xff]  ;;  %v5029_v32 = vmov 1.0   ;;  %v825_v34 = vld [vmem:[%s5336_s30 + $0x8] sm:$0xff]  ;;  %vm2427_vm3 = vcmask 261120   ;;  %v2425_v40 = vld [vmem:[%s5343_s17 + $0x10] sm:$0xff]  ;;  %p4755_p7 = scmp.eq.s32.totalorder %s5138_s14, 1 }
 0x168   : > { %v5366_v26 = vshrl.u32 %v1072_v21, 7  ;;  %4823 = vset.pattern.permute.xlu1 %v5028_v27  ;;  %4822 = vset.pattern.permute.xlu0 %v5028_v27  ;;  %v926_v30 = vld [vmem:[%s5321_s9] sm:$0xff]  ;;  %v823_v35 = vld [vmem:[%s5298_s20 + $0x8] sm:$0xff]  ;;  %s7549_s9 = sld [smem:[#allocation46_spill]] }
 0x169   : > { %v824_v31 = vld [vmem:[%s5336_s30] sm:$0xff]  ;;  %930 = vperm.xlu0 %4822, %v926_v30   ;;  %v925_v36 = vld [vmem:[%s5316_s19 + $0x8] sm:$0xff] }
 0x16a   : > { %7544 = vst [vmem:[#allocation17_spill] sm:$0xff] %v5366_v26  ;;  %vm2411_vm2 = vcmp.eq.s32.totalorder %v5366_v26, 0  ;;  %828 = vperm.xlu1 %4823, %v824_v31   ;;  %v4166_v37 = vld [vmem:[%s5341_s24] sm:$0xff]  ;;  %v2424_v39 = vld [vmem:[%s5343_s17 + $0x8] sm:$0xff] }
 0x16b   : > { %v818_v20 = vld [vmem:[#allocation2] sm:$0xff]  ;;  %v820_v23 = vld [vmem:[#allocation2 + $0x10] sm:$0xff] }
 0x16c   : > { %v819_v18 = vld [vmem:[#allocation2 + $0x8] sm:$0xff]  ;;  %v821_v19 = vld [vmem:[#allocation2 + $0x18] sm:$0xff]  ;;  %v4623_v25 = vpack.c.bf16 %v820_v23, %v818_v20  ;;  %v2423_v38 = vld [vmem:[%s5343_s17] sm:$0xff] }
 0x16d   : > { %v4621_v22 = vpack.c.bf16 %v821_v19, %v819_v18  ;;  %935 = vperm.xlu0 %4822, %v927_v33  }
 0x16e   : > { %833 = vperm.xlu1 %4823, %v825_v34  }
 0x16f   : > { %4622 = vmatprep.subr.bf16.mxu0 %v4621_v22  ;;  %4626 = vmatprep.subr.bf16.mxu1 %v4621_v22 }
 0x170   : > { %4624 = vmatpush1.bf16.msra.mxu0 %v4623_v25  ;;  %4628 = vmatpush1.bf16.msra.mxu1 %v4623_v25 }
 0x171   : > { %4543 = vmatprep.subr.msk.mxu0 %vm2411_vm2, %v5029_v32  ;;  %4170 = vperm.xlu0 %4822, %v4166_v37  }
 0x173   : > { %4506 = vmatmul.mubr.msk.f32.vlgmr.msra.gmra.mrb[0].mxu0 %vm836_vm1, %v822_v28  ;;  %4508 = vmatmul.mubr.msk.f32.vlgmr.msra.gmra.mrb[0].mxu1 %vm836_vm1, %v924_v29 }
 0x174   : > { %913 = vmatprep.mubr.f32.mxu0 %v7448_v24  ;;  %1014 = vmatprep.mubr.f32.mxu1 %v7448_v24 }
 0x175   : > { %4544 = vmatpush1.msk.msra.mxu0 %vm2411_vm2, %v5029_v32 }
 0x177   : > { %4507 = vmatmul.mubr.msk.f32.gmra.mrb[2].mxu0 %vm836_vm1, %v823_v35  ;;  %4509 = vmatmul.mubr.msk.f32.gmra.mrb[2].mxu1 %vm836_vm1, %v925_v36 }
 0x178   : > { %2504 = vmatprep.mubr.f32.mxu0 %v7448_v24  ;;  %2741 = vmatprep.mubr.f32.mxu1 %v7448_v24 }
 0x17b   : > { %4545 = vmatmul.mubr.msk.f32.vlgmr.msra.gmra.mrb[4].mxu0 %vm2427_vm3, %v2423_v38 }
 0x17c   : > { %2510 = vmatprep.mubr.f32.mxu0 %v7448_v24 }
 0x17f   : > { %4546 = vmatmul.mubr.msk.f32.gmra.mrb[6].mxu0 %vm2427_vm3, %v2424_v39 }
 0x180   : > { %2516 = vmatprep.mubr.f32.mxu0 %v7448_v24 }
 0x183   : > { %4547 = vmatmul.mubr.msk.f32.gmra.mrb[8].mxu0 %vm2427_vm3, %v2425_v40  ;;  %v2661_v40 = vld [vmem:[%s7549_s9] sm:$0xff] }
 0x184   : > { %2522 = vmatprep.mubr.f32.mxu0 %v7448_v24 }
 0x187   : > { %4548 = vmatmul.mubr.msk.f32.gmra.mrb[10].mxu0 %vm2427_vm3, %v2426_v41 }
 0x188   : > { %3031 = vmatprep.mubr.f32.mxu0 %v7448_v24 }
 0x1e8   : > { %v931_v42 = vpop.permute.xlu0 %930 }
 0x1e9   : > { %v829_v43 = vpop.permute.xlu1 %828 }
 0x1ec   : > { %v936_v48 = vpop.permute.xlu0 %935 }
 0x1ed   : > { %v834_v49 = vpop.permute.xlu1 %833 }
 0x246   : > { %v909_v44 = vpop.f32.mrb[0].mxu0  ;;  %v1010_v45 = vpop.f32.mrb[0].mxu1 }
 0x247   : > { %v911_v46 = vpop.f32.mrb[1].mxu0  ;;  %v1012_v47 = vpop.f32.mrb[1].mxu1  ;;  %v910_v50 = vadd.f32 %v909_v44, %v829_v43  ;;  %v1011_v51 = vadd.f32 %v1010_v45, %v931_v42 }
 0x248   : > { %v912_v52 = vadd.f32 %v911_v46, %v829_v43  ;;  %v1013_v53 = vadd.f32 %v1012_v47, %v931_v42  ;;  %v2662_v46 = vld [vmem:[%s7549_s9 + $0x8] sm:$0xff] }
 0x249   : > { %v920_v62 = vmax.f32 %v910_v50, 0.0 }
 0x24a   : > { %v915_v54 = vpop.f32.mrb[2].mxu0  ;;  %v1016_v55 = vpop.f32.mrb[2].mxu1  ;;  %v921_v1 = vmax.f32 %v912_v52, 0.0 }
 0x24b   : > { %v916_v56 = vadd.f32 %v915_v54, %v834_v49  ;;  %v1017_v57 = vadd.f32 %v1016_v55, %v936_v48  ;;  %v917_v58 = vpop.f32.mrb[3].mxu0  ;;  %v1018_v59 = vpop.f32.mrb[3].mxu1 }
 0x24c   : > { %v918_v60 = vadd.f32 %v917_v58, %v834_v49  ;;  %v1019_v61 = vadd.f32 %v1018_v59, %v936_v48 }
 0x24d   : > { %v922_v63 = vmax.f32 %v916_v56, 0.0  ;;  %v1021_v0 = vadd.f32 %v1017_v57, %v1011_v51  ;;  %v2664_v56 = vld [vmem:[%s7549_s9 + $0x18] sm:$0xff] }
 0x24e   : > { %v923_v2 = vmax.f32 %v918_v60, 0.0  ;;  %v1028_v3 = vadd.f32 %v1019_v61, %v1013_v53  ;;  %v5398_v4 = vpop.f32.mrb[4].mxu0 }
 0x24f   : > { %v5400_v5 = vpack.c.bf16 %v922_v63, %v920_v62  ;;  %v1022_v6 = vrot.slane %v1021_v0, 4  ;;  %v5402_v7 = vpop.f32.mrb[5].mxu0 }
 0x250   : > { %v5404_v8 = vpack.c.bf16 %v923_v2, %v921_v1  ;;  %v1029_v9 = vrot.slane %v1028_v3, 4  ;;  %v1070_v1 = vld [vmem:[%s5326_s12] sm:$0x3]  ;;  %v5451_v2 = vsub.s32 1, %v5366_v26 }
 0x251   : > { %7545 = vst [vmem:[#allocation18_spill] sm:$0xff] %v5400_v5  ;;  %v1023_v10 = vadd.f32 %v1022_v6, %v1021_v0  ;;  %v5447_v0 = vsub.s32 0, %v5366_v26 }
 0x252   : > { %7546 = vst [vmem:[#allocation19_spill] sm:$0xff] %v5404_v8  ;;  %v1030_v11 = vadd.f32 %v1029_v9, %v1028_v3  ;;  %v5406_v12 = vpop.f32.mrb[6].mxu0  ;;  %7550 = vst [vmem:[#allocation22_spill] sm:$0xff] %v5451_v2  ;;  %v1086_v3 = vld [vmem:[%s5331_s23] sm:$0x3] }
 0x253   : > { %v1024_v13 = vrot.slane %v1023_v10, 2  ;;  %v4631_v14 = vpack.c.bf16 %v5406_v12, %v5398_v4  ;;  %v5410_v15 = vpop.f32.mrb[7].mxu0  ;;  %v1075_v6 = vrot.slane %v1070_v1, %v5447_v0 }
 0x254   : > { %7547 = vst [vmem:[#allocation20_spill] sm:$0xff] %v5410_v15  ;;  %v1031_v16 = vrot.slane %v1030_v11, 2  ;;  %v4629_v17 = vpack.c.bf16 %v5410_v15, %v5402_v7 }
 0x255   : > { %v1025_v18 = vadd.f32 %v1024_v13, %v1023_v10  ;;  %v1079_v10 = vrot.slane %v1070_v1, %v5451_v2  ;;  %v5030_v1 = vmov 683565275  }
 0x256   : > { %v1032_v19 = vadd.f32 %v1031_v16, %v1030_v11  ;;  %v5414_v20 = vpop.f32.mrb[8].mxu0  ;;  %4630 = vmatprep.subr.bf16.mxu1 %v4629_v17  ;;  %v1091_v16 = vrot.slane %v1086_v3, %v5447_v0 }
 0x257   : > { %v1026_v21 = vrot.slane %v1025_v18, 1  ;;  %v5416_v22 = vpop.f32.mrb[9].mxu0  ;;  %4632 = vmatpush1.bf16.msra.mxu1 %v4631_v14 }
 0x258   : > { %v1033_v23 = vrot.slane %v1032_v19, 1 }
 0x259   : > { %v1027_v25 = vadd.f32 %v1026_v21, %v1025_v18 }
 0x25a   : > { %v1034_v27 = vadd.f32 %v1033_v23, %v1032_v19  ;;  %v5418_v28 = vpop.f32.mrb[10].mxu0  ;;  %v1095_v19 = vrot.slane %v1086_v3, %v5451_v2 }
 0x25b   : > { %v1036_v29 = vmul.f32 0.0625, %v1027_v25  ;;  %v4635_v30 = vpack.c.bf16 %v5418_v28, %v5414_v20  ;;  %v5422_v31 = vpop.f32.mrb[11].mxu0 }
 0x25c   : > { %7548 = vst [vmem:[#allocation21_spill] sm:$0xff] %v5422_v31  ;;  %v1037_v32 = vmul.f32 0.0625, %v1034_v27  ;;  %v4633_v33 = vpack.c.bf16 %v5422_v31, %v5416_v22 }
 0x25d   : > { %v1038_v34 = vsub.f32 %v1011_v51, %v1036_v29  ;;  %v1040_v35 = vsub.f32 %v1017_v57, %v1036_v29  ;;  %v2663_v51 = vld [vmem:[%s7549_s9 + $0x10] sm:$0xff] }
 0x25e   : > { %v1039_v36 = vsub.f32 %v1013_v53, %v1037_v32  ;;  %v1041_v37 = vsub.f32 %v1019_v61, %v1037_v32  ;;  %4634 = vmatprep.subr.bf16.mxu1 %v4633_v33 }
 0x25f   : > { %v1042_v38 = vmul.f32 %v1038_v34, %v1038_v34  ;;  %v1044_v39 = vmul.f32 %v1040_v35, %v1040_v35  ;;  %4636 = vmatpush1.bf16.msra.mxu1 %v4635_v30 }
 0x260   : > { %v1043_v41 = vmul.f32 %v1039_v36, %v1039_v36  ;;  %v1045_v42 = vmul.f32 %v1041_v37, %v1041_v37 }
 0x261   : > { %v1046_v43 = vadd.f32 %v1044_v39, %v1042_v38 }
 0x262   : > { %v1053_v44 = vadd.f32 %v1045_v42, %v1043_v41  ;;  %4549 = vmatmul.mubr.msk.f32.vlgmr.msra.gmra.mrb[4].mxu1 %vm2427_vm3, %v2661_v40 }
 0x263   : > { %v1047_v45 = vrot.slane %v1046_v43, 4  ;;  %2747 = vmatprep.mubr.f32.mxu1 %v7448_v24 }
 0x264   : > { %v1054_v47 = vrot.slane %v1053_v44, 4 }
 0x265   : > { %v1048_v48 = vadd.f32 %v1047_v45, %v1046_v43 }
 0x266   : > { %v1055_v49 = vadd.f32 %v1054_v47, %v1053_v44  ;;  %4550 = vmatmul.mubr.msk.f32.gmra.mrb[6].mxu1 %vm2427_vm3, %v2662_v46 }
 0x267   : > { %v1049_v50 = vrot.slane %v1048_v48, 2  ;;  %2753 = vmatprep.mubr.f32.mxu1 %v7448_v24 }
 0x268   : > { %v1056_v52 = vrot.slane %v1055_v49, 2 }
 0x269   : > { %v1050_v53 = vadd.f32 %v1049_v50, %v1048_v48 }
 0x26a   : > { %v1057_v54 = vadd.f32 %v1056_v52, %v1055_v49  ;;  %4551 = vmatmul.mubr.msk.f32.gmra.mrb[8].mxu1 %vm2427_vm3, %v2663_v51 }
 0x26b   : > { %v1051_v55 = vrot.slane %v1050_v53, 1  ;;  %2759 = vmatprep.mubr.f32.mxu1 %v7448_v24 }
 0x26c   : > { %v1058_v57 = vrot.slane %v1057_v54, 1 }
 0x26d   : > { %v1052_v58 = vadd.f32 %v1051_v55, %v1050_v53 }
 0x26e   : > { %v1059_v59 = vadd.f32 %v1058_v57, %v1057_v54  ;;  %4552 = vmatmul.mubr.msk.f32.gmra.mrb[10].mxu1 %vm2427_vm3, %v2664_v56 }
 0x26f   : > { %v1060_v60 = vmul.f32 0.0625, %v1052_v58  ;;  %3321 = vmatprep.mubr.f32.mxu1 %v7448_v24 }
 0x270   : > { %v1061_v61 = vmul.f32 0.0625, %v1059_v59 }
 0x271   : > { %v1062_v62 = vadd.f32 1e-05, %v1060_v60 }
 0x272   : > { %v1063_v63 = vadd.f32 1e-05, %v1061_v61 }
 0x273   : > { %4824 = vrsqrt.f32 %v1062_v62 }
 0x274   : > { %4826 = vrsqrt.f32 %v1063_v63 }
 0x27d   : > { %v4825_v9 = vpop.eup %4824 }
 0x27e   : > { %v4827_v11 = vpop.eup %4826  ;;  %v1066_v13 = vmul.f32 %v4825_v9, %v1038_v34  ;;  %v1068_v14 = vmul.f32 %v4825_v9, %v1040_v35 }
 0x27f   : > { %v1067_v17 = vmul.f32 %v4827_v11, %v1039_v36  ;;  %v1069_v18 = vmul.f32 %v4827_v11, %v1041_v37 }
 0x280   : > { %v1082_v21 = vmul.f32 %v1075_v6, %v1066_v13  ;;  %v1084_v23 = vmul.f32 %v1075_v6, %v1068_v14  ;;  %v5031_v6 = vmov 2475754826   ;;  %v5033_v13 = vmov 2102212464  }
 0x281   : > { %v1083_v25 = vmul.f32 %v1079_v10, %v1067_v17  ;;  %v1085_v46 = vmul.f32 %v1079_v10, %v1069_v18  ;;  %v5032_v10 = vmov 2131351028  }
 0x282   : > { %v1098_v27 = vadd.f32 %v1091_v16, %v1082_v21  ;;  %v1100_v29 = vadd.f32 %v1091_v16, %v1084_v23  ;;  %v5034_v16 = vmov 920167782  }
 0x283   : > { %v1099_v30 = vadd.f32 %v1095_v19, %v1083_v25  ;;  %v5473_v54 = vadd.f32 %v1095_v19, %v1085_v46 }
 0x284   : > { %v5458_v32 = vmul.f32 0.5, %v1098_v27  ;;  %v5460_v33 = vmul.f32 0.5, %v1100_v29  ;;  %v5035_v29 = vmov 1326507024  }
 0x285   : > { %v5462_v38 = vmul.f32 0.5, %v1099_v30 }
 0x286   : > { %v1106_v34 = vand.u32 2147483647, %v5458_v32  ;;  %v1109_v35 = vand.u32 2139095040, %v5458_v32  ;;  %v1312_v36 = vand.u32 2147483647, %v5460_v33  ;;  %v1315_v37 = vand.u32 2139095040, %v5460_v33 }
 0x287   : > { %v1212_v43 = vand.u32 2139095040, %v5462_v38  ;;  %v1209_v58 = vand.u32 2147483647, %v5462_v38  ;;  %vm1108_vm1 = vcmp.lt.s32.totalorder %v5458_v32, 0 }
 0x288   : > { %v1110_v39 = vshrl.u32 %v1109_v35, 23  ;;  %v1113_v40 = vand.u32 8388607, %v1106_v34  ;;  %v1316_v41 = vshrl.u32 %v1315_v37, 23  ;;  %v1319_v42 = vand.u32 8388607, %v1312_v36 }
 0x289   : > { %v1213_v47 = vshrl.u32 %v1212_v43, 23  ;;  %vm5588_vm2 = vcmp.le.f32.partialorder %v1106_v34, 0.7853982 }
 0x28a   : > { %v4510_v44 = vadd.s32 4294967169, %v1110_v39  ;;  %v4518_v45 = vadd.s32 4294967169, %v1316_v41  ;;  %v1114_v49 = vor.u32 8388608, %v1113_v40  ;;  %v1320_v50 = vor.u32 8388608, %v1319_v42 }
 0x28b   : > { %v4514_v52 = vadd.s32 4294967169, %v1213_v47 }
 0x28c   : > { %v1116_v48 = vadd.s32 1, %v4510_v44  ;;  %v1322_v51 = vadd.s32 1, %v4518_v45  ;;  %v5476_v59 = vshll.u32 %v1114_v49, 8  ;;  %v5478_v61 = vshll.u32 %v1320_v50, 8 }
 0x28d   : > { %v5480_v62 = vadd.s32 1, %v4514_v52 }
 0x28e   : > { %vm1117_vm4 = vcmp.gt.s32.totalorder %v1116_v48, 0  ;;  %vm1323_vm5 = vcmp.gt.s32.totalorder %v1322_v51, 0 }
 0x28f   : > { %v1118_v53 = vsel %vm1117_vm4, %v1116_v48, 0  ;;  %v1324_v57 = vsel %vm1323_vm5, %v1322_v51, 0  ;;  %vm1220_vm10 = vcmp.gt.s32.totalorder %v5480_v62, 0 }
 0x290   : > { %v1119_v55 = vshrl.u32 %v1118_v53, 5  ;;  %v1120_v56 = vand.u32 31, %v1118_v53  ;;  %v1326_v60 = vand.u32 31, %v1324_v57  ;;  %v5487_v18 = vshrl.u32 %v1324_v57, 5 }
 0x292   : > { %v1121_v63 = vsub.s32 32, %v1120_v56  ;;  %v1123_v3 = vshll.u32 %v5030_v1, %v1120_v56  ;;  %v1126_v9 = vshll.u32 %v5031_v6, %v1120_v56  ;;  %v1129_v11 = vshll.u32 %v5032_v10, %v1120_v56 }
 0x293   : > { %v1132_v14 = vshll.u32 %v5033_v13, %v1120_v56  ;;  %v1135_v17 = vshll.u32 %v5034_v16, %v1120_v56  ;;  %vm1138_vm6 = vcmp.lt.s32.totalorder %v1119_v55, 1  ;;  %vm1139_vm7 = vcmp.lt.s32.totalorder %v1119_v55, 2 }
 0x294   : > { %v1122_v19 = vshrl.u32 %v5030_v1, %v1121_v63  ;;  %v1124_v21 = vshrl.u32 %v5031_v6, %v1121_v63  ;;  %v1127_v23 = vshrl.u32 %v5032_v10, %v1121_v63  ;;  %v1130_v25 = vshrl.u32 %v5033_v13, %v1121_v63 }
 0x295   : > { %v1133_v27 = vshrl.u32 %v5034_v16, %v1121_v63  ;;  %v1136_v30 = vshrl.u32 %v5035_v29, %v1121_v63  ;;  %vm1141_vm8 = vcmp.lt.s32.totalorder %v1119_v55, 4  ;;  %v1327_v40 = vsub.s32 32, %v1326_v60 }
 0x296   : > { %v1125_v35 = vor.u32 %v1124_v21, %v1123_v3  ;;  %v1128_v37 = vor.u32 %v1127_v23, %v1126_v9  ;;  %v1131_v39 = vor.u32 %v1130_v25, %v1129_v11  ;;  %vm1140_vm9 = vcmp.lt.s32.totalorder %v1119_v55, 3 }
 0x297   : > { %v1134_v41 = vor.u32 %v1133_v27, %v1132_v14  ;;  %v1137_v42 = vor.u32 %v1136_v30, %v1135_v17  ;;  %v1329_v43 = vshll.u32 %v5030_v1, %v1326_v60  ;;  %v1332_v51 = vshll.u32 %v5031_v6, %v1326_v60 }
 0x298   : > { %v1142_v44 = vsel %vm1138_vm6, %v1122_v19, %v1125_v35  ;;  %v1143_v45 = vsel %vm1141_vm8, %v1131_v39, 2102212464  ;;  %v1146_v46 = vsel %vm1138_vm6, %v1125_v35, %v1128_v37  ;;  %v1150_v47 = vsel %vm1138_vm6, %v1128_v37, %v1131_v39 }
 0x299   : > { %v1144_v48 = vsel %vm1140_vm9, %v1128_v37, %v1143_v45  ;;  %v1147_v49 = vsel %vm1141_vm8, %v1134_v41, 920167782  ;;  %v1151_v50 = vsel %vm1141_vm8, %v1137_v42, 1326507024  ;;  %v1328_v56 = vshrl.u32 %v5030_v1, %v1327_v40 }
 0x29a   : > { %v1148_v52 = vsel %vm1140_vm9, %v1131_v39, %v1147_v49  ;;  %v1152_v53 = vsel %vm1140_vm9, %v1134_v41, %v1151_v50  ;;  %v1330_v57 = vshrl.u32 %v5031_v6, %v1327_v40  ;;  %v1145_v63 = vsel %vm1139_vm7, %v1142_v44, %v1144_v48 }
 0x29b   : > { %v1149_v3 = vsel %vm1139_vm7, %v1146_v46, %v1148_v52  ;;  %v1153_v9 = vsel %vm1139_vm7, %v1150_v47, %v1152_v53  ;;  %v1333_v11 = vshrl.u32 %v5032_v10, %v1327_v40  ;;  %v1335_v27 = vshll.u32 %v5032_v10, %v1326_v60 }
 0x29c   : > { %v5508_v14 = vmul.u32.u64.low %v5476_v59, %v1153_v9  ;;  %v5509_v17 = vmul.u32.u64.high %v5476_v59, %v1153_v9, %v5508_v14  ;;  %v5512_v19 = vmul.u32.u64.low %v5476_v59, %v1149_v3  ;;  %v5513_v21 = vmul.u32.u64.high %v5476_v59, %v1149_v3, %v5512_v19 }
 0x29d   : > { %v1331_v23 = vor.u32 %v1330_v57, %v1329_v43  ;;  %v1334_v25 = vor.u32 %v1333_v11, %v1332_v51  ;;  %v1336_v30 = vshrl.u32 %v5033_v13, %v1327_v40  ;;  %v1338_v55 = vshll.u32 %v5033_v13, %v1326_v60 }
 0x29e   : > { %v1339_v35 = vshrl.u32 %v5034_v16, %v1327_v40  ;;  %v1341_v37 = vshll.u32 %v5034_v16, %v1326_v60  ;;  %v1342_v39 = vshrl.u32 %v5035_v29, %v1327_v40  ;;  %v1161_v41 = vmul.u32 %v5476_v59, %v1145_v63 }
 0x29f   : > { %v1337_v42 = vor.u32 %v1336_v30, %v1335_v27  ;;  %vm1344_vm11 = vcmp.lt.s32.totalorder %v5487_v18, 1  ;;  %vm1345_vm12 = vcmp.lt.s32.totalorder %v5487_v18, 2  ;;  %vm1163_vm13 = vc.u32 %v5509_v17, %v5512_v19 }
 0x2a0   : > { %v1164_v43 = vadd.s32 1, %v5513_v21  ;;  %v1340_v44 = vor.u32 %v1339_v35, %v1338_v55  ;;  %vm1346_vm14 = vcmp.lt.s32.totalorder %v5487_v18, 3  ;;  %v1343_v45 = vor.u32 %v1342_v39, %v1341_v37 }
 0x2a1   : > { %vm1347_vm15 = vcmp.lt.s32.totalorder %v5487_v18, 4  ;;  %v1348_v60 = vsel %vm1344_vm11, %v1328_v56, %v1331_v23  ;;  %v1352_v40 = vsel %vm1344_vm11, %v1331_v23, %v1334_v25  ;;  %v1356_v48 = vsel %vm1344_vm11, %v1334_v25, %v1337_v42 }
 0x2a2   : > { %v1165_v59 = vsel %vm1163_vm13, %v1164_v43, %v5513_v21  ;;  %v1349_v46 = vsel %vm1347_vm15, %v1337_v42, 2102212464  ;;  %v1353_v47 = vsel %vm1347_vm15, %v1340_v44, 920167782  ;;  %v1357_v52 = vsel %vm1347_vm15, %v1343_v45, 1326507024 }
 0x2a3   : > { %v1166_v49 = vadd.s32 %v1165_v59, %v1161_v41  ;;  %v1350_v50 = vsel %vm1346_vm14, %v1334_v25, %v1349_v46  ;;  %v1354_v51 = vsel %vm1346_vm14, %v1337_v42, %v1353_v47  ;;  %v1358_v63 = vsel %vm1346_vm14, %v1340_v44, %v1357_v52 }
 0x2a4   : > { %v1351_v53 = vsel %vm1345_vm12, %v1348_v60, %v1350_v50  ;;  %v1355_v57 = vsel %vm1345_vm12, %v1352_v40, %v1354_v51  ;;  %v1221_v56 = vsel %vm1220_vm10, %v5480_v62, 0  ;;  %v1359_v9 = vsel %vm1345_vm12, %v1356_v48, %v1358_v63 }
 0x2a5   : > { %v1167_v3 = vadd.s32 536870912, %v1166_v49  ;;  %v5541_v11 = vmul.u32.u64.low %v5478_v61, %v1355_v57  ;;  %v5542_v14 = vmul.u32.u64.high %v5478_v61, %v1355_v57, %v5541_v11  ;;  %v5550_v25 = vmul.f32 0.5, %v5473_v54 }
 0x2a6   : > { %v5546_v21 = vmul.u32.u64.low %v5478_v61, %v1359_v9  ;;  %v5547_v23 = vmul.u32.u64.high %v5478_v61, %v1359_v9, %v5546_v21  ;;  %v1216_v27 = vand.u32 8388607, %v1209_v58  ;;  %v1223_v30 = vand.u32 31, %v1221_v56 }
 0x2a7   : > { %v1168_v62 = vshrl.u32 %v1167_v3, 30  ;;  %v1367_v18 = vmul.u32 %v5478_v61, %v1351_v53  ;;  %v1370_v35 = vadd.s32 1, %v5542_v14  ;;  %v1415_v37 = vand.u32 2147483647, %v5550_v25 }
 0x2a8   : > { %vm1369_vm0 = vc.u32 %v5547_v23, %v5541_v11  ;;  %v1217_v39 = vor.u32 8388608, %v1216_v27  ;;  %v1418_v41 = vand.u32 2139095040, %v5550_v25  ;;  %v1224_v43 = vsub.s32 32, %v1223_v30 }
 0x2a9   : > { %v1169_v55 = vshll.u32 %v1168_v62, 30  ;;  %v1371_v42 = vsel %vm1369_vm0, %v1370_v35, %v5542_v14  ;;  %v5566_v61 = vand.u32 8388607, %v1415_v37  ;;  %v5569_v40 = vshrl.u32 %v1221_v56, 5 }
 0x2aa   : > { %v1372_v44 = vadd.s32 %v1371_v42, %v1367_v18  ;;  %v5571_v59 = vshll.u32 %v1217_v39, 8  ;;  %v1419_v46 = vshrl.u32 %v1418_v41, 23  ;;  %v1226_v48 = vshll.u32 %v5030_v1, %v1223_v30 }
 0x2ab   : > { %v5560_v54 = vsub.s32 %v1166_v49, %v1169_v55  ;;  %v1232_v49 = vshll.u32 %v5032_v10, %v1223_v30  ;;  %v1233_v50 = vshrl.u32 %v5033_v13, %v1224_v43  ;;  %v1227_v52 = vshrl.u32 %v5031_v6, %v1224_v43 }
 0x2ac   : > { %v1373_v60 = vadd.s32 536870912, %v1372_v44  ;;  %v1229_v53 = vshll.u32 %v5031_v6, %v1223_v30  ;;  %v1230_v57 = vshrl.u32 %v5032_v10, %v1224_v43  ;;  %v1162_v63 = vadd.s32 %v5512_v19, %v5509_v17 }
 0x2ad   : > { %v1172_v45 = vsub.s32 0, %v5560_v54  ;;  %v1235_v3 = vshll.u32 %v5033_v13, %v1223_v30  ;;  %v1236_v9 = vshrl.u32 %v5034_v16, %v1224_v43  ;;  %v1238_v27 = vshll.u32 %v5034_v16, %v1223_v30 }
 0x2ae   : > { %v5577_v51 = vshrl.u32 %v1373_v60, 30  ;;  %v1239_v18 = vshrl.u32 %v5035_v29, %v1224_v43  ;;  %v4522_v55 = vadd.s32 4294967169, %v1419_v46  ;;  %v1192_v17 = vsub.s32 4, %v1168_v62 }
 0x2af   : > { %v4511_v47 = vmin.u32 %v1172_v45, %v5560_v54  ;;  %v1234_v19 = vor.u32 %v1233_v50, %v1232_v49  ;;  %vm1244_vm4 = vcmp.lt.s32.totalorder %v5569_v40, 4  ;;  %v1225_v41 = vshrl.u32 %v5030_v1, %v1224_v43 }
 0x2b0   : > { %v1375_v21 = vshll.u32 %v5577_v51, 30  ;;  %v1228_v34 = vor.u32 %v1227_v52, %v1226_v48  ;;  %v1231_v42 = vor.u32 %v1230_v57, %v1229_v53  ;;  %v1237_v45 = vor.u32 %v1236_v9, %v1235_v3 }
 0x2b1   : > { %v1174_v56 = vclz %v4511_v47  ;;  %vm1241_vm6 = vcmp.lt.s32.totalorder %v5569_v40, 1  ;;  %v1246_v30 = vsel %vm1244_vm4, %v1234_v19, 2102212464  ;;  %v1240_v47 = vor.u32 %v1239_v18, %v1238_v27 }
 0x2b2   : > { %v5596_v39 = vsub.s32 %v1372_v44, %v1375_v21  ;;  %vm1242_vm7 = vcmp.lt.s32.totalorder %v5569_v40, 2  ;;  %v1193_v43 = vsel %vm1108_vm1, %v1192_v17, %v1168_v62  ;;  %vm1314_vm8 = vcmp.lt.s32.totalorder %v5460_v33, 0 }
 0x2b3   : > { %v4512_v35 = vadd.s32 4294967294, %v1174_v56  ;;  %vm1243_vm9 = vcmp.lt.s32.totalorder %v5569_v40, 3  ;;  %v1245_v50 = vsel %vm1241_vm6, %v1225_v41, %v1228_v34  ;;  %v1249_v53 = vsel %vm1241_vm6, %v1228_v34, %v1231_v42 }
 0x2b4   : > { %v1378_v46 = vsub.s32 0, %v5596_v39  ;;  %v1247_v52 = vsel %vm1243_vm9, %v1231_v42, %v1246_v30  ;;  %v1250_v62 = vsel %vm1244_vm4, %v1237_v45, 920167782  ;;  %vm5620_vm10 = vcmp.le.f32.partialorder %v1312_v36, 0.7853982 }
 0x2b5   : > { %vm4513_vm5 = vcmp.lt.s32.totalorder %v4512_v35, 0  ;;  %v1251_v27 = vsel %vm1243_vm9, %v1234_v19, %v1250_v62  ;;  %v1253_v18 = vsel %vm1241_vm6, %v1231_v42, %v1234_v19  ;;  %v1195_v17 = vsel %vm5588_vm2, 0, %v1193_v43 }
 0x2b6   : > { %v1177_v60 = vsel %vm4513_vm5, 0, %v4512_v35  ;;  %v4519_v48 = vmin.u32 %v1378_v46, %v5596_v39  ;;  %v1368_v36 = vadd.s32 %v5541_v11, %v5547_v23  ;;  %v1398_v34 = vsub.s32 4, %v5577_v51 }
 0x2b7   : > { %v1178_v49 = vsub.s32 32, %v1177_v60  ;;  %v1182_v44 = vsub.s32 4294967266, %v1177_v60  ;;  %v1179_v57 = vshll.u32 %v5560_v54, %v1177_v60  ;;  %v1254_v54 = vsel %vm1244_vm4, %v1240_v47, 1326507024 }
 0x2b8   : > { %v1380_v21 = vclz %v4519_v48  ;;  %v1252_v30 = vsel %vm1242_vm7, %v1249_v53, %v1251_v27  ;;  %v1255_v19 = vsel %vm1243_vm9, %v1237_v45, %v1254_v54  ;;  %v1248_v46 = vsel %vm1242_vm7, %v1245_v50, %v1247_v52 }
 0x2b9   : > { %v1180_v56 = vshrl.u32 %v1162_v63, %v1178_v49  ;;  %v1183_v3 = vadd.s32 127, %v1182_v44  ;;  %v1256_v47 = vsel %vm1242_vm7, %v1253_v18, %v1255_v19  ;;  %v1425_v49 = vadd.s32 1, %v4522_v55 }
 0x2ba   : > { %v4520_v41 = vadd.s32 4294967294, %v1380_v21  ;;  %v5644_v11 = vmul.u32.u64.low %v5571_v59, %v1256_v47  ;;  %v5645_v23 = vmul.u32.u64.high %v5571_v59, %v1256_v47, %v5644_v11  ;;  %v1399_v40 = vsel %vm1314_vm8, %v1398_v34, %v5577_v51 }
 0x2bb   : > { %v1181_v63 = vor.u32 %v1180_v56, %v1179_v57  ;;  %v1184_v35 = vshll.u32 %v1183_v3, 23  ;;  %v5648_v48 = vmul.u32.u64.low %v5571_v59, %v1252_v30  ;;  %v5649_v53 = vmul.u32.u64.high %v5571_v59, %v1252_v30, %v5648_v48 }
 0x2bc   : > { %vm4521_vm11 = vcmp.lt.s32.totalorder %v4520_v41, 0  ;;  %vm1426_vm12 = vcmp.gt.s32.totalorder %v1425_v49, 0  ;;  %v1611_v52 = vadd.s32 3, %v1195_v17  ;;  %v1264_v56 = vmul.u32 %v5571_v59, %v1248_v46 }
 0x2bd   : > { %v1185_v42 = vor.u32 4788187, %v1184_v35  ;;  %v1188_v60 = vcvt.s32.f32 %v1181_v63  ;;  %v1383_v43 = vsel %vm4521_vm11, 0, %v4520_v41  ;;  %v1427_v3 = vsel %vm1426_vm12, %v1425_v49, 0 }
 0x2be   : > { %v1384_v45 = vsub.s32 32, %v1383_v43  ;;  %v1388_v57 = vsub.s32 4294967266, %v1383_v43  ;;  %v1385_v55 = vshll.u32 %v5596_v39, %v1383_v43  ;;  %vm1266_vm13 = vc.u32 %v5645_v23, %v5648_v48 }
 0x2bf   : > { %v1186_v44 = vand.u32 2147483647, %v1185_v42  ;;  %v1401_v18 = vsel %vm5620_vm10, 0, %v1399_v40  ;;  %v1267_v54 = vadd.s32 1, %v5649_v53  ;;  %v1429_v51 = vand.u32 31, %v1427_v3 }
 0x2c0   : > { %v1386_v62 = vshrl.u32 %v1368_v36, %v1384_v45  ;;  %v1389_v21 = vadd.s32 127, %v1388_v57  ;;  %v5662_v63 = vand.u32 3, %v1195_v17  ;;  %v1423_v59 = vor.u32 8388608, %v5566_v61 }
 0x2c1   : > { %v1189_v50 = vmul.f32 %v1188_v60, %v1186_v44  ;;  %v5667_v36 = vand.u32 3, %v1611_v52  ;;  %v1268_v34 = vsel %vm1266_vm13, %v1267_v54, %v5649_v53  ;;  %v1430_v30 = vsub.s32 32, %v1429_v51 }
 0x2c2   : > { %v1387_v35 = vor.u32 %v1386_v62, %v1385_v55  ;;  %v1390_v41 = vshll.u32 %v1389_v21, 23  ;;  %v1819_v60 = vadd.s32 3, %v1401_v18  ;;  %v1269_v17 = vadd.s32 %v1268_v34, %v1264_v56 }
 0x2c3   : > { %v1190_v27 = vxor.u32 2147483648, %v1189_v50  ;;  %v1432_v47 = vshll.u32 %v5030_v1, %v1429_v51  ;;  %v1433_v61 = vshrl.u32 %v5031_v6, %v1430_v30  ;;  %v1435_v44 = vshll.u32 %v5031_v6, %v1429_v51 }
 0x2c4   : > { %v1391_v42 = vor.u32 4788187, %v1390_v41  ;;  %v1394_v46 = vcvt.s32.f32 %v1387_v35  ;;  %v1270_v49 = vadd.s32 536870912, %v1269_v17  ;;  %vm1211_vm14 = vcmp.lt.s32.totalorder %v5462_v38, 0 }
 0x2c5   : > { %v1191_v39 = vsel %vm1108_vm1, %v1190_v27, %v1189_v50  ;;  %v1436_v43 = vshrl.u32 %v5032_v10, %v1430_v30  ;;  %v1438_v14 = vshll.u32 %v5032_v10, %v1429_v51  ;;  %v1439_v53 = vshrl.u32 %v5033_v13, %v1430_v30 }
 0x2c6   : > { %v1194_v19 = vsel %vm5588_vm2, %v5458_v32, %v1191_v39  ;;  %v1392_v11 = vand.u32 2147483647, %v1391_v42  ;;  %v1441_v45 = vshll.u32 %v5033_v13, %v1429_v51  ;;  %v1271_v40 = vshrl.u32 %v1270_v49, 30 }
 0x2c7   : > { %4828 = vcosq.f32 %v1194_v19  ;;  %v5681_v50 = vshrl.u32 %v1427_v3, 5  ;;  %v1442_v52 = vshrl.u32 %v5034_v16, %v1430_v30  ;;  %vm1204_vm15 = vcmp.eq.s32.totalorder %v5662_v63, 2 }
 0x2c8   : > { %4830 = vsinq.f32 %v1194_v19  ;;  %v1395_v57 = vmul.f32 %v1394_v46, %v1392_v11  ;;  %v5685_v56 = vand.u32 3, %v1401_v18  ;;  %vm1617_vm0 = vcmp.eq.s32.totalorder %v5667_v36, 2 }
 0x2c9   : > { %v5688_v6 = vand.u32 3, %v1819_v60  ;;  %v1444_v10 = vshll.u32 %v5034_v16, %v1429_v51  ;;  %v1445_v55 = vshrl.u32 %v5035_v29, %v1430_v30  ;;  %vm1201_vm1 = vcmp.eq.s32.totalorder %v5662_v63, 0 }
 0x2ca   : > { %v1396_v13 = vxor.u32 2147483648, %v1395_v57  ;;  %vm1614_vm2 = vcmp.eq.s32.totalorder %v5667_v36, 0  ;;  %v1272_v3 = vshll.u32 %v1271_v40, 30  ;;  %v1431_v62 = vshrl.u32 %v5030_v1, %v1430_v30 }
 0x2cb   : > { %v5695_v21 = vshll.u32 %v1423_v59, 8  ;;  %vm1200_vm4 = vcmp.lt.s32.totalorder %v5662_v63, 2  ;;  %vm1613_vm5 = vcmp.lt.s32.totalorder %v5667_v36, 2  ;;  %v1434_v27 = vor.u32 %v1433_v61, %v1432_v47 }
 0x2cc   : > { %v1437_v18 = vor.u32 %v1436_v43, %v1435_v44  ;;  %v1440_v54 = vor.u32 %v1439_v53, %v1438_v14  ;;  %v1443_v16 = vor.u32 %v1442_v52, %v1441_v45  ;;  %vm1198_vm6 = vweird.f32 %v5458_v32 }
 0x2cd   : > { %v1397_v29 = vsel %vm1314_vm8, %v1396_v13, %v1395_v57  ;;  %v5702_v51 = vsub.s32 %v1269_v17, %v1272_v3  ;;  %v1295_v35 = vsub.s32 4, %v1271_v40  ;;  %vm1450_vm7 = vcmp.lt.s32.totalorder %v5681_v50, 4 }
 0x2ce   : > { %v1400_v1 = vsel %vm5620_vm10, %v5460_v33, %v1397_v29  ;;  %vm5710_vm9 = vcmp.le.f32.partialorder %v1209_v58, 0.7853982  ;;  %v1446_v59 = vor.u32 %v1445_v55, %v1444_v10  ;;  %vm1447_vm11 = vcmp.lt.s32.totalorder %v5681_v50, 1 }
 0x2cf   : > { %v1452_v39 = vsel %vm1450_vm7, %v1440_v54, 2102212464  ;;  %4832 = vcosq.f32 %v1400_v1  ;;  %v1275_v34 = vsub.s32 0, %v5702_v51  ;;  %vm1448_vm8 = vcmp.lt.s32.totalorder %v5681_v50, 2 }
 0x2d0   : > { %vm1449_vm12 = vcmp.lt.s32.totalorder %v5681_v50, 3  ;;  %4834 = vsinq.f32 %v1400_v1  ;;  %v1451_v58 = vsel %vm1447_vm11, %v1431_v62, %v1434_v27  ;;  %v1456_v19 = vsel %vm1450_vm7, %v1443_v16, 920167782 }
 0x2d1   : > { %v4829_v9 = vpop.eup %4828  ;;  %v1453_v30 = vsel %vm1449_vm12, %v1437_v18, %v1452_v39  ;;  %v4515_v17 = vmin.u32 %v1275_v34, %v5702_v51  ;;  %v1296_v46 = vsel %vm1211_vm14, %v1295_v35, %v1271_v40  ;;  %v1455_v47 = vsel %vm1447_vm11, %v1434_v27, %v1437_v18 }
 0x2d2   : > { %v4831_v42 = vpop.eup %4830  ;;  %v1205_v60 = vxor.u32 2147483648, %v4829_v9  ;;  %v1457_v11 = vsel %vm1449_vm12, %v1440_v54, %v1456_v19  ;;  %v1459_v49 = vsel %vm1447_vm11, %v1437_v18, %v1440_v54  ;;  %v1460_v44 = vsel %vm1450_vm7, %v1446_v59, 1326507024 }
 0x2d3   : > { %v1202_v61 = vxor.u32 2147483648, %v4831_v42  ;;  %v1277_v53 = vclz %v4515_v17  ;;  %v1454_v45 = vsel %vm1448_vm8, %v1451_v58, %v1453_v30  ;;  %vm1407_vm10 = vcmp.eq.s32.totalorder %v5685_v56, 0 }
 0x2d4   : > { %v1206_v43 = vsel %vm1204_vm15, %v1205_v60, %v4831_v42  ;;  %v1619_v14 = vsel %vm1617_vm0, %v1205_v60, %v4831_v42  ;;  %vm1410_vm13 = vcmp.eq.s32.totalorder %v5685_v56, 2  ;;  %v1458_v52 = vsel %vm1448_vm8, %v1455_v47, %v1457_v11 }
 0x2d5   : > { %v1203_v57 = vsel %vm1201_vm1, %v4829_v9, %v1202_v61  ;;  %v1616_v40 = vsel %vm1614_vm2, %v4829_v9, %v1202_v61  ;;  %v1461_v10 = vsel %vm1449_vm12, %v1443_v16, %v1460_v44  ;;  %vm1821_vm15 = vcmp.lt.s32.totalorder %v5688_v6, 2 }
 0x2d6   : > { %v1207_v55 = vsel %vm1200_vm4, %v1203_v57, %v1206_v43  ;;  %v1620_v13 = vsel %vm1613_vm5, %v1616_v40, %v1619_v14  ;;  %v4516_v3 = vadd.s32 4294967294, %v1277_v53  ;;  %v1462_v62 = vsel %vm1448_vm8, %v1459_v49, %v1461_v10 }
 0x2d7   : > { %v1208_v27 = vsel %vm1198_vm6, nan, %v1207_v55  ;;  %v5764_v18 = vsel %vm1198_vm6, nan, %v1620_v13  ;;  %v5767_v54 = vmul.u32.u64.low %v5695_v21, %v1462_v62  ;;  %v5768_v63 = vmul.u32.u64.high %v5695_v21, %v1462_v62, %v5767_v54 }
 0x2d8   : > { %vm1404_vm0 = vweird.f32 %v5460_v33  ;;  %vm1406_vm1 = vcmp.lt.s32.totalorder %v5685_v56, 2  ;;  %vm1822_vm2 = vcmp.eq.s32.totalorder %v5688_v6, 0  ;;  %v1934_v36 = vsub.f32 0.0, %v5764_v18 }
 0x2d9   : > { %v1946_v50 = vmul.f32 0.0, %v1208_v27  ;;  %v1298_v16 = vsel %vm5710_vm9, 0, %v1296_v46  ;;  %vm1825_vm4 = vcmp.eq.s32.totalorder %v5688_v6, 2  ;;  %vm4517_vm5 = vcmp.lt.s32.totalorder %v4516_v3, 0  ;;  %v4833_v35 = vpop.eup %4832 }
 0x2da   : > { %v5778_v32 = vmul.u32.u64.low %v5695_v21, %v1458_v52  ;;  %v5779_v29 = vmul.u32.u64.high %v5695_v21, %v1458_v52, %v5778_v32  ;;  %v1940_v1 = vrot.slane %v1208_v27, 4  ;;  %v1265_v59 = vadd.s32 %v5648_v48, %v5645_v23  ;;  %v4835_v9 = vpop.eup %4834 }
 0x2db   : > { %v1280_v39 = vsel %vm4517_vm5, 0, %v4516_v3  ;;  %v1470_v34 = vmul.u32 %v5695_v21, %v1454_v45  ;;  %v1411_v58 = vxor.u32 2147483648, %v4833_v35  ;;  %v1715_v42 = vadd.s32 3, %v1298_v16 }
 0x2dc   : > { %v1281_v30 = vsub.s32 32, %v1280_v39  ;;  %v1285_v19 = vsub.s32 4294967266, %v1280_v39  ;;  %v1408_v60 = vxor.u32 2147483648, %v4835_v9  ;;  %v1282_v17 = vshll.u32 %v5702_v51, %v1280_v39 }
 0x2dd   : > { %v1950_v46 = vrot.slane %v1946_v50, 4  ;;  %v1956_v47 = vmul.f32 0.0, %v1934_v36  ;;  %v1827_v61 = vsel %vm1825_vm4, %v1411_v58, %v4835_v9  ;;  %vm1472_vm6 = vc.u32 %v5768_v63, %v5778_v32 }
 0x2de   : > { %v1283_v11 = vshrl.u32 %v1265_v59, %v1281_v30  ;;  %v1286_v49 = vadd.s32 127, %v1285_v19  ;;  %v1409_v23 = vsel %vm1407_vm10, %v4833_v35, %v1408_v60  ;;  %v1412_v48 = vsel %vm1410_vm13, %v1411_v58, %v4835_v9 }
 0x2df   : > { %v1824_v21 = vsel %vm1822_vm2, %v4833_v35, %v1408_v60  ;;  %v1473_v51 = vadd.s32 1, %v5779_v29  ;;  %v5799_v53 = vand.u32 3, %v1298_v16  ;;  %v5802_v45 = vmul.f32 0.0, %v5764_v18 }
 0x2e0   : > { %v1828_v44 = vsel %vm1821_vm15, %v1824_v21, %v1827_v61  ;;  %v1284_v43 = vor.u32 %v1283_v11, %v1282_v17  ;;  %v1287_v14 = vshll.u32 %v1286_v49, 23  ;;  %vm1417_vm7 = vcmp.lt.s32.totalorder %v5550_v25, 0 }
 0x2e1   : > { %v1474_v57 = vsel %vm1472_vm6, %v1473_v51, %v5779_v29  ;;  %v5806_v40 = vand.u32 3, %v1715_v42  ;;  %v5808_v52 = vmul.f32 %v1940_v1, %v1208_v27  ;;  %v1413_v10 = vsel %vm1406_vm1, %v1409_v23, %v1412_v48 }
 0x2e2   : > { %v5814_v6 = vsel %vm1404_vm0, nan, %v1828_v44  ;;  %v1288_v55 = vor.u32 4788187, %v1287_v14  ;;  %vm5818_vm11 = vcmp.le.f32.partialorder %v1415_v37, 0.7853982  ;;  %v1475_v3 = vadd.s32 %v1474_v57, %v1470_v34 }
 0x2e3   : > { %v1291_v62 = vcvt.s32.f32 %v1284_v43  ;;  %v5822_v54 = vadd.f32 %v1950_v46, %v1946_v50  ;;  %v5824_v16 = vrot.slane %v1956_v47, 4  ;;  %v5826_v29 = vrot.slane %v1934_v36, 4 }
 0x2e4   : > { %v1289_v56 = vand.u32 2147483647, %v1288_v55  ;;  %v1476_v35 = vadd.s32 536870912, %v1475_v3  ;;  %v1994_v59 = vmul.f32 %v1940_v1, %v5764_v18  ;;  %v1998_v39 = vadd.f32 %v5802_v45, %v1950_v46 }
 0x2e5   : > { %v1964_v9 = vsub.f32 %v1956_v47, %v5824_v16  ;;  %v1972_v37 = vmul.f32 %v5826_v29, %v1934_v36  ;;  %v1980_v58 = vsub.f32 %v1946_v50, %v5824_v16  ;;  %v5834_v34 = vmul.f32 %v5826_v29, %v1208_v27 }
 0x2e6   : > { %v1292_v30 = vmul.f32 %v1291_v62, %v1289_v56  ;;  %v1477_v19 = vshrl.u32 %v1476_v35, 30  ;;  %v1986_v42 = vmul.f32 %v1940_v1, %v1934_v36  ;;  %v1988_v60 = vadd.f32 %v1956_v47, %v1950_v46 }
 0x2e7   : > { %v1976_v17 = vadd.f32 %v1964_v9, %v5808_v52  ;;  %v1978_v61 = vadd.f32 %v1972_v37, %v5822_v54  ;;  %v2000_v11 = vadd.f32 %v1994_v59, %v1980_v58  ;;  %v2002_v49 = vadd.f32 %v1998_v39, %v5834_v34 }
 0x2e8   : > { %v1293_v23 = vxor.u32 2147483648, %v1292_v30  ;;  %v1478_v48 = vshll.u32 %v1477_v19, 30  ;;  %v1501_v21 = vsub.s32 4, %v1477_v19  ;;  %v5839_v51 = vadd.f32 %v1986_v42, %v1980_v58 }
 0x2e9   : > { %v5843_v27 = vsel %vm1404_vm0, nan, %v1413_v10  ;;  %v5846_v50 = vsub.f32 0.0, %v5814_v6  ;;  %v2016_v36 = vrot.slane %v1976_v17, 4  ;;  %v2024_v1 = vrot.slane %v1978_v61, 4 }
 0x2ea   : > { %v1294_v46 = vsel %vm1211_vm14, %v1293_v23, %v1292_v30  ;;  %v5850_v47 = vsub.s32 %v1475_v3, %v1478_v48  ;;  %v1502_v44 = vsel %vm1417_vm7, %v1501_v21, %v1477_v19  ;;  %v2038_v43 = vmul.f32 0.0, %v2000_v11 }
 0x2eb   : > { %v1297_v33 = vsel %vm5710_vm9, %v5462_v38, %v1294_v46  ;;  %v1504_v14 = vsel %vm5818_vm11, 0, %v1502_v44  ;;  %v2020_v57 = vmul.f32 %v2016_v36, %v5843_v27  ;;  %v2028_v10 = vmul.f32 %v2024_v1, %v5846_v50 }
 0x2ec   : > { %4836 = vcosq.f32 %v1297_v33  ;;  %v1481_v55 = vsub.s32 0, %v5850_v47  ;;  %v1923_v3 = vadd.s32 3, %v1504_v14  ;;  %v2040_v62 = vmul.f32 0.0, %v2002_v49 }
 0x2ed   : > { %4838 = vsinq.f32 %v1297_v33  ;;  %v2030_v56 = vsub.f32 %v2020_v57, %v2028_v10  ;;  %v2032_v35 = vmul.f32 %v2024_v1, %v5843_v27  ;;  %v2034_v59 = vmul.f32 %v2016_v36, %v5846_v50 }
 0x2ee   : > { %v4523_v41 = vmin.u32 %v1481_v55, %v5850_v47  ;;  %v2110_v39 = vmul.f32 0.0, %v1976_v17  ;;  %v5866_v9 = vsub.s32 4, %v5366_v26  ;;  %v1471_v37 = vadd.s32 %v5778_v32, %v5768_v63 }
 0x2ef   : > { %v2036_v58 = vadd.f32 %v2034_v59, %v2032_v35  ;;  %v2042_v30 = vsub.f32 %v2038_v43, %v2040_v62  ;;  %v2044_v19 = vadd.f32 %v2040_v62, %v2038_v43  ;;  %vm1307_vm14 = vcmp.eq.s32.totalorder %v5799_v53, 2 }
 0x2f0   : > { %v1483_v42 = vclz %v4523_v41  ;;  %v2112_v23 = vmul.f32 0.0, %v1978_v61  ;;  %v2120_v48 = vrot.slane %v2000_v11, 4  ;;  %v2128_v21 = vrot.slane %v2002_v49, 4 }
 0x2f1   : > { %vm1304_vm9 = vcmp.eq.s32.totalorder %v5799_v53, 0  ;;  %v5872_v36 = vand.u32 3, %v1504_v14  ;;  %vm1718_vm8 = vcmp.eq.s32.totalorder %v5806_v40, 0  ;;  %vm1721_vm12 = vcmp.eq.s32.totalorder %v5806_v40, 2 }
 0x2f2   : > { %v5876_v17 = vand.u32 3, %v1923_v3  ;;  %v2048_v63 = vrot.slane %v2042_v30, 4  ;;  %vm1303_vm10 = vcmp.lt.s32.totalorder %v5799_v53, 2  ;;  %v4524_v32 = vadd.s32 4294967294, %v1483_v42 }
 0x2f3   : > { %vm1717_vm13 = vcmp.lt.s32.totalorder %v5806_v40, 2  ;;  %v2056_v1 = vrot.slane %v2044_v19, 4  ;;  %v2114_v61 = vsub.f32 %v2110_v39, %v2112_v23  ;;  %v2116_v11 = vadd.f32 %v2112_v23, %v2110_v39 }
 0x2f4   : > { %vm1301_vm15 = vweird.f32 %v5462_v38  ;;  %v5881_v49 = vadd.f32 %v2048_v63, %v2030_v56  ;;  %v2124_v46 = vmul.f32 %v2120_v48, %v5843_v27  ;;  %v2132_v44 = vmul.f32 %v2128_v21, %v5814_v6 }
 0x2f5   : > { %v2136_v43 = vmul.f32 %v2128_v21, %v5843_v27  ;;  %vm4525_vm0 = vcmp.lt.s32.totalorder %v4524_v32, 0  ;;  %v5886_v33 = vadd.f32 %v2056_v1, %v2036_v58  ;;  %v2138_v14 = vmul.f32 %v2120_v48, %v5814_v6 }
 0x2f6   : > { %7559 = vst [vmem:[#allocation23_spill] sm:$0xff] %v5881_v49  ;;  %v5890_v57 = vadd.f32 %v1988_v60, %v5834_v34  ;;  %v1486_v10 = vsel %vm4525_vm0, 0, %v4524_v32  ;;  %v2134_v55 = vsub.f32 %v2124_v46, %v2132_v44  ;;  %v7450_v3 = vrot.slane %v5881_v49, 4  ;;  %v4837_v56 = vpop.eup %4836 }
 0x2f7   : > { %v5894_v62 = vmul.f32 0.0, %v5881_v49  ;;  %v1487_v35 = vsub.s32 32, %v1486_v10  ;;  %v1488_v59 = vshll.u32 %v5850_v47, %v1486_v10  ;;  %v1491_v41 = vsub.s32 4294967266, %v1486_v10  ;;  %v4839_v58 = vpop.eup %4838 }
 0x2f8   : > { %v2140_v39 = vadd.f32 %v2138_v14, %v2136_v43  ;;  %v1308_v30 = vxor.u32 2147483648, %v4837_v56  ;;  %v2144_v19 = vrot.slane %v2134_v55, 4  ;;  %v2212_v34 = vmul.f32 %v7450_v3, %v5843_v27 }
 0x2f9   : > { %7560 = vst [vmem:[#allocation24_spill] sm:$0xff] %v5894_v62  ;;  %v5901_v60 = vmul.f32 0.0, %v5886_v33  ;;  %v1305_v42 = vxor.u32 2147483648, %v4839_v58  ;;  %v1489_v23 = vshrl.u32 %v1471_v37, %v1487_v35  ;;  %v1492_v48 = vadd.s32 127, %v1491_v41 }
 0x2fa   : > { %v2152_v21 = vrot.slane %v2140_v39, 4  ;;  %v1309_v63 = vsel %vm1307_vm14, %v1308_v30, %v4839_v58  ;;  %v1723_v47 = vsel %vm1721_vm12, %v1308_v30, %v4839_v58  ;;  %v5907_v32 = vadd.f32 %v2144_v19, %v2114_v61 }
 0x2fb   : > { %7561 = vst [vmem:[#allocation25_spill] sm:$0xff] %v5901_v60  ;;  %v2218_v1 = vrot.slane %v5901_v60, 4  ;;  %v1306_v46 = vsel %vm1304_vm9, %v4837_v56, %v1305_v42  ;;  %v1490_v44 = vor.u32 %v1489_v23, %v1488_v59  ;;  %v1493_v43 = vshll.u32 %v1492_v48, 23 }
 0x2fc   : > { %7562 = vst [vmem:[#allocation26_spill] sm:$0xff] %v5907_v32  ;;  %v1720_v37 = vsel %vm1718_vm8, %v4837_v56, %v1305_v42  ;;  %v1310_v14 = vsel %vm1303_vm10, %v1306_v46, %v1309_v63  ;;  %v5918_v55 = vadd.f32 %v2152_v21, %v2116_v11  ;;  %v7451_v30 = vrot.slane %v5886_v33, 4 }
 0x2fd   : > { %v1724_v10 = vsel %vm1717_vm13, %v1720_v37, %v1723_v47  ;;  %v2222_v61 = vsub.f32 %v2212_v34, %v2218_v1  ;;  %v1311_v35 = vsel %vm1301_vm15, nan, %v1310_v14  ;;  %v1494_v41 = vor.u32 4788187, %v1493_v43 }
 0x2fe   : > { %7563 = vst [vmem:[#allocation27_spill] sm:$0xff] %v5918_v55  ;;  %v1497_v39 = vcvt.s32.f32 %v1490_v44  ;;  %v5924_v59 = vsel %vm1301_vm15, nan, %v1724_v10  ;;  %v5929_v53 = vrot.slane %v1311_v35, 4  ;;  %v1947_v58 = vmul.f32 0.0, %v1311_v35 }
 0x2ff   : > { %v5927_v56 = vsub.f32 0.0, %v5924_v59  ;;  %v5932_v40 = vmul.f32 0.0, %v5924_v59  ;;  %v1495_v11 = vand.u32 2147483647, %v1494_v41  ;;  %v2236_v19 = vrot.slane %v5894_v62, 4 }
 0x300   : > { %v5937_v34 = vmul.f32 0.0, %v5907_v32  ;;  %v2244_v38 = vmul.f32 %v5918_v55, %v5846_v50  ;;  %v5942_v42 = vmul.f32 0.0, %v5918_v55  ;;  %v2250_v23 = vmul.f32 %v5907_v32, %v5846_v50 }
 0x301   : > { %v5947_v48 = vmul.f32 %v5929_v53, %v1311_v35  ;;  %v1498_v21 = vmul.f32 %v1497_v39, %v1495_v11  ;;  %v2230_v63 = vmul.f32 %v7451_v30, %v5843_v27  ;;  %v5952_v47 = vrot.slane %v1947_v58, 4 }
 0x302   : > { %7564 = vst [vmem:[#allocation28_spill] sm:$0xff] %v5937_v34  ;;  %7565 = vst [vmem:[#allocation29_spill] sm:$0xff] %v5942_v42  ;;  %v5955_v1 = vmul.f32 0.0, %v5927_v56  ;;  %v2246_v46 = vsub.f32 %v5937_v34, %v2244_v38  ;;  %v2252_v44 = vadd.f32 %v2250_v23, %v5942_v42  ;;  %v5960_v43 = vrot.slane %v5927_v56, 4 }
 0x303   : > { %v1995_v37 = vmul.f32 %v5929_v53, %v5924_v59  ;;  %v1499_v14 = vxor.u32 2147483648, %v1498_v21  ;;  %v2240_v10 = vadd.f32 %v2236_v19, %v2230_v63  ;;  %v5965_v41 = vadd.f32 %v5952_v47, %v1947_v58 }
 0x304   : > { %v5968_v39 = vrot.slane %v5955_v1, 4  ;;  %v5970_v11 = vadd.f32 %v2246_v46, %v2222_v61  ;;  %v1973_v38 = vmul.f32 %v5960_v43, %v5927_v56  ;;  %v5975_v23 = vmul.f32 %v5960_v43, %v1311_v35 }
 0x305   : > { %v1999_v24 = vadd.f32 %v5932_v40, %v5952_v47  ;;  %v1500_v19 = vsel %vm1417_vm7, %v1499_v14, %v1498_v21  ;;  %v5981_v63 = vadd.f32 %v2252_v44, %v2240_v10  ;;  %v2004_v8 = vsub.f32 %v5802_v45, %v5824_v16 }
 0x306   : > { %7566 = vst [vmem:[#allocation30_spill] sm:$0xff] %v5970_v11  ;;  %v1965_v3 = vsub.f32 %v5955_v1, %v5968_v39  ;;  %v5986_v61 = vsub.f32 %v1947_v58, %v5968_v39  ;;  %v1503_v46 = vsel %vm5818_vm11, %v5550_v25, %v1500_v19  ;;  %v5993_v35 = vrot.slane %v5970_v11, %v5866_v9 }
 0x307   : > { %7567 = vst [vmem:[#allocation31_spill] sm:$0xff] %v5981_v63  ;;  %v5996_v30 = vadd.f32 %v1973_v38, %v5965_v41  ;;  %v5999_v21 = vadd.f32 %v1999_v24, %v5975_v23  ;;  %4840 = vcosq.f32 %v1503_v46  ;;  %v6003_v44 = vrot.slane %v5981_v63, %v5866_v9 }
 0x308   : > { %v6006_v58 = vadd.f32 %v1965_v3, %v5947_v48  ;;  %v6009_v13 = vadd.f32 %v1995_v37, %v5986_v61  ;;  %4842 = vsinq.f32 %v1503_v46  ;;  %v6013_v14 = vmul.f32 %v5993_v35, %v5398_v4 }
 0x309   : > { %v2041_v24 = vmul.f32 0.0, %v5999_v21  ;;  %v6019_v38 = vmul.f32 %v6003_v44, %v5398_v4  ;;  %v6027_v46 = vmul.f32 0.0, %v5996_v30  ;;  %vm1513_vm1 = vcmp.eq.s32.totalorder %v5872_v36, 2 }
 0x30a   : > { %v2039_v3 = vmul.f32 0.0, %v6009_v13  ;;  %v6024_v37 = vmul.f32 0.0, %v6006_v58  ;;  %vm1929_vm2 = vcmp.eq.s32.totalorder %v5876_v17, 2  ;;  %v2006_v11 = vmul.f32 %v5826_v29, %v5764_v18 }
 0x30b   : > { %v2064_v63 = vrot.slane %v5839_v51, 4  ;;  %vm1510_vm4 = vcmp.eq.s32.totalorder %v5872_v36, 0  ;;  %vm1926_vm5 = vcmp.eq.s32.totalorder %v5876_v17, 0  ;;  %v2010_v16 = vadd.f32 %v2004_v8, %v5808_v52 }
 0x30c   : > { %v2043_v4 = vsub.f32 %v2039_v3, %v2041_v24  ;;  %v6035_v19 = vadd.f32 %v2041_v24, %v2039_v3  ;;  %v6046_v45 = vadd.f32 %v6027_v46, %v6024_v37  ;;  %v2072_v24 = vrot.slane %v5890_v57, 4 }
 0x30d   : > { %vm1509_vm6 = vcmp.lt.s32.totalorder %v5872_v36, 2  ;;  %vm1925_vm7 = vcmp.lt.s32.totalorder %v5876_v17, 2  ;;  %v2012_v3 = vadd.f32 %v2006_v11, %v5822_v54  ;;  %v2068_v10 = vmul.f32 %v2064_v63, %v5843_v27 }
 0x30e   : > { %v6052_v18 = vrot.slane %v2043_v4, 4  ;;  %vm1507_vm11 = vweird.f32 %v5550_v25  ;;  %v2076_v5 = vmul.f32 %v2072_v24, %v5846_v50  ;;  %v2080_v8 = vmul.f32 %v2072_v24, %v5843_v27 }
 0x30f   : > { %v2082_v52 = vmul.f32 %v2064_v63, %v5846_v50  ;;  %v2086_v2 = vmul.f32 0.0, %v2010_v16  ;;  %v2088_v26 = vmul.f32 0.0, %v2012_v3  ;;  %v2158_v34 = vmul.f32 0.0, %v5839_v51 }
 0x310   : > { %v2160_v4 = vmul.f32 0.0, %v5890_v57  ;;  %v2168_v42 = vrot.slane %v2010_v16, 4  ;;  %v2078_v29 = vsub.f32 %v2068_v10, %v2076_v5  ;;  %v2176_v54 = vrot.slane %v2012_v3, 4 }
 0x311   : > { %v2084_v55 = vadd.f32 %v2082_v52, %v2080_v8  ;;  %v6065_v11 = vmul.f32 %v5929_v53, %v5927_v56  ;;  %v4841_v60 = vpop.eup %4840  ;;  %v2090_v32 = vsub.f32 %v2086_v2, %v2088_v26  ;;  %v2092_v62 = vadd.f32 %v2088_v26, %v2086_v2 }
 0x312   : > { %v2162_v24 = vsub.f32 %v2158_v34, %v2160_v4  ;;  %v2164_v31 = vadd.f32 %v2160_v4, %v2158_v34  ;;  %v4843_v63 = vpop.eup %4842  ;;  %v1514_v15 = vxor.u32 2147483648, %v4841_v60  ;;  %v2172_v49 = vmul.f32 %v2168_v42, %v5843_v27 }
 0x313   : > { %v2180_v51 = vmul.f32 %v2176_v54, %v5814_v6  ;;  %v2184_v57 = vmul.f32 %v2176_v54, %v5843_v27  ;;  %v1511_v5 = vxor.u32 2147483648, %v4843_v63  ;;  %v2096_v10 = vrot.slane %v2090_v32, 4 }
 0x314   : > { %v2104_v16 = vrot.slane %v2092_v62, 4  ;;  %v2186_v3 = vmul.f32 %v2168_v42, %v5814_v6  ;;  %v1515_v56 = vsel %vm1513_vm1, %v1514_v15, %v4843_v63  ;;  %v1931_v26 = vsel %vm1929_vm2, %v1514_v15, %v4843_v63 }
 0x315   : > { %v2182_v2 = vsub.f32 %v2172_v49, %v2180_v51  ;;  %v6077_v53 = vadd.f32 %v5955_v1, %v5952_v47  ;;  %v1512_v34 = vsel %vm1510_vm4, %v4841_v60, %v1511_v5  ;;  %v1928_v32 = vsel %vm1926_vm5, %v4841_v60, %v1511_v5 }
 0x316   : > { %v6083_v62 = vadd.f32 %v2096_v10, %v2078_v29  ;;  %v6085_v6 = vadd.f32 %v2104_v16, %v2084_v55  ;;  %v1516_v42 = vsel %vm1509_vm6, %v1512_v34, %v1515_v56  ;;  %v1932_v15 = vsel %vm1925_vm7, %v1928_v32, %v1931_v26 }
 0x317   : > { %v2188_v49 = vadd.f32 %v2186_v3, %v2184_v57  ;;  %v2192_v8 = vrot.slane %v2182_v2, 4  ;;  %v6093_v47 = vsel %vm1507_vm11, nan, %v1516_v42  ;;  %v6097_v1 = vsel %vm1507_vm11, nan, %v1932_v15 }
 0x318   : > { %v7474_v60 = vrot.slane %v6083_v62, 4  ;;  %v6101_v55 = vmul.f32 0.0, %v6085_v6  ;;  %v6104_v36 = vsub.f32 0.0, %v6097_v1  ;;  %v7568_v17 = vrot.slane %v6006_v58, 4 }
 0x319   : > { %v7569_v52 = vrot.slane %v5996_v30, 4  ;;  %v7570_v25 = vrot.slane %v6009_v13, 4  ;;  %v7571_v63 = vrot.slane %v5999_v21, 4  ;;  %v6124_v3 = vadd.f32 %v2192_v8, %v2162_v24 }
 0x31a   : > { %v2021_v29 = vmul.f32 %v7568_v17, %v6093_v47  ;;  %v7575_v2 = vmov %v7568_v17  ;;  %v2200_v32 = vrot.slane %v2188_v49, 4  ;;  %v7472_v42 = vrot.slane %v6085_v6, 4 }
 0x31b   : > { %v2033_v4 = vmul.f32 %v7569_v52, %v6093_v47  ;;  %v2125_v54 = vmul.f32 %v7570_v25, %v6093_v47  ;;  %v2133_v51 = vmul.f32 %v7571_v63, %v6097_v1  ;;  %v7572_v57 = vmov %v7571_v63 }
 0x31c   : > { %v2137_v5 = vmul.f32 %v7572_v57, %v6093_v47  ;;  %v7573_v10 = vmov %v7570_v25  ;;  %v7574_v56 = vmov %v7569_v52  ;;  %v2035_v34 = vmul.f32 %v7575_v2, %v6104_v36 }
 0x31d   : > { %v2139_v16 = vmul.f32 %v7573_v10, %v6097_v1  ;;  %v2029_v26 = vmul.f32 %v7574_v56, %v6104_v36  ;;  %v2135_v15 = vsub.f32 %v2125_v54, %v2133_v51  ;;  %v6134_v17 = vmul.f32 0.0, %v6083_v62 }
 0x31e   : > { %v6137_v13 = vmul.f32 0.0, %v6124_v3  ;;  %v2037_v8 = vadd.f32 %v2035_v34, %v2033_v4  ;;  %v6139_v52 = vadd.f32 %v2200_v32, %v2164_v31  ;;  %v2354_v30 = vmul.f32 %v7472_v42, %v5846_v50 }
 0x31f   : > { %v2141_v21 = vadd.f32 %v2139_v16, %v2137_v5  ;;  %v2031_v24 = vsub.f32 %v2021_v29, %v2029_v26  ;;  %v2145_v58 = vrot.slane %v2135_v15, 4  ;;  %v2364_v25 = vmul.f32 %v7474_v60, %v5846_v50 }
 0x320   : > { %v2374_v54 = vmul.f32 %v6124_v3, %v5843_v27  ;;  %v7576_v29 = vrot.slane %v6035_v19, 4  ;;  %v6157_v4 = vmul.f32 0.0, %v6139_v52  ;;  %v2358_v51 = vrot.slane %v2354_v30, 4 }
 0x321   : > { %v2153_v49 = vrot.slane %v2141_v21, 4  ;;  %v6150_v63 = vadd.f32 %v6052_v18, %v2031_v24  ;;  %v7577_v57 = vsub.f32 %v6024_v37, %v6027_v46  ;;  %v2368_v16 = vrot.slane %v2364_v25, 4 }
 0x322   : > { %v6154_v31 = vadd.f32 %v7576_v29, %v2037_v8  ;;  %v2378_v18 = vmul.f32 %v6139_v52, %v5843_v27  ;;  %v1991_v42 = vadd.f32 %v6065_v11, %v5986_v61 }
 0x323   : > { %v6162_v5 = vadd.f32 %v2145_v58, %v7577_v57  ;;  %v6165_v10 = vadd.f32 %v2153_v49, %v6046_v45  ;;  %v7471_v19 = vrot.slane %v6150_v63, 4  ;;  %v6175_v2 = vmul.f32 0.0, %v6150_v63 }
 0x324   : > { %v6171_v56 = vmul.f32 0.0, %v6154_v31  ;;  %v7473_v26 = vrot.slane %v6154_v31, 4  ;;  %v2362_v58 = vsub.f32 %v6134_v17, %v2358_v51  ;;  %v2372_v49 = vadd.f32 %v2368_v16, %v6101_v55 }
 0x325   : > { %v6178_v37 = vmul.f32 0.0, %v6162_v5  ;;  %v2245_v46 = vmul.f32 %v6165_v10, %v6104_v36  ;;  %v6183_v45 = vmul.f32 0.0, %v6165_v10  ;;  %v2251_v34 = vmul.f32 %v6162_v5, %v6104_v36 }
 0x326   : > { %v2213_v32 = vmul.f32 %v7471_v19, %v6093_v47  ;;  %v2219_v15 = vrot.slane %v6171_v56, 4  ;;  %v2231_v21 = vmul.f32 %v7473_v26, %v6093_v47  ;;  %v2237_v24 = vrot.slane %v6175_v2, 4 }
 0x327   : > { %v2247_v8 = vsub.f32 %v6178_v37, %v2245_v46  ;;  %v2253_v30 = vadd.f32 %v2251_v34, %v6183_v45  ;;  %v2376_v57 = vsub.f32 %v2374_v54, %v6157_v4  ;;  %v2380_v19 = vadd.f32 %v2378_v18, %v6137_v13 }
 0x328   : > { %v2223_v25 = vsub.f32 %v2213_v32, %v2219_v15  ;;  %v2241_v29 = vadd.f32 %v2237_v24, %v2231_v21  ;;  %v1993_v26 = vadd.f32 %v6077_v53, %v5975_v23  ;;  %v2005_v46 = vsub.f32 %v5932_v40, %v5968_v39 }
 0x329   : > { %v2007_v51 = vmul.f32 %v5960_v43, %v5924_v59  ;;  %v2384_v32 = vrot.slane %v2376_v57, 4  ;;  %v2392_v54 = vrot.slane %v2380_v19, 4  ;;  %v2065_v61 = vrot.slane %v1991_v42, 4 }
 0x32a   : > { %v6209_v34 = vadd.f32 %v2247_v8, %v2223_v25  ;;  %v6211_v16 = vadd.f32 %v2253_v30, %v2241_v29  ;;  %v2011_v18 = vadd.f32 %v2005_v46, %v5947_v48  ;;  %v2073_v11 = vrot.slane %v1993_v26, 4 }
 0x32b   : > { %v2013_v15 = vadd.f32 %v2007_v51, %v5965_v41  ;;  %v6219_v39 = vadd.f32 %v2384_v32, %v2362_v58  ;;  %v6221_v59 = vadd.f32 %v2392_v54, %v2372_v49  ;;  %v2069_v43 = vmul.f32 %v2065_v61, %v6093_v47 }
 0x32c   : > { %7578 = vst [vmem:[#allocation32_spill] sm:$0xff] %v6209_v34  ;;  %7579 = vst [vmem:[#allocation33_spill] sm:$0xff] %v6211_v16  ;;  %v2564_v23 = vrot.slane %v6209_v34, %v5866_v9  ;;  %v2588_v40 = vrot.slane %v6211_v16, %v5866_v9  ;;  %v2077_v53 = vmul.f32 %v2073_v11, %v6104_v36  ;;  %v2087_v49 = vmul.f32 0.0, %v2011_v18 }
 0x32d   : > { %7580 = vst [vmem:[#allocation34_spill] sm:$0xff] %v6219_v39  ;;  %7581 = vst [vmem:[#allocation35_spill] sm:$0xff] %v6221_v59  ;;  %v2081_v48 = vmul.f32 %v2073_v11, %v6093_v47  ;;  %v2083_v41 = vmul.f32 %v2065_v61, %v6104_v36  ;;  %v2552_v24 = vrot.slane %v6219_v39, %v5447_v0  ;;  %v2089_v25 = vmul.f32 0.0, %v2013_v15 }
 0x32e   : > { %v2767_v19 = vmul.f32 %v2564_v23, %v5402_v7  ;;  %v2779_v21 = vmul.f32 %v2588_v40, %v5402_v7  ;;  %v2576_v8 = vrot.slane %v6221_v59, %v5447_v0  ;;  %v2079_v30 = vsub.f32 %v2069_v43, %v2077_v53 }
 0x32f   : > { %v2085_v58 = vadd.f32 %v2083_v41, %v2081_v48  ;;  %v2768_v29 = vmul.f32 %v2552_v24, %v5406_v12  ;;  %v2159_v46 = vmul.f32 0.0, %v1991_v42  ;;  %v2161_v51 = vmul.f32 0.0, %v1993_v26 }
 0x330   : > { %v2780_v57 = vmul.f32 %v2576_v8, %v5406_v12  ;;  %v2091_v32 = vsub.f32 %v2087_v49, %v2089_v25  ;;  %v2093_v54 = vadd.f32 %v2089_v25, %v2087_v49  ;;  %v2169_v61 = vrot.slane %v2011_v18, 4 }
 0x331   : > { %v2177_v7 = vrot.slane %v2013_v15, 4  ;;  %v2163_v11 = vsub.f32 %v2159_v46, %v2161_v51  ;;  %v2165_v60 = vadd.f32 %v2161_v51, %v2159_v46  ;;  %v2597_v34 = vmul.f32 -1.0, %v6003_v44 }
 0x332   : > { %v2770_v43 = vmul.f32 %v5993_v35, %v5414_v20  ;;  %v2097_v53 = vrot.slane %v2091_v32, 4  ;;  %v2105_v48 = vrot.slane %v2093_v54, 4  ;;  %v2173_v41 = vmul.f32 %v2169_v61, %v6093_v47 }
 0x333   : > { %v2181_v16 = vmul.f32 %v2177_v7, %v6097_v1  ;;  %v2185_v12 = vmul.f32 %v2177_v7, %v6093_v47  ;;  %v2187_v42 = vmul.f32 %v2169_v61, %v6097_v1  ;;  %v2774_v26 = vmul.f32 %v2597_v34, %v5414_v20 }
 0x334   : > { %v6244_v18 = vadd.f32 %v6019_v38, %v2770_v43  ;;  %v2101_v15 = vadd.f32 %v2097_v53, %v2079_v30  ;;  %v2109_v44 = vadd.f32 %v2105_v48, %v2085_v58  ;;  %v2598_v25 = vmul.f32 -1.0, %v2588_v40 }
 0x335   : > { %v2183_v49 = vsub.f32 %v2173_v41, %v2181_v16  ;;  %v2189_v35 = vadd.f32 %v2187_v42, %v2185_v12  ;;  %v6247_v46 = vadd.f32 %v2774_v26, %v6013_v14  ;;  %v2771_v51 = vmul.f32 %v2564_v23, %v5416_v22  ;;  %v2743_v41 = vpop.f32.mrb[4].mxu1 }
 0x336   : > { %v2599_v32 = vmul.f32 -1.0, %v2576_v8  ;;  %v2261_v7 = vrot.slane %v2101_v15, 4  ;;  %v2267_v39 = vmul.f32 0.0, %v2109_v44  ;;  %v2279_v1 = vrot.slane %v2109_v44, 4 }
 0x337   : > { %v2193_v54 = vrot.slane %v2183_v49, 4  ;;  %v2201_v61 = vrot.slane %v2189_v35, 4  ;;  %v2285_v20 = vmul.f32 0.0, %v2101_v15  ;;  %v2775_v38 = vmul.f32 %v2598_v25, %v5416_v22 }
 0x338   : > { %v6251_v34 = vadd.f32 %v2779_v21, %v2771_v51  ;;  %v2355_v16 = vmul.f32 %v2279_v1, %v6104_v36  ;;  %v2365_v40 = vmul.f32 %v2261_v7, %v6104_v36  ;;  %v2772_v14 = vmul.f32 %v2552_v24, %v5418_v28 }
 0x339   : > { %v2197_v30 = vadd.f32 %v2193_v54, %v2163_v11  ;;  %v2205_v58 = vadd.f32 %v2201_v61, %v2165_v60  ;;  %v6256_v23 = vadd.f32 %v2775_v38, %v2767_v19  ;;  %v2776_v8 = vmul.f32 %v2599_v32, %v5418_v28  ;;  %v6268_v19 = vpop.f32.mrb[5].mxu1 }
 0x33a   : > { %v7582_v43 = vrot.slane %v6083_v62, 4  ;;  %v2359_v22 = vrot.slane %v2355_v16, 4  ;;  %v2369_v21 = vrot.slane %v2365_v40, 4  ;;  %v6266_v60 = vadd.f32 %v2780_v57, %v2772_v14  ;;  %v6280_v61 = vpop.f32.mrb[6].mxu1 }
 0x33b   : > { %v2295_v48 = vmul.f32 0.0, %v2197_v30  ;;  %v2375_v11 = vmul.f32 %v2197_v30, %v6093_v47  ;;  %v2301_v12 = vmul.f32 0.0, %v2205_v58  ;;  %v2379_v42 = vmul.f32 %v2205_v58, %v6093_v47  ;;  %v6283_v40 = vpop.f32.mrb[7].mxu1 }
 0x33c   : > { %v2264_v53 = vmul.f32 %v7582_v43, %v5843_v27  ;;  %v6264_v26 = vadd.f32 %v2776_v8, %v2768_v29  ;;  %v2363_v28 = vsub.f32 %v2285_v20, %v2359_v22  ;;  %v2373_v24 = vadd.f32 %v2369_v21, %v2267_v39 }
 0x33d   : > { %v2270_v62 = vrot.slane %v6101_v55, 4  ;;  %v7583_v15 = vrot.slane %v6085_v6, 4  ;;  %v2377_v49 = vsub.f32 %v2375_v11, %v2301_v12  ;;  %v2381_v25 = vadd.f32 %v2379_v42, %v2295_v48  ;;  %v2755_v11 = vpop.f32.mrb[8].mxu1 }
 0x33e   : > { %v2288_v35 = vrot.slane %v6134_v17, 4  ;;  %v2296_v29 = vmul.f32 %v6139_v52, %v5846_v50  ;;  %v2302_v57 = vmul.f32 %v6124_v3, %v5846_v50  ;;  %v2265_v32 = vmul.f32 %v2261_v7, %v6093_v47 }
 0x33f   : > { %v2282_v44 = vmul.f32 %v7583_v15, %v5843_v27  ;;  %v2274_v51 = vsub.f32 %v2264_v53, %v2270_v62  ;;  %v2271_v54 = vrot.slane %v2267_v39, 4  ;;  %v2385_v55 = vrot.slane %v2377_v49, 4  ;;  %v7589_v49 = vld [vmem:[#allocation20_spill] sm:$0xff] }
 0x340   : > { %v2393_v38 = vrot.slane %v2381_v25, 4  ;;  %v2298_v16 = vsub.f32 %v6137_v13, %v2296_v29  ;;  %v2304_v17 = vadd.f32 %v2302_v57, %v6157_v4  ;;  %v2283_v52 = vmul.f32 %v2279_v1, %v6093_v47 }
 0x341   : > { %v2292_v6 = vadd.f32 %v2288_v35, %v2282_v44  ;;  %v2275_v14 = vsub.f32 %v2265_v32, %v2271_v54  ;;  %v2289_v8 = vrot.slane %v2285_v20, 4  ;;  %v6287_v43 = vadd.f32 %v2385_v55, %v2363_v28  ;;  %v2757_v28 = vpop.f32.mrb[9].mxu1 }
 0x342   : > { %v6289_v3 = vadd.f32 %v2393_v38, %v2373_v24  ;;  %v6291_v39 = vadd.f32 %v2298_v16, %v2274_v51  ;;  %v2297_v7 = vmul.f32 %v2205_v58, %v6104_v36  ;;  %v2303_v13 = vmul.f32 %v2197_v30, %v6104_v36  ;;  %v7590_v51 = vld [vmem:[#allocation21_spill] sm:$0xff]  ;;  %v2761_v38 = vpop.f32.mrb[10].mxu1  ;;  %v7591_v16 = vld [vmem:[#allocation24_spill] sm:$0xff] }
 0x343   : > { %7584 = vst [vmem:[#allocation36_spill] sm:$0xff] %v6287_v43  ;;  %v6294_v53 = vadd.f32 %v2304_v17, %v2292_v6  ;;  %v2293_v22 = vadd.f32 %v2289_v8, %v2283_v52  ;;  %v7586_v4 = vrot.slane %v5886_v33, 4  ;;  %v2556_v1 = vrot.slane %v6287_v43, %v5447_v0  ;;  %v7587_v33 = vld [vmem:[#allocation23_spill] sm:$0xff]  ;;  %v6322_v52 = vpop.f32.mrb[11].mxu1 }
 0x344   : > { %7585 = vst [vmem:[#allocation37_spill] sm:$0xff] %v6289_v3  ;;  %v2580_v20 = vrot.slane %v6289_v3, %v5447_v0  ;;  %v2616_v42 = vrot.slane %v6291_v39, %v5866_v9  ;;  %v2299_v58 = vsub.f32 %v2295_v48, %v2297_v7  ;;  %v2305_v30 = vadd.f32 %v2303_v13, %v2301_v12 }
 0x345   : > { %v2310_v21 = vmul.f32 %v7586_v4, %v5846_v50  ;;  %v2640_v24 = vrot.slane %v6294_v53, %v5866_v9  ;;  %v7588_v15 = vrot.slane %v7587_v33, 4  ;;  %v2769_v25 = vmul.f32 %v2556_v1, %v7589_v49  ;;  %v7593_v4 = vld [vmem:[#allocation25_spill] sm:$0xff] }
 0x346   : > { %v2781_v35 = vmul.f32 %v2580_v20, %v7589_v49  ;;  %v2600_v29 = vmul.f32 -1.0, %v2580_v20  ;;  %v2773_v57 = vmul.f32 %v2556_v1, %v7590_v51  ;;  %v2790_v32 = vmul.f32 %v2743_v41, %v2616_v42  ;;  %v7594_v1 = vld [vmem:[#allocation27_spill] sm:$0xff]  ;;  %v7596_v33 = vld [vmem:[#allocation29_spill] sm:$0xff]  ;;  %v7598_v49 = vld [vmem:[#allocation28_spill] sm:$0xff] }
 0x347   : > { %v2314_v62 = vrot.slane %v2310_v21, 4  ;;  %v2320_v44 = vmul.f32 %v7588_v15, %v5846_v50  ;;  %v2810_v54 = vmul.f32 %v2743_v41, %v2640_v24  ;;  %v6314_v48 = vadd.f32 %v2299_v58, %v2275_v14  ;;  %v7592_v14 = vld [vmem:[#allocation26_spill] sm:$0xff] }
 0x348   : > { %v6316_v55 = vadd.f32 %v2305_v30, %v2293_v22  ;;  %v2777_v12 = vmul.f32 %v2600_v29, %v7590_v51  ;;  %v6319_v6 = vadd.f32 %v2781_v35, %v2773_v57  ;;  %v2798_v8 = vadd.f32 %v2790_v32, %v6247_v46 }
 0x349   : > { %v2318_v50 = vsub.f32 %v7591_v16, %v2314_v62  ;;  %v2324_v17 = vrot.slane %v2320_v44, 4  ;;  %v2620_v7 = vrot.slane %v6314_v48, %v5866_v9  ;;  %v2330_v22 = vmul.f32 %v7592_v14, %v5843_v27 }
 0x34a   : > { %v2644_v41 = vrot.slane %v6316_v55, %v5866_v9  ;;  %v2785_v13 = vadd.f32 %v2777_v12, %v2769_v25  ;;  %v2334_v20 = vmul.f32 %v7594_v1, %v5843_v27  ;;  %v7595_v58 = vrot.slane %v6154_v31, 4 }
 0x34b   : > { %v2328_v21 = vadd.f32 %v2324_v17, %v7593_v4  ;;  %v2791_v46 = vmul.f32 %v6268_v19, %v2620_v7  ;;  %v2332_v15 = vsub.f32 %v2330_v22, %v7596_v33  ;;  %v7597_v9 = vrot.slane %v6150_v63, 4 }
 0x34c   : > { %v2311_v30 = vmul.f32 %v7595_v58, %v6104_v36  ;;  %v2811_v62 = vmul.f32 %v6268_v19, %v2644_v41  ;;  %v2336_v25 = vadd.f32 %v2334_v20, %v7598_v49  ;;  %v2331_v27 = vmul.f32 %v6162_v5, %v6093_v47 }
 0x34d   : > { %v2321_v44 = vmul.f32 %v7597_v9, %v6104_v36  ;;  %v2335_v31 = vmul.f32 %v6165_v10, %v6093_v47  ;;  %v2799_v29 = vadd.f32 %v2791_v46, %v6256_v23  ;;  %v2340_v51 = vrot.slane %v2332_v15, 4  ;;  %v7599_v9 = vld [vmem:[#allocation17_spill] sm:$0xff] }
 0x34e   : > { %v2315_v35 = vrot.slane %v2311_v30, 4  ;;  %v2653_v19 = vmul.f32 -1.0, %v2640_v24  ;;  %v2348_v32 = vrot.slane %v2336_v25, 4  ;;  %v2333_v63 = vsub.f32 %v2331_v27, %v6183_v45 }
 0x34f   : > { %v2325_v57 = vrot.slane %v2321_v44, 4  ;;  %v2337_v36 = vadd.f32 %v2335_v31, %v6178_v37  ;;  %v6352_v16 = vadd.f32 %v2340_v51, %v2318_v50  ;;  %v2794_v5 = vmul.f32 %v2755_v11, %v2616_v42 }
 0x350   : > { %v2319_v12 = vsub.f32 %v6175_v2, %v2315_v35  ;;  %v2806_v14 = vmul.f32 %v2755_v11, %v2653_v19  ;;  %v6355_v22 = vadd.f32 %v2348_v32, %v2328_v21  ;;  %v2341_v47 = vrot.slane %v2333_v63, 4  ;;  %v7604_v63 = vld [vmem:[#allocation31_spill] sm:$0xff] }
 0x351   : > { %v2329_v17 = vadd.f32 %v2325_v57, %v6171_v56  ;;  %v2349_v10 = vrot.slane %v2337_v36, 4  ;;  %v2654_v23 = vmul.f32 -1.0, %v2644_v41  ;;  %v2608_v24 = vrot.slane %v6352_v16, %v5447_v0  ;;  %v7603_v57 = vld [vmem:[#allocation34_spill] sm:$0xff] }
 0x352   : > { %v2802_v2 = vadd.f32 %v2794_v5, %v6244_v18  ;;  %v6360_v4 = vadd.f32 %v2806_v14, %v2798_v8  ;;  %v2795_v45 = vmul.f32 %v2757_v28, %v2620_v7  ;;  %v2632_v37 = vrot.slane %v6355_v22, %v5447_v0  ;;  %v7605_v5 = vld [vmem:[#allocation30_spill] sm:$0xff] }
 0x353   : > { %v6364_v50 = vadd.f32 %v2341_v47, %v2319_v12  ;;  %v6366_v56 = vadd.f32 %v2349_v10, %v2329_v17  ;;  %v2807_v11 = vmul.f32 %v2757_v28, %v2654_v23  ;;  %v2792_v42 = vmul.f32 %v6280_v61, %v2608_v24 }
 0x354   : > { %v6369_v21 = vadd.f32 %v2810_v54, %v2802_v2  ;;  %v2803_v41 = vadd.f32 %v2795_v45, %v6251_v34  ;;  %v2796_v1 = vmul.f32 %v2761_v38, %v2608_v24  ;;  %v2812_v18 = vmul.f32 %v6280_v61, %v2632_v37  ;;  %v7606_v45 = vld [vmem:[#allocation33_spill] sm:$0xff] }
 0x355   : > { %v2612_v8 = vrot.slane %v6364_v50, %v5447_v0  ;;  %v2636_v7 = vrot.slane %v6366_v56, %v5447_v0  ;;  %v6377_v20 = vadd.f32 %v2807_v11, %v2799_v29  ;;  %v2800_v58 = vadd.f32 %v2792_v42, %v6264_v26 }
 0x356   : > { %v6380_v28 = vadd.f32 %v2811_v62, %v2803_v41  ;;  %v2655_v30 = vmul.f32 -1.0, %v2632_v37  ;;  %v2804_v54 = vadd.f32 %v2796_v1, %v6266_v60  ;;  %v2401_v44 = vadd.s32 16, %v7599_v9 }
 0x357   : > { %v2793_v34 = vmul.f32 %v6283_v40, %v2612_v8  ;;  %v2656_v46 = vmul.f32 -1.0, %v2636_v7  ;;  %v2797_v61 = vmul.f32 %v6322_v52, %v2612_v8  ;;  %v6389_v0 = vand.u32 15, %v7599_v9  ;;  %v7609_v8 = vld [vmem:[#allocation32_spill] sm:$0xff] }
 0x358   : > { %v2808_v33 = vmul.f32 %v2761_v38, %v2655_v30  ;;  %v6385_v15 = vadd.f32 %v2812_v18, %v2804_v54  ;;  %v2813_v26 = vmul.f32 %v6283_v40, %v2636_v7  ;;  %v6398_v38 = vand.u32 15, %v2401_v44  ;;  %v7600_v40 = vld [vmem:[#allocation22_spill] sm:$0xff] }
 0x359   : > { %v2801_v49 = vadd.f32 %v2793_v34, %v2785_v13  ;;  %v2805_v62 = vadd.f32 %v2797_v61, %v6319_v6  ;;  %v2809_v60 = vmul.f32 %v6322_v52, %v2656_v46  ;;  %v2822_v27 = vand.u32 4, %v6389_v0  ;;  %v4553_v34 = vld [vmem:[%s7549_s9 + $0x20] sm:$0xff] }
 0x35a   : > { %v6394_v25 = vadd.f32 %v2808_v33, %v2800_v58  ;;  %v4643_v35 = vpack.c.bf16 %v6385_v15, %v6369_v21  ;;  %v6406_v13 = vsub.s32 5, %v7599_v9  ;;  %v6410_v6 = vrot.slane %v6221_v59, %v7600_v40 }
 0x35b   : > { %v6401_v31 = vadd.f32 %v2809_v60, %v2801_v49  ;;  %v6403_v29 = vadd.f32 %v2813_v26, %v2805_v62  ;;  %vm6414_vm14 = vcmp.gt.s32.totalorder %v2822_v27, 0  ;;  %v6420_v19 = vrot.slane %v7603_v57, %v7600_v40 }
 0x35c   : > { %v4639_v52 = vpack.c.bf16 %v6394_v25, %v6360_v4  ;;  %v6428_v36 = vrot.slane %v7604_v63, %v6406_v13  ;;  %v2824_v17 = vand.u32 4, %v6398_v38  ;;  %v6433_v14 = vrot.slane %v7605_v5, %v6406_v13 }
 0x35d   : > { %v4637_v32 = vpack.c.bf16 %v6401_v31, %v6377_v20  ;;  %v4641_v12 = vpack.c.bf16 %v6403_v29, %v6380_v28  ;;  %v6445_v24 = vrot.slane %v6287_v43, %v7600_v40  ;;  %v6449_v2 = vrot.slane %v6289_v3, %v7600_v40 }
 0x35e   : > { %v2878_v47 = vsel %vm6414_vm14, %v6410_v6, %v6428_v36  ;;  %v2854_v10 = vsel %vm6414_vm14, %v6420_v19, %v6433_v14  ;;  %v6453_v37 = vrot.slane %v7606_v45, %v6406_v13  ;;  %v6457_v11 = vrot.slane %v6364_v50, %v7600_v40 }
 0x35f   : > { %4638 = vmatprep.subr.bf16.mxu0 %v4637_v32  ;;  %v2886_v23 = vmul.f32 -1.0, %v2878_v47  ;;  %vm6459_vm9 = vcmp.gt.s32.totalorder %v2824_v17, 0  ;;  %v3056_v41 = vmul.f32 %v2854_v10, %v6360_v4  ;;  %v6467_v18 = vrot.slane %v6314_v48, %v6406_v13  ;;  %v4554_v10 = vld [vmem:[%s7549_s9 + $0x28] sm:$0xff] }
 0x360   : > { %4640 = vmatpush1.bf16.msra.mxu0 %v4639_v52  ;;  %v2853_v7 = vrot.slane %v7609_v8, %v6406_v13  ;;  %v2879_v58 = vsel %vm6414_vm14, %v6449_v2, %v6453_v37  ;;  %v2400_v30 = vadd.s32 8, %v7599_v9  ;;  %v2402_v54 = vadd.s32 24, %v7599_v9 }
 0x361   : > { %4642 = vmatprep.subr.bf16.mxu0 %v4641_v12  ;;  %v3064_v1 = vmul.f32 %v2886_v23, %v6369_v21  ;;  %v2887_v61 = vmul.f32 -1.0, %v2879_v58  ;;  %v2858_v62 = vsel %vm6459_vm9, %v6420_v19, %v6433_v14  ;;  %v2882_v27 = vsel %vm6459_vm9, %v6410_v6, %v6428_v36 }
 0x362   : > { %v2855_v44 = vsel %vm6414_vm14, %v6445_v24, %v2853_v7  ;;  %v6489_v49 = vand.u32 15, %v2400_v30  ;;  %v6491_v26 = vand.u32 15, %v2402_v54  ;;  %v3060_v52 = vmul.f32 %v2858_v62, %v6369_v21 }
 0x363   : > { %v6480_v46 = vadd.f32 %v3064_v1, %v3056_v41  ;;  %v3057_v60 = vmul.f32 %v2855_v44, %v6377_v20  ;;  %v3068_v17 = vmul.f32 %v2882_v27, %v6360_v4  ;;  %v7610_v47 = vmov 0.0   ;;  %v4555_v44 = vld [vmem:[%s7549_s9 + $0x30] sm:$0xff] }
 0x364   : > { %4644 = vmatpush1.bf16.msra.mxu0 %v4643_v35  ;;  %v3065_v35 = vmul.f32 %v2887_v61, %v6380_v28  ;;  %v2823_v32 = vand.u32 4, %v6489_v49  ;;  %v2825_v12 = vand.u32 4, %v6491_v26  ;;  %v2859_v58 = vsel %vm6459_vm9, %v6445_v24, %v2853_v7 }
 0x365   : > { %v6522_v1 = vadd.f32 %v3068_v17, %v3060_v52  ;;  %v2883_v27 = vsel %vm6459_vm9, %v6449_v2, %v6453_v37  ;;  %v2921_v33 = vrot.slane %v6355_v22, %v7600_v40 }
 0x366   : > { %v6512_v23 = vadd.f32 %v3065_v35, %v3057_v60  ;;  %vm6518_vm8 = vcmp.gt.s32.totalorder %v2823_v32, 0  ;;  %vm6532_vm12 = vcmp.gt.s32.totalorder %v2825_v12, 0  ;;  %v3061_v12 = vmul.f32 %v2859_v58, %v6380_v28  ;;  %v4556_v58 = vld [vmem:[%s7549_s9 + $0x38] sm:$0xff] }
 0x367   : > { %4557 = vmatmul.mubr.msk.f32.vlgmr.msra.gmra.mrb[12].mxu0 %vm2427_vm3, %v4553_v34  ;;  %v2880_v4 = vsel %vm6518_vm8, %v6410_v6, %v6428_v36  ;;  %v2856_v54 = vsel %vm6518_vm8, %v6420_v19, %v6433_v14  ;;  %v2881_v61 = vsel %vm6518_vm8, %v6449_v2, %v6453_v37  ;;  %v2857_v32 = vsel %vm6518_vm8, %v6445_v24, %v2853_v7 }
 0x368   : > { %3037 = vmatprep.mubr.f32.mxu0 %v7610_v47  ;;  %v2888_v34 = vmul.f32 -1.0, %v2880_v4  ;;  %v3058_v62 = vmul.f32 %v2856_v54, %v6394_v25  ;;  %v2889_v60 = vmul.f32 -1.0, %v2881_v61  ;;  %v3069_v17 = vmul.f32 %v2883_v27, %v6377_v20 }
 0x369   : > { %v2860_v54 = vsel %vm6532_vm12, %v6420_v19, %v6433_v14  ;;  %v2884_v20 = vsel %vm6532_vm12, %v6410_v6, %v6428_v36  ;;  %v2885_v6 = vsel %vm6532_vm12, %v6449_v2, %v6453_v37  ;;  %v6608_v2 = vsub.s32 6, %v7599_v9 }
 0x36a   : > { %v3066_v52 = vmul.f32 %v2888_v34, %v6385_v15  ;;  %v3067_v4 = vmul.f32 %v2889_v60, %v6403_v29  ;;  %v6572_v61 = vadd.f32 %v3069_v17, %v3061_v12  ;;  %v3062_v28 = vmul.f32 %v2860_v54, %v6385_v15 }
 0x36b   : > { %4558 = vmatmul.mubr.msk.f32.gmra.mrb[14].mxu0 %vm2427_vm3, %v4554_v10  ;;  %v3059_v10 = vmul.f32 %v2857_v32, %v6401_v31  ;;  %v3070_v14 = vmul.f32 %v2884_v20, %v6394_v25  ;;  %v3071_v25 = vmul.f32 %v2885_v6, %v6401_v31  ;;  %v3112_v60 = vand.u32 2, %v6389_v0 }
 0x36c   : > { %3043 = vmatprep.mubr.f32.mxu0 %v7610_v47  ;;  %v6570_v34 = vadd.f32 %v3066_v52, %v3058_v62  ;;  %v6627_v52 = vrot.slane %v6291_v39, %v6608_v2  ;;  %v6635_v12 = vrot.slane %v6294_v53, %v6608_v2  ;;  %v3113_v17 = vand.u32 2, %v6489_v49 }
 0x36d   : > { %v6583_v19 = vadd.f32 %v3067_v4, %v3059_v10  ;;  %v6598_v62 = vadd.f32 %v3070_v14, %v3062_v28  ;;  %vm6613_vm10 = vcmp.gt.s32.totalorder %v3112_v60, 0  ;;  %v3115_v10 = vand.u32 2, %v6491_v26 }
 0x36e   : > { %v6653_v28 = vrot.slane %v6314_v48, %v6608_v2  ;;  %v6661_v14 = vrot.slane %v6316_v55, %v6608_v2  ;;  %vm6663_vm15 = vcmp.gt.s32.totalorder %v3113_v17, 0  ;;  %v6730_v60 = vsub.s32 3, %v7599_v9 }
 0x36f   : > { %4559 = vmatmul.mubr.msk.f32.gmra.mrb[16].mxu0 %vm2427_vm3, %v4555_v44  ;;  %v2861_v44 = vsel %vm6532_vm12, %v6445_v24, %v2853_v7  ;;  %v3114_v24 = vand.u32 2, %v6398_v38  ;;  %v6605_v7 = vsub.s32 2, %v7599_v9  ;;  %vm6667_vm0 = vcmp.gt.s32.totalorder %v3115_v10, 0 }
 0x370   : > { %3049 = vmatprep.mubr.f32.mxu0 %v7610_v47  ;;  %v3063_v36 = vmul.f32 %v2861_v44, %v6403_v29  ;;  %7623 = vst [vmem:[#allocation23_spill] sm:$0xff] %v6730_v60  ;;  %v6733_v54 = vsub.s32 7, %v7599_v9  ;;  %v7628_v17 = vmov 0  ;;  %v3405_v10 = vand.u32 1, %v6491_v26  ;;  %v7666_v29 = vld [vmem:[#allocation37_spill] sm:$0xff] }
 0x371   : > { %vm6617_vm13 = vcmp.gt.s32.totalorder %v3114_v24, 0  ;;  %v6623_v27 = vrot.slane %v6352_v16, %v6605_v7  ;;  %v6631_v32 = vrot.slane %v6355_v22, %v6605_v7  ;;  %v6649_v20 = vrot.slane %v6364_v50, %v6605_v7 }
 0x372   : > { %v6610_v37 = vadd.f32 %v3071_v25, %v3063_v36  ;;  %v3402_v25 = vand.u32 1, %v6389_v0  ;;  %v3404_v36 = vand.u32 1, %v6398_v38  ;;  %7624 = vst [vmem:[#allocation20_spill] sm:$0xff] %v6733_v54  ;;  %v7625_v24 = vmov 0 }
 0x373   : > { %4560 = vmatmul.mubr.msk.f32.gmra.mrb[18].mxu0 %vm2427_vm3, %v4556_v58  ;;  %v6657_v58 = vrot.slane %v6366_v56, %v6605_v7  ;;  %v3403_v0 = vand.u32 1, %v6489_v49  ;;  %v6747_v38 = vrot.slane %v6352_v16, %v6730_v60  ;;  %v6751_v9 = vrot.slane %v6291_v39, %v6733_v54 }
 0x374   : > { %3611 = vmatprep.mubr.f32.mxu0 %v7610_v47  ;;  %vm6735_vm1 = vcmp.gt.s32.totalorder %v3402_v25, 0  ;;  %vm6739_vm2 = vcmp.gt.s32.totalorder %v3404_v36, 0  ;;  %v6755_v25 = vrot.slane %v6355_v22, %v6730_v60  ;;  %v6759_v36 = vrot.slane %v6294_v53, %v6733_v54 }
 0x375   : > { %v7626_v24 = vsel %vm6735_vm1, 4294967295, %v7625_v24  ;;  %v7629_v17 = vsel %vm6739_vm2, 4294967295, %v7628_v17  ;;  %7631 = vst [vmem:[#allocation26_spill] sm:$0xff] %v6747_v38  ;;  %7632 = vst [vmem:[#allocation25_spill] sm:$0xff] %v6751_v9  ;;  %v6771_v4 = vrot.slane %v6364_v50, %v6730_v60  ;;  %v6775_v15 = vrot.slane %v6314_v48, %v6733_v54 }
 0x376   : > { %7627 = vst [vmem:[#allocation21_spill] sm:$0xff] %v7626_v24  ;;  %7630 = vst [vmem:[#allocation24_spill] sm:$0xff] %v7629_v17  ;;  %v6779_v21 = vrot.slane %v6366_v56, %v6730_v60  ;;  %v6783_v49 = vrot.slane %v6316_v55, %v6733_v54  ;;  %vm6785_vm4 = vcmp.gt.s32.totalorder %v3403_v0, 0  ;;  %v7639_v35 = vmov 0 }
 0x377   : > { %7633 = vst [vmem:[#allocation27_spill] sm:$0xff] %v6755_v25  ;;  %7634 = vst [vmem:[#allocation29_spill] sm:$0xff] %v6759_v36  ;;  %v7640_v35 = vsel %vm6785_vm4, 4294967295, %v7639_v35  ;;  %vm6789_vm5 = vcmp.gt.s32.totalorder %v3405_v10, 0  ;;  %v7642_v26 = vmov 0  ;;  %v2925_v0 = vrot.slane %v6366_v56, %v7600_v40 }
 0x378   : > { %7635 = vst [vmem:[#allocation28_spill] sm:$0xff] %v6771_v4  ;;  %7636 = vst [vmem:[#allocation17_spill] sm:$0xff] %v6775_v15  ;;  %v7643_v26 = vsel %vm6789_vm5, 4294967295, %v7642_v26  ;;  %v6855_v9 = vrot.slane %v6352_v16, %v7600_v40  ;;  %v2929_v10 = vrot.slane %v6294_v53, %v6406_v13  ;;  %v2933_v48 = vrot.slane %v6316_v55, %v6406_v13 }
 0x379   : > { %7637 = vst [vmem:[#allocation22_spill] sm:$0xff] %v6779_v21  ;;  %7638 = vst [vmem:[#allocation38_spill] sm:$0xff] %v6783_v49  ;;  %v6863_v15 = vrot.slane %v6291_v39, %v6406_v13  ;;  %v6891_v4 = vrot.slane %v6221_v59, %v6605_v7  ;;  %v6901_v38 = vrot.slane %v7603_v57, %v6605_v7 }
 0x37a   : > { %7641 = vst [vmem:[#allocation39_spill] sm:$0xff] %v7640_v35  ;;  %7644 = vst [vmem:[#allocation40_spill] sm:$0xff] %v7643_v26  ;;  %v2934_v22 = vsel %vm6414_vm14, %v2921_v33, %v2929_v10  ;;  %v2935_v56 = vsel %vm6414_vm14, %v2925_v0, %v2933_v48  ;;  %v2938_v53 = vsel %vm6459_vm9, %v2921_v33, %v2929_v10 }
 0x37b   : > { %v2910_v16 = vsel %vm6414_vm14, %v6855_v9, %v6863_v15  ;;  %v2939_v55 = vsel %vm6459_vm9, %v2925_v0, %v2933_v48  ;;  %v2912_v39 = vsel %vm6518_vm8, %v6855_v9, %v6863_v15  ;;  %v2914_v13 = vsel %vm6459_vm9, %v6855_v9, %v6863_v15 }
 0x37c   : > { %v2942_v40 = vmul.f32 -1.0, %v2934_v22  ;;  %v2940_v50 = vsel %vm6532_vm12, %v2921_v33, %v2929_v10  ;;  %v2941_v49 = vsel %vm6532_vm12, %v2925_v0, %v2933_v48  ;;  %v2943_v21 = vmul.f32 -1.0, %v2935_v56 }
 0x37d   : > { %v2916_v25 = vsel %vm6532_vm12, %v6855_v9, %v6863_v15  ;;  %v2936_v22 = vsel %vm6518_vm8, %v2921_v33, %v2929_v10  ;;  %v6905_v56 = vrot.slane %v6289_v3, %v6605_v7  ;;  %v2937_v24 = vsel %vm6518_vm8, %v2925_v0, %v2933_v48 }
 0x37e   : > { %v6911_v15 = vrot.slane %v7604_v63, %v6608_v2  ;;  %v7645_v33 = vsel %vm6414_vm14, %v6457_v11, %v6467_v18  ;;  %v6920_v3 = vrot.slane %v7605_v5, %v6608_v2  ;;  %v2944_v0 = vmul.f32 -1.0, %v2936_v22 }
 0x380   : > { %v3168_v51 = vsel %vm6613_vm10, %v6891_v4, %v6911_v15  ;;  %v3148_v41 = vsel %vm6617_vm13, %v6901_v38, %v6920_v3  ;;  %v3150_v42 = vsel %vm6667_vm0, %v6901_v38, %v6920_v3 }
 0x381   : > { %v3176_v5 = vmul.f32 -1.0, %v3168_v51  ;;  %v3146_v51 = vsel %vm6663_vm15, %v6901_v38, %v6920_v3 }
 0x43a   : > { %v3033_v36 = vpop.f32.mrb[12].mxu0 }
 0x43b   : > { %v3080_v26 = vmul.f32 %v3033_v36, %v2910_v16  ;;  %v3100_v17 = vmul.f32 %v3033_v36, %v2938_v53  ;;  %v3035_v35 = vpop.f32.mrb[13].mxu0  ;;  %v6924_v36 = vrot.slane %v7606_v45, %v6608_v2  ;;  %v6933_v16 = vrot.slane %v6287_v43, %v6605_v7 }
 0x43c   : > { %v3081_v9 = vmul.f32 %v3035_v35, %v7645_v33  ;;  %v3101_v10 = vmul.f32 %v3035_v35, %v2939_v55  ;;  %v2945_v55 = vmul.f32 -1.0, %v2937_v24  ;;  %v3144_v33 = vsel %vm6613_vm10, %v6901_v38, %v6920_v3 }
 0x43d   : > { %v3088_v48 = vadd.f32 %v3080_v26, %v6480_v46  ;;  %v3169_v46 = vsel %vm6613_vm10, %v6905_v56, %v6924_v36  ;;  %v6946_v7 = vrot.slane %v7609_v8, %v6608_v2  ;;  %v7646_v24 = vsel %vm6518_vm8, %v6457_v11, %v6467_v18 }
 0x43e   : > { %v3089_v35 = vadd.f32 %v3081_v9, %v6512_v23  ;;  %v3039_v53 = vpop.f32.mrb[14].mxu0  ;;  %v3170_v23 = vsel %vm6663_vm15, %v6891_v4, %v6911_v15 }
 0x43f   : > { %v3082_v26 = vmul.f32 %v3039_v53, %v2912_v39  ;;  %v3102_v22 = vmul.f32 %v3039_v53, %v2940_v50  ;;  %v3041_v45 = vpop.f32.mrb[15].mxu0  ;;  %v3171_v50 = vsel %vm6663_vm15, %v6905_v56, %v6924_v36  ;;  %v3145_v39 = vsel %vm6613_vm10, %v6933_v16, %v6946_v7 }
 0x440   : > { %v3083_v9 = vmul.f32 %v3041_v45, %v7646_v24  ;;  %v3103_v43 = vmul.f32 %v3041_v45, %v2941_v49  ;;  %v3177_v53 = vmul.f32 -1.0, %v3169_v46  ;;  %v3179_v63 = vmul.f32 -1.0, %v3171_v50 }
 0x441   : > { %v3090_v2 = vadd.f32 %v3082_v26, %v6570_v34  ;;  %v3178_v34 = vmul.f32 -1.0, %v3170_v23  ;;  %v3147_v26 = vsel %vm6663_vm15, %v6933_v16, %v6946_v7 }
 0x442   : > { %v3091_v45 = vadd.f32 %v3083_v9, %v6583_v19  ;;  %v3045_v49 = vpop.f32.mrb[16].mxu0  ;;  %v3172_v19 = vsel %vm6617_vm13, %v6891_v4, %v6911_v15  ;;  %v7647_v9 = vsel %vm6459_vm9, %v6457_v11, %v6467_v18 }
 0x443   : > { %v3084_v46 = vmul.f32 %v3045_v49, %v2914_v13  ;;  %v3096_v24 = vmul.f32 %v3045_v49, %v2942_v40  ;;  %v3047_v8 = vpop.f32.mrb[17].mxu0  ;;  %v3149_v13 = vsel %vm6617_vm13, %v6933_v16, %v6946_v7  ;;  %v3173_v40 = vsel %vm6617_vm13, %v6905_v56, %v6924_v36 }
 0x444   : > { %v3085_v23 = vmul.f32 %v3047_v8, %v7647_v9  ;;  %v3097_v54 = vmul.f32 %v3047_v8, %v2943_v21  ;;  %v3174_v8 = vsel %vm6667_vm0, %v6891_v4, %v6911_v15 }
 0x445   : > { %v3092_v50 = vadd.f32 %v3084_v46, %v6522_v1  ;;  %v3104_v49 = vadd.f32 %v3096_v24, %v3088_v48  ;;  %v3151_v1 = vsel %vm6667_vm0, %v6933_v16, %v6946_v7  ;;  %v3175_v48 = vsel %vm6667_vm0, %v6905_v56, %v6924_v36 }
 0x446   : > { %v3093_v21 = vadd.f32 %v3085_v23, %v6572_v61  ;;  %v3105_v9 = vadd.f32 %v3097_v54, %v3089_v35  ;;  %v3051_v57 = vpop.f32.mrb[18].mxu0  ;;  %v7648_v61 = vsel %vm6532_vm12, %v6457_v11, %v6467_v18 }
 0x447   : > { %v3108_v3 = vadd.f32 %v3100_v17, %v3092_v50  ;;  %v3086_v38 = vmul.f32 %v3051_v57, %v2916_v25  ;;  %v3098_v46 = vmul.f32 %v3051_v57, %v2944_v0  ;;  %v3053_v24 = vpop.f32.mrb[19].mxu0  ;;  %v3346_v59 = vmul.f32 %v3144_v33, %v3104_v49 }
 0x448   : > { %v3109_v4 = vadd.f32 %v3101_v10, %v3093_v21  ;;  %v3087_v54 = vmul.f32 %v3053_v24, %v7648_v61  ;;  %v3099_v15 = vmul.f32 %v3053_v24, %v2945_v55  ;;  %v3347_v35 = vmul.f32 %v3145_v39, %v3105_v9 }
 0x449   : > { %v3094_v16 = vadd.f32 %v3086_v38, %v6598_v62  ;;  %v3106_v7 = vadd.f32 %v3098_v46, %v3090_v2  ;;  %v3354_v23 = vmul.f32 %v3176_v5, %v3108_v3  ;;  %v3350_v60 = vmul.f32 %v3148_v41, %v3108_v3 }
 0x44a   : > { %v3095_v17 = vadd.f32 %v3087_v54, %v6610_v37  ;;  %v3107_v25 = vadd.f32 %v3099_v15, %v3091_v45  ;;  %v3355_v57 = vmul.f32 %v3177_v53, %v3109_v4  ;;  %v3358_v56 = vmul.f32 %v3172_v19, %v3104_v49 }
 0x44b   : > { %v3110_v36 = vadd.f32 %v3102_v22, %v3094_v16  ;;  %v4647_v10 = vpack.c.bf16 %v3106_v7, %v3104_v49  ;;  %v3362_v0 = vadd.f32 %v3354_v23, %v3346_v59  ;;  %v3348_v30 = vmul.f32 %v3146_v51, %v3106_v7  ;;  %v7655_v23 = vld [vmem:[#allocation23_spill] sm:$0xff] }
 0x44c   : > { %v3111_v33 = vadd.f32 %v3103_v43, %v3095_v17  ;;  %v4645_v50 = vpack.c.bf16 %v3107_v25, %v3105_v9  ;;  %v3363_v11 = vadd.f32 %v3355_v57, %v3347_v35  ;;  %v3349_v18 = vmul.f32 %v3147_v26, %v3107_v25  ;;  %v7656_v17 = vld [vmem:[#allocation35_spill] sm:$0xff] }
 0x44d   : > { %v4651_v55 = vpack.c.bf16 %v3110_v36, %v3108_v3  ;;  %v3356_v39 = vmul.f32 %v3178_v34, %v3110_v36  ;;  %v7021_v21 = vadd.f32 %v3358_v56, %v3350_v60  ;;  %v3351_v62 = vmul.f32 %v3149_v13, %v3109_v4  ;;  %v4561_v60 = vld [vmem:[%s7549_s9 + $0x40] sm:$0xff]  ;;  %v4563_v34 = vld [vmem:[%s7549_s9 + $0x50] sm:$0xff]  ;;  %v4564_v13 = vld [vmem:[%s7549_s9 + $0x58] sm:$0xff] }
 0x44e   : > { %4646 = vmatprep.subr.bf16.mxu1 %v4645_v50  ;;  %v4649_v5 = vpack.c.bf16 %v3111_v33, %v3109_v4  ;;  %v3357_v2 = vmul.f32 %v3179_v63, %v3111_v33  ;;  %v3359_v37 = vmul.f32 %v3173_v40, %v3105_v9  ;;  %v3352_v41 = vmul.f32 %v3150_v42, %v3110_v36  ;;  %v4562_v63 = vld [vmem:[%s7549_s9 + $0x48] sm:$0xff] }
 0x44f   : > { %4648 = vmatpush1.bf16.msra.mxu1 %v4647_v10  ;;  %v3364_v53 = vadd.f32 %v3356_v39, %v3348_v30  ;;  %v3360_v22 = vmul.f32 %v3174_v8, %v3106_v7  ;;  %v3353_v45 = vmul.f32 %v3151_v1, %v3111_v33  ;;  %v3361_v59 = vmul.f32 %v3175_v48, %v3107_v25  ;;  %v7662_v39 = vld [vmem:[#allocation20_spill] sm:$0xff] }
 0x450   : > { %4650 = vmatprep.subr.bf16.mxu1 %v4649_v5  ;;  %v3365_v43 = vadd.f32 %v3357_v2, %v3349_v18  ;;  %v3367_v51 = vadd.f32 %v3359_v37, %v3351_v62  ;;  %v7649_v49 = vsel %vm6613_vm10, %v6623_v27, %v6627_v52  ;;  %v7650_v8 = vsel %vm6617_vm13, %v6631_v32, %v6635_v12  ;;  %v7663_v62 = vld [vmem:[#allocation31_spill] sm:$0xff] }
 0x451   : > { %v7023_v19 = vadd.f32 %v3360_v22, %v3352_v41  ;;  %v7025_v26 = vadd.f32 %v3361_v59, %v3353_v45  ;;  %v7651_v48 = vsel %vm6613_vm10, %v6649_v20, %v6653_v28  ;;  %v7652_v38 = vsel %vm6617_vm13, %v6657_v58, %v6661_v14  ;;  %v7665_v22 = vld [vmem:[#allocation30_spill] sm:$0xff] }
 0x452   : > { %v7653_v54 = vsel %vm6663_vm15, %v6623_v27, %v6627_v52  ;;  %v7654_v35 = vsel %vm6667_vm0, %v6631_v32, %v6635_v12  ;;  %v7079_v25 = vrot.slane %v7656_v17, %v7655_v23  ;;  %v7657_v57 = vsel %vm6663_vm15, %v6649_v20, %v6653_v28 }
 0x453   : > { %4652 = vmatpush1.bf16.msra.mxu1 %v4651_v55  ;;  %v7658_v36 = vsel %vm6667_vm0, %v6657_v58, %v6661_v14  ;;  %v7660_v50 = vsel %vm6613_vm10, %v6631_v32, %v6635_v12  ;;  %v7661_v18 = vsel %vm6613_vm10, %v6657_v58, %v6661_v14  ;;  %v7107_v5 = vrot.slane %v7663_v62, %v7662_v39 }
 0x454   : > { %v3233_v55 = vmul.f32 -1.0, %v7661_v18  ;;  %v7664_v41 = vsel %vm6663_vm15, %v6631_v32, %v6635_v12  ;;  %v7116_v45 = vrot.slane %v7665_v22, %v7662_v39  ;;  %v7120_v59 = vrot.slane %v7666_v29, %v7655_v23 }
 0x455   : > { %v7668_v32 = vsel %vm6663_vm15, %v6657_v58, %v6661_v14  ;;  %v7671_v58 = vld [vmem:[#allocation33_spill] sm:$0xff] }
 0x456   : > { %4565 = vmatmul.mubr.msk.f32.vlgmr.msra.gmra.mrb[12].mxu1 %vm2427_vm3, %v4561_v60  ;;  %v3235_v12 = vmul.f32 -1.0, %v7668_v32  ;;  %v7147_v14 = vrot.slane %v7671_v58, %v7662_v39 }
 0x457   : > { %3327 = vmatprep.mubr.f32.mxu1 %v7610_v47 }
 0x458   : > { %v3459_v17 = vsel %vm6735_vm1, %v7120_v59, %v7147_v14 }
 0x45a   : > { %4566 = vmatmul.mubr.msk.f32.gmra.mrb[14].mxu1 %vm2427_vm3, %v4562_v63 }
 0x45b   : > { %3333 = vmatprep.mubr.f32.mxu1 %v7610_v47 }
 0x45e   : > { %4567 = vmatmul.mubr.msk.f32.gmra.mrb[16].mxu1 %vm2427_vm3, %v4563_v34 }
 0x45f   : > { %3339 = vmatprep.mubr.f32.mxu1 %v7610_v47 }
 0x462   : > { %4568 = vmatmul.mubr.msk.f32.gmra.mrb[18].mxu1 %vm2427_vm3, %v4564_v13 }
 0x463   : > { %3773 = vmatprep.mubr.f32.mxu1 %v7610_v47 }
 0x529   : > { %v3323_v40 = vpop.f32.mrb[12].mxu1 }
 0x52a   : > { %v3370_v42 = vmul.f32 %v3323_v40, %v7649_v49  ;;  %v3390_v9 = vmul.f32 %v3323_v40, %v7650_v8  ;;  %v3325_v1 = vpop.f32.mrb[13].mxu1  ;;  %v3458_v40 = vsel %vm6735_vm1, %v7079_v25, %v7107_v5  ;;  %v7670_v49 = vsel %vm6617_vm13, %v6649_v20, %v6653_v28 }
 0x52b   : > { %v3371_v3 = vmul.f32 %v3325_v1, %v7651_v48  ;;  %v3391_v46 = vmul.f32 %v3325_v1, %v7652_v38  ;;  %v7673_v38 = vld [vmem:[#allocation32_spill] sm:$0xff] }
 0x52c   : > { %v3378_v24 = vadd.f32 %v3370_v42, %v3362_v0  ;;  %v7659_v0 = vld [vmem:[#allocation34_spill] sm:$0xff] }
 0x52d   : > { %v3379_v4 = vadd.f32 %v3371_v3, %v3363_v11  ;;  %v3329_v61 = vpop.f32.mrb[14].mxu1  ;;  %v7093_v30 = vrot.slane %v7659_v0, %v7655_v23  ;;  %v3232_v11 = vmul.f32 -1.0, %v7660_v50  ;;  %v7672_v3 = vld [vmem:[#allocation36_spill] sm:$0xff]  ;;  %v7676_v0 = vsel %vm6667_vm0, %v6649_v20, %v6653_v28 }
 0x52e   : > { %v3372_v15 = vmul.f32 %v3329_v61, %v7653_v54  ;;  %v3392_v16 = vmul.f32 %v3329_v61, %v7654_v35  ;;  %v3331_v7 = vpop.f32.mrb[15].mxu1  ;;  %v7152_v31 = vrot.slane %v7672_v3, %v7655_v23  ;;  %v7156_v61 = vrot.slane %v7673_v38, %v7662_v39 }
 0x52f   : > { %v3373_v56 = vmul.f32 %v3331_v7, %v7657_v57  ;;  %v3393_v10 = vmul.f32 %v3331_v7, %v7658_v36  ;;  %v3434_v44 = vsel %vm6735_vm1, %v7093_v30, %v7116_v45  ;;  %v3466_v7 = vmul.f32 -1.0, %v3458_v40 }
 0x530   : > { %v3380_v33 = vadd.f32 %v3372_v15, %v3364_v53  ;;  %v3234_v53 = vmul.f32 -1.0, %v7664_v41  ;;  %v3467_v28 = vmul.f32 -1.0, %v3459_v17 }
 0x531   : > { %v3381_v2 = vadd.f32 %v3373_v56, %v3365_v43  ;;  %v3335_v37 = vpop.f32.mrb[16].mxu1  ;;  %v7667_v43 = vsel %vm6617_vm13, %v6623_v27, %v6627_v52 }
 0x532   : > { %v3374_v60 = vmul.f32 %v3335_v37, %v7667_v43  ;;  %v3386_v63 = vmul.f32 %v3335_v37, %v3232_v11  ;;  %v3337_v34 = vpop.f32.mrb[17].mxu1 }
 0x533   : > { %v3375_v42 = vmul.f32 %v3337_v34, %v7670_v49  ;;  %v3387_v8 = vmul.f32 %v3337_v34, %v3233_v55  ;;  %v3439_v49 = vsel %vm6739_vm2, %v7152_v31, %v7156_v61 }
 0x534   : > { %v3382_v1 = vadd.f32 %v3374_v60, %v7021_v21  ;;  %v3394_v48 = vadd.f32 %v3386_v63, %v3378_v24  ;;  %v7674_v21 = vsel %vm6667_vm0, %v6623_v27, %v6627_v52  ;;  %v3435_v52 = vsel %vm6735_vm1, %v7152_v31, %v7156_v61 }
 0x535   : > { %v3383_v54 = vadd.f32 %v3375_v42, %v3367_v51  ;;  %v3395_v15 = vadd.f32 %v3387_v8, %v3379_v4  ;;  %v3341_v35 = vpop.f32.mrb[18].mxu1  ;;  %v3460_v4 = vsel %vm6785_vm4, %v7079_v25, %v7107_v5 }
 0x536   : > { %v3398_v57 = vadd.f32 %v3390_v9, %v3382_v1  ;;  %v3376_v24 = vmul.f32 %v3341_v35, %v7674_v21  ;;  %v3388_v23 = vmul.f32 %v3341_v35, %v3234_v53  ;;  %v3343_v56 = vpop.f32.mrb[19].mxu1  ;;  %v3636_v11 = vmul.f32 %v3434_v44, %v3394_v48  ;;  %v4569_v35 = vld [vmem:[%s7549_s9 + $0x60] sm:$0xff] }
 0x537   : > { %v3399_v36 = vadd.f32 %v3391_v46, %v3383_v54  ;;  %v3377_v9 = vmul.f32 %v3343_v56, %v7676_v0  ;;  %v3389_v50 = vmul.f32 %v3343_v56, %v3235_v12  ;;  %v3436_v46 = vsel %vm6785_vm4, %v7093_v30, %v7116_v45 }
 0x538   : > { %v3384_v18 = vadd.f32 %v3376_v24, %v7023_v19  ;;  %v3396_v27 = vadd.f32 %v3388_v23, %v3380_v33  ;;  %v3644_v20 = vmul.f32 %v3466_v7, %v3398_v57  ;;  %v3468_v37 = vmul.f32 -1.0, %v3460_v4 }
 0x539   : > { %v3385_v6 = vadd.f32 %v3377_v9, %v7025_v26  ;;  %v3397_v55 = vadd.f32 %v3389_v50, %v3381_v2  ;;  %v3462_v33 = vsel %vm6739_vm2, %v7079_v25, %v7107_v5  ;;  %v3637_v29 = vmul.f32 %v3435_v52, %v3395_v15  ;;  %v7682_v50 = vld [vmem:[#allocation27_spill] sm:$0xff] }
 0x53a   : > { %v3400_v39 = vadd.f32 %v3392_v16, %v3384_v18  ;;  %v4655_v62 = vpack.c.bf16 %v3396_v27, %v3394_v48  ;;  %v3652_v22 = vadd.f32 %v3644_v20, %v3636_v11  ;;  %v3461_v26 = vsel %vm6785_vm4, %v7120_v59, %v7147_v14  ;;  %v7683_v11 = vld [vmem:[#allocation29_spill] sm:$0xff] }
 0x53b   : > { %v3401_v41 = vadd.f32 %v3393_v10, %v3385_v6  ;;  %v4653_v53 = vpack.c.bf16 %v3397_v55, %v3395_v15  ;;  %v3648_v2 = vmul.f32 %v3462_v33, %v3394_v48  ;;  %v3463_v16 = vsel %vm6739_vm2, %v7120_v59, %v7147_v14  ;;  %v7686_v6 = vld [vmem:[#allocation17_spill] sm:$0xff] }
 0x53c   : > { %v4659_v43 = vpack.c.bf16 %v3400_v39, %v3398_v57  ;;  %v3645_v63 = vmul.f32 %v3467_v28, %v3399_v36  ;;  %v3438_v10 = vsel %vm6739_vm2, %v7093_v30, %v7116_v45  ;;  %v3649_v34 = vmul.f32 %v3463_v16, %v3395_v15  ;;  %v7688_v28 = vld [vmem:[#allocation22_spill] sm:$0xff] }
 0x53d   : > { %4654 = vmatprep.subr.bf16.mxu0 %v4653_v53  ;;  %v4657_v60 = vpack.c.bf16 %v3401_v41, %v3399_v36  ;;  %v3638_v32 = vmul.f32 %v3436_v46, %v3396_v27  ;;  %v3437_v12 = vsel %vm6785_vm4, %v7152_v31, %v7156_v61  ;;  %v3640_v40 = vmul.f32 %v3438_v10, %v3398_v57  ;;  %v7685_v46 = vld [vmem:[#allocation28_spill] sm:$0xff] }
 0x53e   : > { %4656 = vmatpush1.bf16.msra.mxu0 %v4655_v62  ;;  %v3653_v42 = vadd.f32 %v3645_v63, %v3637_v29  ;;  %v3469_v8 = vmul.f32 -1.0, %v3461_v26  ;;  %v3639_v44 = vmul.f32 %v3437_v12, %v3397_v55  ;;  %v3641_v58 = vmul.f32 %v3439_v49, %v3399_v36  ;;  %v7680_v36 = vld [vmem:[#allocation25_spill] sm:$0xff] }
 0x53f   : > { %4658 = vmatprep.subr.bf16.mxu0 %v4657_v60  ;;  %v3646_v1 = vmul.f32 %v3468_v37, %v3400_v39  ;;  %v3656_v48 = vadd.f32 %v3648_v2, %v3640_v40  ;;  %v3464_v15 = vsel %vm6789_vm5, %v7079_v25, %v7107_v5  ;;  %v3440_v21 = vsel %vm6789_vm5, %v7093_v30, %v7116_v45  ;;  %v4570_v30 = vld [vmem:[%s7549_s9 + $0x68] sm:$0xff] }
 0x540   : > { %v3647_v3 = vmul.f32 %v3469_v8, %v3401_v41  ;;  %v3657_v38 = vadd.f32 %v3649_v34, %v3641_v58  ;;  %v3650_v17 = vmul.f32 %v3464_v15, %v3396_v27  ;;  %v3465_v24 = vsel %vm6789_vm5, %v7120_v59, %v7147_v14  ;;  %v4571_v59 = vld [vmem:[%s7549_s9 + $0x70] sm:$0xff]  ;;  %v4572_v14 = vld [vmem:[%s7549_s9 + $0x78] sm:$0xff] }
 0x541   : > { %v3654_v7 = vadd.f32 %v3646_v1, %v3638_v32  ;;  %v3642_v23 = vmul.f32 %v3440_v21, %v3400_v39  ;;  %v3651_v25 = vmul.f32 %v3465_v24, %v3397_v55  ;;  %v3441_v5 = vsel %vm6789_vm5, %v7152_v31, %v7156_v61  ;;  %v7679_v61 = vld [vmem:[#allocation26_spill] sm:$0xff] }
 0x542   : > { %4660 = vmatpush1.bf16.msra.mxu0 %v4659_v43  ;;  %v3655_v57 = vadd.f32 %v3647_v3, %v3639_v44  ;;  %v3643_v56 = vmul.f32 %v3441_v5, %v3401_v41  ;;  %v7681_v0 = vsel %vm6735_vm1, %v7679_v61, %v7680_v36  ;;  %v7684_v18 = vsel %vm6739_vm2, %v7682_v50, %v7683_v11  ;;  %v7689_v39 = vld [vmem:[#allocation38_spill] sm:$0xff] }
 0x543   : > { %v3658_v45 = vadd.f32 %v3650_v17, %v3642_v23  ;;  %v7687_v55 = vsel %vm6735_vm1, %v7685_v46, %v7686_v6  ;;  %v7690_v62 = vsel %vm6739_vm2, %v7688_v28, %v7689_v39  ;;  %v7691_v29 = vsel %vm6785_vm4, %v7679_v61, %v7680_v36 }
 0x544   : > { %v3659_v4 = vadd.f32 %v3651_v25, %v3643_v56  ;;  %v7692_v26 = vsel %vm6789_vm5, %v7682_v50, %v7683_v11  ;;  %v7694_v63 = vsel %vm6789_vm5, %v7688_v28, %v7689_v39  ;;  %v7695_v32 = vsel %vm6735_vm1, %v7682_v50, %v7683_v11 }
 0x545   : > { %4573 = vmatmul.mubr.msk.f32.vlgmr.msra.gmra.mrb[20].mxu0 %vm2427_vm3, %v4569_v35  ;;  %v3522_v12 = vmul.f32 -1.0, %v7695_v32  ;;  %v7697_v44 = vsel %vm6739_vm2, %v7679_v61, %v7680_v36  ;;  %v7698_v15 = vsel %vm6739_vm2, %v7685_v46, %v7686_v6  ;;  %v7700_v19 = vsel %vm6785_vm4, %v7688_v28, %v7689_v39 }
 0x546   : > { %3617 = vmatprep.mubr.f32.mxu0 %v7610_v47  ;;  %v3525_v5 = vmul.f32 -1.0, %v7700_v19 }
 0x549   : > { %4574 = vmatmul.mubr.msk.f32.gmra.mrb[22].mxu0 %vm2427_vm3, %v4570_v30 }
 0x54a   : > { %3623 = vmatprep.mubr.f32.mxu0 %v7610_v47 }
 0x54d   : > { %4575 = vmatmul.mubr.msk.f32.gmra.mrb[24].mxu0 %vm2427_vm3, %v4571_v59 }
 0x54e   : > { %3629 = vmatprep.mubr.f32.mxu0 %v7610_v47 }
 0x551   : > { %4576 = vmatmul.mubr.msk.f32.gmra.mrb[26].mxu0 %vm2427_vm3, %v4572_v14 }
 0x552   : > { %3891 = vmatprep.mubr.f32.mxu0 %v7610_v47 }
 0x618   : > { %v3613_v31 = vpop.f32.mrb[20].mxu0 }
 0x619   : > { %v3660_v9 = vmul.f32 %v3613_v31, %v7681_v0  ;;  %v3680_v27 = vmul.f32 %v3613_v31, %v7684_v18  ;;  %v3615_v52 = vpop.f32.mrb[21].mxu0 }
 0x61a   : > { %v3661_v20 = vmul.f32 %v3615_v52, %v7687_v55  ;;  %v3681_v37 = vmul.f32 %v3615_v52, %v7690_v62 }
 0x61b   : > { %v3668_v33 = vadd.f32 %v3660_v9, %v3652_v22  ;;  %v7693_v22 = vsel %vm6785_vm4, %v7685_v46, %v7686_v6 }
 0x61c   : > { %v3669_v41 = vadd.f32 %v3661_v20, %v3653_v42  ;;  %v3619_v53 = vpop.f32.mrb[22].mxu0  ;;  %v7696_v42 = vsel %vm6735_vm1, %v7688_v28, %v7689_v39 }
 0x61d   : > { %v3662_v43 = vmul.f32 %v3619_v53, %v7691_v29  ;;  %v3682_v2 = vmul.f32 %v3619_v53, %v7692_v26  ;;  %v3621_v16 = vpop.f32.mrb[23].mxu0  ;;  %v3523_v8 = vmul.f32 -1.0, %v7696_v42 }
 0x61e   : > { %v3663_v60 = vmul.f32 %v3621_v16, %v7693_v22  ;;  %v3683_v10 = vmul.f32 %v3621_v16, %v7694_v63 }
 0x61f   : > { %v3670_v34 = vadd.f32 %v3662_v43, %v3654_v7 }
 0x620   : > { %v3671_v40 = vadd.f32 %v3663_v60, %v3655_v57  ;;  %v3625_v49 = vpop.f32.mrb[24].mxu0  ;;  %v7699_v57 = vsel %vm6785_vm4, %v7682_v50, %v7683_v11 }
 0x621   : > { %v3664_v58 = vmul.f32 %v3625_v49, %v7697_v44  ;;  %v3676_v1 = vmul.f32 %v3625_v49, %v3522_v12  ;;  %v3627_v3 = vpop.f32.mrb[25].mxu0  ;;  %v3524_v21 = vmul.f32 -1.0, %v7699_v57 }
 0x622   : > { %v3665_v35 = vmul.f32 %v3627_v3, %v7698_v15  ;;  %v3677_v7 = vmul.f32 %v3627_v3, %v3523_v8  ;;  %v4587_v3 = vld [vmem:[%s5343_s17 + $0x50] sm:$0xff] }
 0x623   : > { %v3672_v13 = vadd.f32 %v3664_v58, %v3656_v48  ;;  %v3684_v17 = vadd.f32 %v3676_v1, %v3668_v33  ;;  %v7701_v48 = vsel %vm6789_vm5, %v7679_v61, %v7680_v36  ;;  %v4585_v58 = vld [vmem:[%s5343_s17 + $0x40] sm:$0xff]  ;;  %v4586_v1 = vld [vmem:[%s5343_s17 + $0x48] sm:$0xff] }
 0x624   : > { %v3673_v24 = vadd.f32 %v3665_v35, %v3657_v38  ;;  %v3685_v23 = vadd.f32 %v3677_v7, %v3669_v41  ;;  %v3631_v25 = vpop.f32.mrb[26].mxu0  ;;  %v7702_v38 = vsel %vm6789_vm5, %v7685_v46, %v7686_v6  ;;  %v4577_v46 = vld [vmem:[%s5343_s17 + $0x20] sm:$0xff]  ;;  %v4580_v6 = vld [vmem:[%s5343_s17 + $0x38] sm:$0xff] }
 0x625   : > { %v3688_v30 = vadd.f32 %v3680_v27, %v3672_v13  ;;  %v3666_v56 = vmul.f32 %v3631_v25, %v7701_v48  ;;  %v3678_v59 = vmul.f32 %v3631_v25, %v3524_v21  ;;  %v3633_v14 = vpop.f32.mrb[27].mxu0  ;;  %v4588_v35 = vld [vmem:[%s5343_s17 + $0x58] sm:$0xff] }
 0x626   : > { %v3689_v31 = vadd.f32 %v3681_v37, %v3673_v24  ;;  %v3667_v51 = vmul.f32 %v3633_v14, %v7702_v38  ;;  %v3679_v0 = vmul.f32 %v3633_v14, %v3525_v5 }
 0x627   : > { %v3674_v9 = vadd.f32 %v3666_v56, %v3658_v45  ;;  %v3686_v50 = vadd.f32 %v3678_v59, %v3670_v34  ;;  %v4578_v45 = vld [vmem:[%s5343_s17 + $0x28] sm:$0xff] }
 0x628   : > { %v3675_v11 = vadd.f32 %v3667_v51, %v3659_v4  ;;  %v3687_v18 = vadd.f32 %v3679_v0, %v3671_v40  ;;  %v4579_v4 = vld [vmem:[%s5343_s17 + $0x30] sm:$0xff] }
 0x629   : > { %v3690_v27 = vadd.f32 %v3682_v2, %v3674_v9  ;;  %v4663_v61 = vpack.c.bf16 %v3686_v50, %v3684_v17 }
 0x62a   : > { %v3691_v36 = vadd.f32 %v3683_v10, %v3675_v11  ;;  %v4661_v52 = vpack.c.bf16 %v3687_v18, %v3685_v23 }
 0x62b   : > { %v4667_v55 = vpack.c.bf16 %v3690_v27, %v3688_v30 }
 0x62c   : > { %4662 = vmatprep.subr.bf16.mxu1 %v4661_v52  ;;  %v4665_v54 = vpack.c.bf16 %v3691_v36, %v3689_v31  ;;  %v4593_v36 = vld [vmem:[%s5343_s17 + $0x60] sm:$0xff] }
 0x62d   : > { %4664 = vmatpush1.bf16.msra.mxu1 %v4663_v61 }
 0x62e   : > { %4666 = vmatprep.subr.bf16.mxu1 %v4665_v54  ;;  %v4595_v54 = vld [vmem:[%s5343_s17 + $0x70] sm:$0xff] }
 0x631   : > { %4668 = vmatpush1.bf16.msra.mxu1 %v4667_v55  ;;  %v4594_v55 = vld [vmem:[%s5343_s17 + $0x68] sm:$0xff] }
 0x634   : > { %4581 = vmatmul.mubr.msk.f32.vlgmr.msra.gmra.mrb[20].mxu1 %vm2427_vm3, %v4577_v46  ;;  %v4596_v46 = vld [vmem:[%s5343_s17 + $0x78] sm:$0xff] }
 0x635   : > { %3779 = vmatprep.mubr.f32.mxu1 %v7610_v47 }
 0x638   : > { %4582 = vmatmul.mubr.msk.f32.gmra.mrb[22].mxu1 %vm2427_vm3, %v4578_v45  ;;  %v4167_v45 = vld [vmem:[%s5341_s24 + $0x8] sm:$0xff]  ;;  %s5036_s24 = smov [#allocation9]  }
 0x639   : > { %3785 = vmatprep.mubr.f32.mxu1 %v7610_v47  ;;  %4175 = vperm.xlu1 %4823, %v4167_v45  }
 0x63c   : > { %4583 = vmatmul.mubr.msk.f32.gmra.mrb[24].mxu1 %vm2427_vm3, %v4579_v4 }
 0x63d   : > { %3791 = vmatprep.mubr.f32.mxu1 %v7610_v47 }
 0x640   : > { %4584 = vmatmul.mubr.msk.f32.gmra.mrb[26].mxu1 %vm2427_vm3, %v4580_v6 }
 0x641   : > { %4009 = vmatprep.mubr.f32.mxu1 %v7610_v47 }
 0x707   : > { %v3775_v20 = vpop.f32.mrb[20].mxu1 }
 0x708   : > { %v3777_v28 = vpop.f32.mrb[21].mxu1  ;;  %v3798_v53 = vmul.f32 %v3775_v20, %v3775_v20 }
 0x709   : > { %v3799_v26 = vmul.f32 %v3777_v28, %v3777_v28 }
 0x70b   : > { %v3781_v39 = vpop.f32.mrb[22].mxu1 }
 0x70c   : > { %v4671_v62 = vpack.c.bf16 %v3781_v39, %v3775_v20  ;;  %v3783_v37 = vpop.f32.mrb[23].mxu1  ;;  %v3800_v63 = vmul.f32 %v3781_v39, %v3781_v39 }
 0x70d   : > { %v4669_v33 = vpack.c.bf16 %v3783_v37, %v3777_v28  ;;  %v3801_v12 = vmul.f32 %v3783_v37, %v3783_v37 }
 0x70f   : > { %v3787_v41 = vpop.f32.mrb[24].mxu1  ;;  %4670 = vmatprep.subr.bf16.mxu0 %v4669_v33 }
 0x710   : > { %v3802_v29 = vmul.f32 %v3787_v41, %v3787_v41  ;;  %v3789_v43 = vpop.f32.mrb[25].mxu1  ;;  %4672 = vmatpush1.bf16.msra.mxu0 %v4671_v62 }
 0x711   : > { %v3803_v2 = vmul.f32 %v3789_v43, %v3789_v43 }
 0x712   : > { %v3806_v16 = vadd.f32 %v3802_v29, %v3798_v53 }
 0x713   : > { %v3807_v22 = vadd.f32 %v3803_v2, %v3799_v26  ;;  %v3793_v60 = vpop.f32.mrb[26].mxu1 }
 0x714   : > { %v3804_v10 = vmul.f32 %v3793_v60, %v3793_v60  ;;  %v4675_v34 = vpack.c.bf16 %v3793_v60, %v3787_v41  ;;  %v3795_v32 = vpop.f32.mrb[27].mxu1 }
 0x715   : > { %v3805_v40 = vmul.f32 %v3795_v32, %v3795_v32  ;;  %v4673_v49 = vpack.c.bf16 %v3795_v32, %v3789_v43 }
 0x716   : > { %v3808_v42 = vadd.f32 %v3804_v10, %v3800_v63 }
 0x717   : > { %v3809_v8 = vadd.f32 %v3805_v40, %v3801_v12  ;;  %4674 = vmatprep.subr.bf16.mxu0 %v4673_v49 }
 0x718   : > { %v4695_v44 = vpack.c.bf16 %v3808_v42, %v3806_v16  ;;  %4676 = vmatpush1.bf16.msra.mxu0 %v4675_v34 }
 0x719   : > { %v4693_v15 = vpack.c.bf16 %v3809_v8, %v3807_v22  ;;  %v4601_v8 = vld [vmem:[%s5343_s17 + $0x80] sm:$0xff] }
 0x71b   : > { %4589 = vmatmul.mubr.msk.f32.vlgmr.msra.gmra.mrb[28].mxu0 %vm2427_vm3, %v4585_v58  ;;  %v4602_v58 = vld [vmem:[%s5343_s17 + $0x88] sm:$0xff] }
 0x71c   : > { %3897 = vmatprep.mubr.f32.mxu0 %v7610_v47 }
 0x71f   : > { %4590 = vmatmul.mubr.msk.f32.gmra.mrb[30].mxu0 %vm2427_vm3, %v4586_v1  ;;  %v4603_v1 = vld [vmem:[%s5343_s17 + $0x90] sm:$0xff] }
 0x720   : > { %3903 = vmatprep.mubr.f32.mxu0 %v7610_v47 }
 0x723   : > { %4591 = vmatmul.mubr.msk.f32.gmra.mrb[32].mxu0 %vm2427_vm3, %v4587_v3  ;;  %v4604_v3 = vld [vmem:[%s5343_s17 + $0x98] sm:$0xff]  ;;  %s4279_s17 = sshll.u32 %s5036_s24, 4  ;;  %s4280_s17 = int_to_ptr.vmem [resolvable:$true] %s4279_s17 }
 0x724   : > { %3909 = vmatprep.mubr.f32.mxu0 %v7610_v47  ;;  %p4941_p6 = scmp.lt.s32.totalorder %s4280_s17, %s4280_s17 }
 0x727   : > { %4592 = vmatmul.mubr.msk.f32.gmra.mrb[34].mxu0 %vm2427_vm3, %v4588_v35 }
 0x728   : > { %4127 = vmatprep.mubr.f32.mxu0 %v7610_v47 }
 0x7ee   : > { %v3893_v7 = vpop.f32.mrb[28].mxu0 }
 0x7ef   : > { %v3895_v13 = vpop.f32.mrb[29].mxu0  ;;  %v3916_v25 = vmul.f32 %v3893_v7, %v3893_v7 }
 0x7f0   : > { %v3917_v30 = vmul.f32 %v3895_v13, %v3895_v13 }
 0x7f2   : > { %v3899_v17 = vpop.f32.mrb[30].mxu0 }
 0x7f3   : > { %v4679_v57 = vpack.c.bf16 %v3899_v17, %v3893_v7  ;;  %v3901_v21 = vpop.f32.mrb[31].mxu0  ;;  %v3918_v31 = vmul.f32 %v3899_v17, %v3899_v17 }
 0x7f4   : > { %v4677_v24 = vpack.c.bf16 %v3901_v21, %v3895_v13  ;;  %v3919_v9 = vmul.f32 %v3901_v21, %v3901_v21 }
 0x7f6   : > { %v3905_v23 = vpop.f32.mrb[32].mxu0  ;;  %4678 = vmatprep.subr.bf16.mxu1 %v4677_v24 }
 0x7f7   : > { %v3920_v19 = vmul.f32 %v3905_v23, %v3905_v23  ;;  %v3907_v5 = vpop.f32.mrb[33].mxu0  ;;  %4680 = vmatpush1.bf16.msra.mxu1 %v4679_v57 }
 0x7f8   : > { %v3921_v48 = vmul.f32 %v3907_v5, %v3907_v5 }
 0x7f9   : > { %v3924_v56 = vadd.f32 %v3920_v19, %v3916_v25 }
 0x7fa   : > { %v3925_v59 = vadd.f32 %v3921_v48, %v3917_v30  ;;  %v3911_v14 = vpop.f32.mrb[34].mxu0 }
 0x7fb   : > { %v3922_v38 = vmul.f32 %v3911_v14, %v3911_v14  ;;  %v4683_v51 = vpack.c.bf16 %v3911_v14, %v3905_v23  ;;  %v3913_v0 = vpop.f32.mrb[35].mxu0 }
 0x7fc   : > { %v3923_v50 = vmul.f32 %v3913_v0, %v3913_v0  ;;  %v4681_v11 = vpack.c.bf16 %v3913_v0, %v3907_v5 }
 0x7fd   : > { %v3926_v18 = vadd.f32 %v3922_v38, %v3918_v31 }
 0x7fe   : > { %v3927_v27 = vadd.f32 %v3923_v50, %v3919_v9  ;;  %4682 = vmatprep.subr.bf16.mxu1 %v4681_v11  ;;  %v7703_v50 = vld [vmem:[#allocation19_spill] sm:$0xff]  ;;  %v7704_v11 = vld [vmem:[#allocation18_spill] sm:$0xff] }
 0x7ff   : > { %v4699_v61 = vpack.c.bf16 %v3926_v18, %v3924_v56  ;;  %4684 = vmatpush1.bf16.msra.mxu1 %v4683_v51  ;;  %v4164_v18 = vld [vmem:[%s5305_s27] sm:$0xff] }
 0x800   : > { %4694 = vmatprep.subr.bf16.mxu1 %v4693_v15  ;;  %v4697_v52 = vpack.c.bf16 %v3927_v27, %v3925_v59  ;;  %v4165_v27 = vld [vmem:[%s5305_s27 + $0x8] sm:$0xff]  ;;  %s4934_s27 = scalar_lea.vmem %s4280_s17, 512 }
 0x801   : > { %p4935_p10 = scmp.ne.s32.totalorder %s4280_s17, %s4934_s27  ;;  %p4942_p8 = scmp.lt.s32.totalorder %s4934_s27, %s4934_s27 }
 0x802   : > { %4597 = vmatmul.mubr.msk.f32.vlgmr.msra.gmra.mrb[28].mxu1 %vm2427_vm3, %v4593_v36 }
 0x803   : > { %4696 = vmatpush1.bf16.msra.mxu1 %v4695_v44  ;;  %4015 = vmatprep.mubr.f32.mxu1 %v7610_v47  ;;  %p4936_p3 = pnand %p4935_p10, %p4755_p7  ;;  %p4943_p0 = por %p4942_p8, %p4941_p6 }
 0x804   : > { %4698 = vmatprep.subr.bf16.mxu1 %v4697_v52 }
 0x805   : > { %p4937_p4 = pneg %p4936_p3 }
 0x806   : > { %4598 = vmatmul.mubr.msk.f32.gmra.mrb[30].mxu1 %vm2427_vm3, %v4594_v55 }
 0x807   : > { %4700 = vmatpush1.bf16.msra.mxu1 %v4699_v61  ;;  %4021 = vmatprep.mubr.f32.mxu1 %v7610_v47  ;;  %v4171_v61 = vpop.permute.xlu0 %4170  ;;  %p4944_p5 = pnand %p4943_p0, %p4937_p4 }
 0x80a   : > { %4599 = vmatmul.mubr.msk.f32.gmra.mrb[32].mxu1 %vm2427_vm3, %v4595_v54 }
 0x80b   : > { %4027 = vmatprep.mubr.f32.mxu1 %v7610_v47 }
 0x80e   : > { %4600 = vmatmul.mubr.msk.f32.gmra.mrb[34].mxu1 %vm2427_vm3, %v4596_v46  ;;  %v4176_v46 = vpop.permute.xlu1 %4175 }
 0x80f   : > { %4249 = vmatprep.mubr.f32.mxu1 %v7610_v47 }
 0x8d5   : > { %v4011_v4 = vpop.f32.mrb[28].mxu1 }
 0x8d6   : > { %v4013_v6 = vpop.f32.mrb[29].mxu1  ;;  %v4034_v33 = vmul.f32 %v4011_v4, %v4011_v4 }
 0x8d7   : > { %v4035_v29 = vmul.f32 %v4013_v6, %v4013_v6 }
 0x8d9   : > { %v4017_v20 = vpop.f32.mrb[30].mxu1 }
 0x8da   : > { %v4687_v28 = vpack.c.bf16 %v4017_v20, %v4011_v4  ;;  %v4019_v39 = vpop.f32.mrb[31].mxu1  ;;  %v4036_v22 = vmul.f32 %v4017_v20, %v4017_v20 }
 0x8db   : > { %v4685_v62 = vpack.c.bf16 %v4019_v39, %v4013_v6  ;;  %v4037_v34 = vmul.f32 %v4019_v39, %v4019_v39 }
 0x8dd   : > { %v4023_v37 = vpop.f32.mrb[32].mxu1  ;;  %4686 = vmatprep.subr.bf16.mxu0 %v4685_v62 }
 0x8de   : > { %v4038_v41 = vmul.f32 %v4023_v37, %v4023_v37  ;;  %v4025_v53 = vpop.f32.mrb[33].mxu1  ;;  %4688 = vmatpush1.bf16.msra.mxu0 %v4687_v28 }
 0x8df   : > { %v4039_v43 = vmul.f32 %v4025_v53, %v4025_v53 }
 0x8e0   : > { %v4042_v26 = vadd.f32 %v4038_v41, %v4034_v33 }
 0x8e1   : > { %v4043_v2 = vadd.f32 %v4039_v43, %v4035_v29  ;;  %v4029_v16 = vpop.f32.mrb[34].mxu1 }
 0x8e2   : > { %v4040_v60 = vmul.f32 %v4029_v16, %v4029_v16  ;;  %v4691_v63 = vpack.c.bf16 %v4029_v16, %v4023_v37  ;;  %v4031_v10 = vpop.f32.mrb[35].mxu1 }
 0x8e3   : > { %v4041_v32 = vmul.f32 %v4031_v10, %v4031_v10  ;;  %v4689_v12 = vpack.c.bf16 %v4031_v10, %v4025_v53 }
 0x8e4   : > { %v4044_v40 = vadd.f32 %v4040_v60, %v4036_v22 }
 0x8e5   : > { %v4045_v49 = vadd.f32 %v4041_v32, %v4037_v34  ;;  %4690 = vmatprep.subr.bf16.mxu0 %v4689_v12 }
 0x8e6   : > { %v4703_v42 = vpack.c.bf16 %v4044_v40, %v4042_v26  ;;  %4692 = vmatpush1.bf16.msra.mxu0 %v4691_v63 }
 0x8e7   : > { %v4701_v44 = vpack.c.bf16 %v4045_v49, %v4043_v2 }
 0x8e9   : > { %4605 = vmatmul.mubr.msk.f32.vlgmr.msra.gmra.mrb[36].mxu0 %vm2427_vm3, %v4601_v8  ;;  %4702 = vmatprep.subr.bf16.mxu1 %v4701_v44 }
 0x8ea   : > { %4704 = vmatpush1.bf16.msra.mxu1 %v4703_v42  ;;  %4133 = vmatprep.mubr.f32.mxu0 %v7610_v47 }
 0x8ed   : > { %4606 = vmatmul.mubr.msk.f32.gmra.mrb[38].mxu0 %vm2427_vm3, %v4602_v58 }
 0x8ee   : > { %4139 = vmatprep.mubr.f32.mxu0 %v7610_v47 }
 0x8f1   : > { %4607 = vmatmul.mubr.msk.f32.gmra.mrb[40].mxu0 %vm2427_vm3, %v4603_v1 }
 0x8f2   : > { %4145 = vmatprep.mubr.f32.mxu0 %v7610_v47 }
 0x8f5   : > { %4608 = vmatmul.mubr.msk.f32.gmra.mrb[42].mxu0 %vm2427_vm3, %v4604_v3  ;;  %vm4178_vm3 = vcmask 654336  }
 0x9bc   : > { %v4129_v15 = vpop.f32.mrb[36].mxu0 }
 0x9bd   : > { %v4131_v35 = vpop.f32.mrb[37].mxu0  ;;  %v4152_v57 = vmul.f32 %v4129_v15, %v4129_v15 }
 0x9be   : > { %v4153_v23 = vmul.f32 %v4131_v35, %v4131_v35 }
 0x9c0   : > { %v4135_v7 = vpop.f32.mrb[38].mxu0 }
 0x9c1   : > { %v4137_v13 = vpop.f32.mrb[39].mxu0  ;;  %v4154_v48 = vmul.f32 %v4135_v7, %v4135_v7 }
 0x9c2   : > { %v4155_v14 = vmul.f32 %v4137_v13, %v4137_v13 }
 0x9c4   : > { %v4141_v17 = vpop.f32.mrb[40].mxu0 }
 0x9c5   : > { %v4156_v21 = vmul.f32 %v4141_v17, %v4141_v17  ;;  %v4143_v24 = vpop.f32.mrb[41].mxu0 }
 0x9c6   : > { %v4157_v25 = vmul.f32 %v4143_v24, %v4143_v24 }
 0x9c7   : > { %v4160_v19 = vadd.f32 %v4156_v21, %v4152_v57 }
 0x9c8   : > { %v4161_v5 = vadd.f32 %v4157_v25, %v4153_v23  ;;  %v4147_v30 = vpop.f32.mrb[42].mxu0 }
 0x9c9   : > { %v4158_v56 = vmul.f32 %v4147_v30, %v4147_v30  ;;  %v4149_v59 = vpop.f32.mrb[43].mxu0 }
 0x9ca   : > { %v4159_v31 = vmul.f32 %v4149_v59, %v4149_v59 }
 0x9cb   : > { %v4162_v38 = vadd.f32 %v4158_v56, %v4154_v48 }
 0x9cc   : > { %v4163_v51 = vadd.f32 %v4159_v31, %v4155_v14 }
 0x9cd   : > { %v4707_v0 = vpack.c.bf16 %v4162_v38, %v4160_v19 }
 0x9ce   : > { %v4705_v9 = vpack.c.bf16 %v4163_v51, %v4161_v5 }
 0x9d0   : > { %4706 = vmatprep.subr.bf16.mxu1 %v4705_v9 }
 0x9d1   : > { %4708 = vmatpush1.bf16.msra.mxu1 %v4707_v0 }
 0x9d2   : > { %4710 = vmatprep.subr.bf16.mxu1 %v7703_v50 }
 0x9d5   : > { %4712 = vmatpush1.bf16.msra.mxu1 %v7704_v11 }
 0x9d8   : > { %4609 = vmatmul.mubr.msk.f32.vlgmr.msra.gmra.mrb[36].mxu1 %vm4178_vm3, %v4164_v18 }
 0x9d9   : > { %4255 = vmatprep.mubr.f32.mxu1 %v7610_v47 }
 0x9dc   : > { %4610 = vmatmul.mubr.msk.f32.gmra.mrb[38].mxu1 %vm4178_vm3, %v4165_v27 }
 0xaab   : > { %v4251_v36 = vpop.f32.mrb[36].mxu1 }
 0xaac   : > { %v4252_v52 = vadd.f32 %v4251_v36, %v4171_v61  ;;  %v4253_v55 = vpop.f32.mrb[37].mxu1 }
 0xaad   : > { %v4254_v54 = vadd.f32 %v4253_v55, %v4171_v61 }
 0xaae   : > { %4262 = vst [vmem:[#allocation2] sm:$0xff] %v4252_v52  ;;  %4266 = vst [vmem:[#allocation9] sm:$0xff] %v4252_v52 }
 0xaaf   : > { %4263 = vst [vmem:[#allocation2 + $0x8] sm:$0xff] %v4254_v54  ;;  %4267 = vst [vmem:[#allocation9 + $0x8] sm:$0xff] %v4254_v54  ;;  %v4257_v45 = vpop.f32.mrb[38].mxu1 }
 0xab0   : > { %v4258_v4 = vadd.f32 %v4257_v45, %v4176_v46  ;;  %v4259_v6 = vpop.f32.mrb[39].mxu1 }
 0xab1   : > { %v4260_v47 = vadd.f32 %v4259_v6, %v4176_v46 }
 0xab2   : > { %4264 = vst [vmem:[#allocation2 + $0x10] sm:$0xff] %v4258_v4  ;;  %4268 = vst [vmem:[#allocation9 + $0x10] sm:$0xff] %v4258_v4 }
 0xab3   : > { %4265 = vst [vmem:[#allocation2 + $0x18] sm:$0xff] %v4260_v47  ;;  %4269 = vst [vmem:[#allocation9 + $0x18] sm:$0xff] %v4260_v47 }
 0xab4   : > { %4947 = shalt.err (!%p4944_p5)
}
 0xab5   : > { %s7705_s7 = sld [smem:[#allocation47_spill]] }
 0xabb   : > { %s4948_s1 = scalar_lea.hbm %s7705_s7, 512 }
 0xabc   : > { %p4949_p13 = scmp.ne.s32.totalorder %s7705_s7, %s4948_s1  ;;  %p4954_p11 = scmp.lt.u32.totalorder %s4948_s1, %s7705_s7 }
 0xabe   : > { %p4950_p1 = pnand %p4949_p13, %p4755_p7 }
 0xac0   : > { %p4951_p12 = pneg %p4950_p1 }
 0xac2   : > { %p4956_p9 = pnand %p4954_p11, %p4951_p12 }
 0xac4   : > { %4959 = shalt.err (!%p4956_p9)
}
 0xac5   : > { %s5037_s25 = smov 256   ;;  %s5038_s28 = smov 16  }
 0xac6   : > { %4741 = dma.vmem_to_hbm [thread:$0]  (%p4755_p7), %s4280_s17, 512, %s7705_s7, [#allocation5], %s5037_s25, %s5037_s25, %s5038_s28  }
 0xac7   : > { %4993 = dma.done.wait (%p4755_p7), [#allocation5], 512  }
 0xac8   : > { %4995 = vsyncadd (%p4755_p7), [#allocation5], 4294966784 }
 0xac9 PF: > { %s7706_s18 = sld [smem:[#allocation14_spill]]  ;;  %s7707_s20 = sld [smem:[#allocation13_spill]] }
 0xaca   : > { %s7708_s27 = sld [smem:[#allocation16_spill]]  ;;  %s7709_s19 = sld [smem:[#allocation15_spill]] }
 0xacb   : > { %s7710_s25 = smov %s5002_s26  ;;  %s7712_s28 = smov %s5014_s29 }
 0xacf   : > { %s30_s30 = sadd.s32 1, %s7706_s18   ;;  %s7711_s26 = smov %s7707_s20 }
 0xad0   : > { %p27_p2 = scmp.ge.s32.totalorder %s30_s30, 4   ;;  %s7713_s29 = smov %s7709_s19 }
 0xad2   :  { %29 = sbr.rel (!%p27_p2) target bundleno = 15 (0xf), region = 166 }
 0xad9   :  { %4295 = vsyncpa [#allocation4], 1 }
 0xada   :  { %4297 = vsyncpa [#allocation4 + $0x1], 1 }
 0xadb   :  { %4298 = vsyncpa [#allocation7], 1 }
 0xadc   :  { %4300 = vsyncpa [#allocation7 + $0x1], 1 }
 0xadd   :  { %4301 = vsyncpa [#allocation5], 1 }
 0xade   :  { %4303 = vsyncpa [#allocation5 + $0x1], 1 }

</bundles_post_ra>
